<compile_context>
chip_gen: v5e
topology: v5e:2x2
jax: 0.10.0
libtpu: 0.0.40
codegen_flags: <defaults>
</compile_context>

<pallas_src>
import math
from functools import partial

import jax
import jax.numpy as jnp
from jax import lax
from jax.experimental import pallas as pl
from jax.experimental.pallas import tpu as pltpu

# ----------------------------- small config (consistent with the module) -----------------------------
IMG_SIZE = 16
PATCH = 8
IN_CHANS = 3
EMBED_DIM = 64                 # stands in for 768
DEPTH = 4                      # stands in for 12
NUM_HEADS = 4                  # stands in for 12
NUM_CLASSES = 16               # stands in for 1000
NUM_EXPERTS = 8                # Block hard-codes num_experts=8
TOP_K = 2                      # num_experts_per_tok=2
EXPERT_HIDDEN = 64             # stands in for the hard-coded 512
N_SHARED = 1                   # Block hard-codes n_shared_experts=1
MOE_MLP_RATIO = 1              # Block hard-codes mlp_ratio=1 inside the MoE
SHARED_HIDDEN = EXPERT_HIDDEN * N_SHARED // MOE_MLP_RATIO
NUM_PATCHES = (IMG_SIZE // PATCH) ** 2
SEQ_LEN = NUM_PATCHES + 1
HEAD_DIM = EMBED_DIM // NUM_HEADS
ATTN_SCALE = HEAD_DIM ** (-0.5)
LN_EPS = 1e-5                  # PyTorch LayerNorm default
# actless schedule from Block: False if i < 2 or i >= depth-2 else True
ACTLESS = [False if (i < 2 or i >= DEPTH - 2) else True for i in range(DEPTH)]

# 32 MiB is safe on every generation at these shapes; raise on v5e/v6e at production dims.
_CPARAMS = pltpu.CompilerParams(vmem_limit_bytes=32 * 1024 * 1024)


# ----------------------------- in-kernel helpers -----------------------------
def _layernorm(x, g, b):
    """fp32 LayerNorm over the last dim (eps matches torch default)."""
    mean = jnp.mean(x, axis=-1, keepdims=True)
    var = jnp.mean(jnp.square(x - mean), axis=-1, keepdims=True)
    return (x - mean) * lax.rsqrt(var + LN_EPS) * g + b


def _gelu_tanh(x):
    # TODO(synk): timm Mlp default is exact-erf GELU; erf has no guaranteed Mosaic lowering,
    # so the standard tanh approximation is used in-kernel (max abs deviation ~1e-3).
    c = math.sqrt(2.0 / math.pi)
    return 0.5 * x * (1.0 + jnp.tanh(c * (x + 0.044715 * x * x * x)))


# ----------------------------- Pallas kernels -----------------------------
def _linear_kernel(x_ref, w_ref, b_ref, o_ref):
    """y = x @ w + b, bf16 operands / fp32 accumulate (patch embed)."""
    y = jnp.dot(x_ref[...].astype(jnp.bfloat16), w_ref[...],
                preferred_element_type=jnp.float32) + b_ref[...]
    o_ref[...] = y.astype(o_ref.dtype)


def _norm_head_kernel(x_ref, g_ref, b_ref, w_ref, hb_ref, o_ref):
    """final LayerNorm (cls rows only) fused with the classification head."""
    xn = _layernorm(x_ref[...], g_ref[...], b_ref[...])
    y = jnp.dot(xn.astype(jnp.bfloat16), w_ref[...],
                preferred_element_type=jnp.float32) + hb_ref[...]
    o_ref[...] = y.astype(o_ref.dtype)


def _block_kernel(x_ref, bias_ref,
                  ln1g_ref, ln1b_ref,
                  wq_ref, wk_ref, wv_ref, wproj_ref, bproj_ref,
                  ln2g_ref, ln2b_ref,
                  gate_w_ref,
                  upw_ref, upb_ref, dw_ref, db_ref,
                  fc1w_ref, fc1b_ref, fc2w_ref, fc2b_ref,
                  out_ref,
                  *, num_heads, scale, num_experts, capacity, cap_pad,
                  expert_act, shared_gelu):
    """One fully-fused transformer block: MHA + expert-choice MoE + shared expert, one launch."""
    x = x_ref[...]                                   # (T, D) fp32 residual stream, T = B*seq
    T, D = x.shape

    # --- LayerNorm 1 + multi-head attention (per-head weights -> every slice lane-aligned) ---
    h1 = _layernorm(x, ln1g_ref[...], ln1b_ref[...])
    h1b = h1.astype(jnp.bfloat16)
    bias = bias_ref[...]                             # (T, T) additive block-diag batch mask
    attn = jnp.zeros((T, D), jnp.float32)
    for h in range(num_heads):                       # small static unroll (4 heads at toy scale)
        q = jnp.dot(h1b, wq_ref[h], preferred_element_type=jnp.float32) * scale
        k = jnp.dot(h1b, wk_ref[h], preferred_element_type=jnp.float32)
        v = jnp.dot(h1b, wv_ref[h], preferred_element_type=jnp.float32)
        s = lax.dot_general(q.astype(jnp.bfloat16), k.astype(jnp.bfloat16),
                            (((1,), (1,)), ((), ())),
                            preferred_element_type=jnp.float32) + bias       # (T, T)
        s = s - jnp.max(s, axis=-1, keepdims=True)                            # fp32 softmax
        p = jnp.exp(s)
        p = p * pl.reciprocal(jnp.sum(p, axis=-1, keepdims=True), approx=True)
        o = jnp.dot(p.astype(jnp.bfloat16), v.astype(jnp.bfloat16),
                    preferred_element_type=jnp.float32)                       # (T, hd)
        # head concat folded into the output projection via the per-head proj slab
        attn = attn + jnp.dot(o.astype(jnp.bfloat16), wproj_ref[h],
                              preferred_element_type=jnp.float32)
    x_attn = x + attn + bproj_ref[...]

    # --- LayerNorm 2 + MoE gate, scores computed directly in (E, T) orientation ---
    h2 = _layernorm(x_attn, ln2g_ref[...], ln2b_ref[...])
    h2b = h2.astype(jnp.bfloat16)
    logits_t = lax.dot_general(gate_w_ref[...], h2b, (((1,), (1,)), ((), ())),
                               preferred_element_type=jnp.float32)            # (E, T)
    scores_t = jax.nn.sigmoid(logits_t)

    # --- expert-choice top-k routing, fully in-kernel (capacity steps of argmax + mask) ---
    tok_iota = lax.broadcasted_iota(jnp.int32, (num_experts, T), 1)
    slot_iota3 = lax.broadcasted_iota(jnp.int32, (1, cap_pad, 1), 1)
    slot_iota2 = lax.broadcasted_iota(jnp.int32, (1, cap_pad), 1)
    disp3 = jnp.zeros((num_experts, cap_pad, T), jnp.float32)    # one-hot dispatch, padded slots 0
    wmat = jnp.zeros((num_experts, cap_pad), jnp.float32)        # combine weights, padded slots 0
    masked = scores_t
    for c in range(capacity):
        m_c = jnp.max(masked, axis=-1, keepdims=True)                                  # (E, 1)
        idx_c = jnp.min(jnp.where(masked == m_c, tok_iota, T), axis=-1, keepdims=True)  # (E, 1)
        onehot = tok_iota == idx_c                                                     # (E, T)
        disp3 = disp3 + (jnp.where(onehot, 1.0, 0.0)[:, None, :]
                         * (slot_iota3 == c).astype(jnp.float32))
        wmat = wmat + m_c * (slot_iota2 == c).astype(jnp.float32)
        masked = jnp.where(onehot, jnp.float32(-1e30), masked)

    n_slots = num_experts * cap_pad
    # dispatch (the token gather) as ONE bf16 one-hot matmul on the MXU
    disp2 = disp3.reshape(n_slots, T).astype(jnp.bfloat16)
    xin = jnp.dot(disp2, h2b, preferred_element_type=jnp.float32)            # (slots, D)
    xin3 = xin.reshape(num_experts, cap_pad, D).astype(jnp.bfloat16)

    # --- all experts in one E-batched dot_general pair (up / SiLU / down) ---
    hmid = lax.dot_general(xin3, upw_ref[...], (((2,), (1,)), ((0,), (0,))),
                           preferred_element_type=jnp.float32) + upb_ref[...]  # (E, cap, H)
    if expert_act:
        hmid = hmid * jax.nn.sigmoid(hmid)                                     # SiLU (fp32)
    y3 = lax.dot_general(hmid.astype(jnp.bfloat16), dw_ref[...],
                         (((2,), (1,)), ((0,), (0,))),
                         preferred_element_type=jnp.float32) + db_ref[...]     # (E, cap, D)

    # --- ONE weighted combine matmul (the scatter-add), bf16 operands, fp32 accumulate ---
    comb2 = (disp3 * wmat[:, :, None]).reshape(n_slots, T).astype(jnp.bfloat16)
    y_all = y3.reshape(n_slots, D).astype(jnp.bfloat16)
    moe = lax.dot_general(comb2, y_all, (((0,), (0,)), ((), ())),
                          preferred_element_type=jnp.float32)                  # (T, D)

    # --- shared expert (timm Mlp: fc1 -> GELU/Identity -> fc2) + both residual adds ---
    sh1 = jnp.dot(h2b, fc1w_ref[...], preferred_element_type=jnp.float32) + fc1b_ref[...]
    if shared_gelu:
        sh1 = _gelu_tanh(sh1)
    sh2 = jnp.dot(sh1.astype(jnp.bfloat16), fc2w_ref[...],
                  preferred_element_type=jnp.float32) + fc2b_ref[...]

    out_ref[...] = x_attn + moe + sh2


# ----------------------------- kernel wrappers -----------------------------
def pallas_linear(x, w, b):
    M = x.shape[0]
    N = w.shape[1]
    return pl.pallas_call(
        _linear_kernel,
        out_shape=jax.ShapeDtypeStruct((M, N), jnp.float32),
        compiler_params=_CPARAMS,
    )(x, w, b)


def block_forward(tokens, attn_bias, p, actless):
    T, D = tokens.shape
    # expert-choice capacity exactly as _capacity(): ceil(num_tokens / num_experts * top_k)
    capacity = math.ceil(T / NUM_EXPERTS * TOP_K)
    cap_pad = ((capacity + 7) // 8) * 8            # sublane-align the per-expert slot count
    kern = partial(_block_kernel, num_heads=NUM_HEADS, scale=ATTN_SCALE,
                   num_experts=NUM_EXPERTS, capacity=capacity, cap_pad=cap_pad,
                   expert_act=not actless, shared_gelu=not actless)
    return pl.pallas_call(
        kern,
        out_shape=jax.ShapeDtypeStruct((T, D), jnp.float32),
        compiler_params=_CPARAMS,
    )(tokens, attn_bias,
      p["ln1_g"], p["ln1_b"],
      p["wq"], p["wk"], p["wv"], p["wproj_h"], p["bproj"],
      p["ln2_g"], p["ln2_b"],
      p["gate_w"],
      p["up_w_t"], p["up_b"], p["down_w_t"], p["down_b"],
      p["sh_fc1_w"], p["sh_fc1_b"], p["sh_fc2_w"], p["sh_fc2_b"])


# ----------------------------- model forward -----------------------------
def vit_forward(x, params):
    # x: (B, C, H, W) NCHW, matching the PyTorch PatchEmbed Conv2d input
    B, C, H, W = x.shape
    ps = PATCH
    D = EMBED_DIM

    # PatchEmbed: Conv2d(k=p, stride=p) == patchify + matmul (patch flattened as (C, p, p))
    patches = (x.reshape(B, C, H // ps, ps, W // ps, ps)
                .transpose(0, 2, 4, 1, 3, 5)
                .reshape(B * NUM_PATCHES, C * ps * ps))
    emb = pallas_linear(patches, params["patch_w"], params["patch_b"])
    emb = emb.reshape(B, NUM_PATCHES, D) + params["pos_embed"]     # pos_embed BEFORE cls concat
    cls = jnp.broadcast_to(params["cls_token"], (B, 1, D))
    tokens = jnp.concatenate([cls, emb], axis=1).reshape(B * SEQ_LEN, D)   # flat (T, D) stream

    # block-diagonal additive attention mask (same-batch tokens attend), built ONCE with int math
    T = B * SEQ_LEN
    tok_batch = jnp.arange(T, dtype=jnp.int32) // SEQ_LEN
    attn_bias = jnp.where(tok_batch[:, None] == tok_batch[None, :],
                          jnp.float32(0.0), jnp.float32(-1e30))

    for i in range(DEPTH):
        tokens = block_forward(tokens, attn_bias, params["blocks"][i], ACTLESS[i])

    # final norm is per-token; only cls rows feed the head, so fuse LN + head on cls rows only
    cls_out = tokens.reshape(B, SEQ_LEN, D)[:, 0]                  # (B, D)
    logits = pl.pallas_call(
        _norm_head_kernel,
        out_shape=jax.ShapeDtypeStruct((B, NUM_CLASSES), jnp.float32),
        compiler_params=_CPARAMS,
    )(cls_out, params["norm_g"], params["norm_b"], params["head_w"], params["head_b"])
    return logits


# ----------------------------- deterministic parameter init -----------------------------
def _trunc_normal(key, shape, std=0.02):
    return std * jax.random.truncated_normal(key, -2.0, 2.0, shape, jnp.float32)


def _kaiming_uniform(key, shape, fan_in):
    bound = 1.0 / math.sqrt(fan_in)
    return jax.random.uniform(key, shape, jnp.float32, -bound, bound)


def init_params(key):
    D, E, Hd, SH = EMBED_DIM, NUM_EXPERTS, EXPERT_HIDDEN, SHARED_HIDDEN
    H, hd = NUM_HEADS, HEAD_DIM
    keys = iter(jax.random.split(key, 8 + DEPTH * 12))
    nk = lambda: next(keys)
    bf = lambda a: a.astype(jnp.bfloat16)     # matmul weights stored bf16 (fp32 MXU accumulation)
    params = {
        "patch_w": bf(_kaiming_uniform(nk(), (IN_CHANS * PATCH * PATCH, D), IN_CHANS * PATCH * PATCH)),
        "patch_b": _kaiming_uniform(nk(), (1, D), IN_CHANS * PATCH * PATCH),
        "cls_token": _trunc_normal(nk(), (1, 1, D)),
        "pos_embed": _trunc_normal(nk(), (1, NUM_PATCHES, D)),
        "norm_g": jnp.ones((1, D), jnp.float32),
        "norm_b": jnp.zeros((1, D), jnp.float32),
        "head_w": bf(_trunc_normal(nk(), (D, NUM_CLASSES))),
        "head_b": jnp.zeros((1, NUM_CLASSES), jnp.float32),
        "blocks": [],
    }
    for _ in range(DEPTH):
        # qkv weight initialized in the reference (D, 3D) layout, then re-packed head-major at
        # init time -> (3, H, D, hd): every in-kernel matmul operand starts at lane 0.
        wqkv = _trunc_normal(nk(), (D, 3 * D))
        wqkv_hm = wqkv.reshape(D, 3, H, hd).transpose(1, 2, 0, 3)      # (3, H, D, hd)
        wproj = _trunc_normal(nk(), (D, D))                            # x-side (in, out)
        blk = {
            "ln1_g": jnp.ones((1, D), jnp.float32), "ln1_b": jnp.zeros((1, D), jnp.float32),
            "wq": bf(wqkv_hm[0]), "wk": bf(wqkv_hm[1]), "wv": bf(wqkv_hm[2]),   # (H, D, hd) each
            "wproj_h": bf(wproj.reshape(H, hd, D)),                    # per-head proj slabs
            "bproj": jnp.zeros((1, D), jnp.float32),
            "ln2_g": jnp.ones((1, D), jnp.float32), "ln2_b": jnp.zeros((1, D), jnp.float32),
            # ECMoEGate weight kept in torch (E, D) layout; kernel contracts D on both sides
            "gate_w": bf(_kaiming_uniform(nk(), (E, D), D)),
            # FusedMoELinear weights stored pre-transposed to (E, in, out)
            "up_w_t": bf(_kaiming_uniform(nk(), (E, D, Hd), D)),
            "up_b": _kaiming_uniform(nk(), (E, 1, Hd), D),
            "down_w_t": bf(_kaiming_uniform(nk(), (E, Hd, D), Hd)),
            "down_b": _kaiming_uniform(nk(), (E, 1, D), Hd),
            # shared expert (timm Mlp)
            "sh_fc1_w": bf(_trunc_normal(nk(), (D, SH))),
            "sh_fc1_b": jnp.zeros((1, SH), jnp.float32),
            "sh_fc2_w": bf(_trunc_normal(nk(), (SH, D))),
            "sh_fc2_b": jnp.zeros((1, D), jnp.float32),
        }
        params["blocks"].append(blk)
    return params


# ----------------------------- main -----------------------------
if __name__ == "__main__":
    root = jax.random.PRNGKey(0)
    pkey, xkey = jax.random.split(root)
    params = init_params(pkey)
    # layout: NCHW input, as consumed by the PyTorch PatchEmbed Conv2d
    x = jax.random.normal(xkey, (2, IN_CHANS, IMG_SIZE, IMG_SIZE), jnp.float32)

    out = jax.jit(vit_forward)(x, params)
    out = jax.block_until_ready(out)
    assert out.shape == (2, NUM_CLASSES), out.shape
    assert jnp.all(jnp.isfinite(out))
    print("KERNEL_OK")
</pallas_src>

<mosaic_0001>
module attributes {stable_mosaic.version = 11 : i64} {
  func.func @_linear_kernel(%arg0: memref<8x192xf32, #tpu.memory_space<vmem>>, %arg1: memref<192x64xbf16, #tpu.memory_space<vmem>>, %arg2: memref<1x64xf32, #tpu.memory_space<vmem>>, %arg3: memref<8x64xf32, #tpu.memory_space<vmem>>) attributes {dimension_semantics = [], scalar_prefetch = 0 : i64, scratch_operands = 0 : i64, tpu.core_type = #tpu.core_type<tc>} {
    %c0 = arith.constant 0 : index
    %c0_0 = arith.constant 0 : index
    %0 = vector.load %arg0[%c0, %c0_0] : memref<8x192xf32, #tpu.memory_space<vmem>>, vector<8x192xf32>
    %1 = arith.truncf %0 : vector<8x192xf32> to vector<8x192xbf16>
    %c0_1 = arith.constant 0 : index
    %c0_2 = arith.constant 0 : index
    %2 = vector.load %arg1[%c0_1, %c0_2] : memref<192x64xbf16, #tpu.memory_space<vmem>>, vector<192x64xbf16>
    %cst = arith.constant dense<0.000000e+00> : vector<8x64xf32>
    %3 = tpu.matmul %1, %2, %cst {dimension_numbers = #tpu.dot_dimension_numbers<[1], [0], [0], [1], [0, 0, 1, 1], [], []>} : vector<8x192xbf16>, vector<192x64xbf16>, vector<8x64xf32> -> vector<8x64xf32>
    %c0_3 = arith.constant 0 : index
    %c0_4 = arith.constant 0 : index
    %4 = vector.load %arg2[%c0_3, %c0_4] : memref<1x64xf32, #tpu.memory_space<vmem>>, vector<1x64xf32>
    %5 = vector.broadcast %4 : vector<1x64xf32> to vector<8x64xf32>
    %6 = arith.addf %3, %5 : vector<8x64xf32>
    %c0_5 = arith.constant 0 : index
    %c0_6 = arith.constant 0 : index
    %7 = vector.load %arg3[%c0_5, %c0_6] : memref<8x64xf32, #tpu.memory_space<vmem>>, vector<8x64xf32>
    tpu.vector_store %arg3[%c0_5, %c0_6], %6 {strides = array<i32>} : memref<8x64xf32, #tpu.memory_space<vmem>>, vector<8x64xf32>,
    return
  }
}

module attributes {stable_mosaic.version = 11 : i64} {
  func.func @_block_kernel(%arg0: memref<10x64xf32, #tpu.memory_space<vmem>>, %arg1: memref<10x10xf32, #tpu.memory_space<vmem>>, %arg2: memref<1x64xf32, #tpu.memory_space<vmem>>, %arg3: memref<1x64xf32, #tpu.memory_space<vmem>>, %arg4: memref<4x64x16xbf16, #tpu.memory_space<vmem>>, %arg5: memref<4x64x16xbf16, #tpu.memory_space<vmem>>, %arg6: memref<4x64x16xbf16, #tpu.memory_space<vmem>>, %arg7: memref<4x16x64xbf16, #tpu.memory_space<vmem>>, %arg8: memref<1x64xf32, #tpu.memory_space<vmem>>, %arg9: memref<1x64xf32, #tpu.memory_space<vmem>>, %arg10: memref<1x64xf32, #tpu.memory_space<vmem>>, %arg11: memref<8x64xbf16, #tpu.memory_space<vmem>>, %arg12: memref<8x64x64xbf16, #tpu.memory_space<vmem>>, %arg13: memref<8x1x64xf32, #tpu.memory_space<vmem>>, %arg14: memref<8x64x64xbf16, #tpu.memory_space<vmem>>, %arg15: memref<8x1x64xf32, #tpu.memory_space<vmem>>, %arg16: memref<64x64xbf16, #tpu.memory_space<vmem>>, %arg17: memref<1x64xf32, #tpu.memory_space<vmem>>, %arg18: memref<64x64xbf16, #tpu.memory_space<vmem>>, %arg19: memref<1x64xf32, #tpu.memory_space<vmem>>, %arg20: memref<10x64xf32, #tpu.memory_space<vmem>>) attributes {dimension_semantics = [], scalar_prefetch = 0 : i64, scratch_operands = 0 : i64, tpu.core_type = #tpu.core_type<tc>} {
    %c0 = arith.constant 0 : index
    %c0_0 = arith.constant 0 : index
    %0 = vector.load %arg0[%c0, %c0_0] : memref<10x64xf32, #tpu.memory_space<vmem>>, vector<10x64xf32>
    %c0_1 = arith.constant 0 : index
    %c0_2 = arith.constant 0 : index
    %1 = vector.load %arg2[%c0_1, %c0_2] : memref<1x64xf32, #tpu.memory_space<vmem>>, vector<1x64xf32>
    %c0_3 = arith.constant 0 : index
    %c0_4 = arith.constant 0 : index
    %2 = vector.load %arg3[%c0_3, %c0_4] : memref<1x64xf32, #tpu.memory_space<vmem>>, vector<1x64xf32>
    %cst = arith.constant dense<0.000000e+00> : vector<10xf32>
    %3 = vector.multi_reduction <add>, %0, %cst [1] : vector<10x64xf32> to vector<10xf32>
    %4 = vector.shape_cast %3 : vector<10xf32> to vector<10x1xf32>
    %cst_5 = arith.constant 6.400000e+01 : f32
    %5 = vector.broadcast %cst_5 : f32 to vector<10x1xf32>
    %6 = arith.divf %4, %5 : vector<10x1xf32>
    %7 = vector.broadcast %6 : vector<10x1xf32> to vector<10x64xf32>
    %8 = arith.subf %0, %7 : vector<10x64xf32>
    %9 = arith.mulf %8, %8 : vector<10x64xf32>
    %cst_6 = arith.constant dense<0.000000e+00> : vector<10xf32>
    %10 = vector.multi_reduction <add>, %9, %cst_6 [1] : vector<10x64xf32> to vector<10xf32>
    %11 = vector.shape_cast %10 : vector<10xf32> to vector<10x1xf32>
    %cst_7 = arith.constant 6.400000e+01 : f32
    %12 = vector.broadcast %cst_7 : f32 to vector<10x1xf32>
    %13 = arith.divf %11, %12 : vector<10x1xf32>
    %14 = vector.broadcast %6 : vector<10x1xf32> to vector<10x64xf32>
    %15 = arith.subf %0, %14 : vector<10x64xf32>
    %cst_8 = arith.constant 9.99999974E-6 : f32
    %16 = vector.broadcast %cst_8 : f32 to vector<10x1xf32>
    %17 = arith.addf %13, %16 : vector<10x1xf32>
    %18 = math.rsqrt %17 : vector<10x1xf32>
    %19 = vector.broadcast %18 : vector<10x1xf32> to vector<10x64xf32>
    %20 = arith.mulf %15, %19 : vector<10x64xf32>
    %21 = vector.broadcast %1 : vector<1x64xf32> to vector<10x64xf32>
    %22 = arith.mulf %20, %21 : vector<10x64xf32>
    %23 = vector.broadcast %2 : vector<1x64xf32> to vector<10x64xf32>
    %24 = arith.addf %22, %23 : vector<10x64xf32>
    %25 = arith.truncf %24 : vector<10x64xf32> to vector<10x64xbf16>
    %c0_9 = arith.constant 0 : index
    %c0_10 = arith.constant 0 : index
    %26 = vector.load %arg1[%c0_9, %c0_10] : memref<10x10xf32, #tpu.memory_space<vmem>>, vector<10x10xf32>
    %cst_11 = arith.constant 0.000000e+00 : f32
    %27 = vector.broadcast %cst_11 : f32 to vector<10x64xf32>
    %c0_12 = arith.constant 0 : index
    %c0_13 = arith.constant 0 : index
    %c0_14 = arith.constant 0 : index
    %28 = vector.load %arg4[%c0_12, %c0_13, %c0_14] : memref<4x64x16xbf16, #tpu.memory_space<vmem>>, vector<1x64x16xbf16>
    %29 = vector.shape_cast %28 : vector<1x64x16xbf16> to vector<64x16xbf16>
    %cst_15 = arith.constant dense<0.000000e+00> : vector<10x16xf32>
    %30 = tpu.matmul %25, %29, %cst_15 {dimension_numbers = #tpu.dot_dimension_numbers<[1], [0], [0], [1], [0, 0, 1, 1], [], []>} : vector<10x64xbf16>, vector<64x16xbf16>, vector<10x16xf32> -> vector<10x16xf32>
    %cst_16 = arith.constant 2.500000e-01 : f32
    %31 = vector.broadcast %cst_16 : f32 to vector<10x16xf32>
    %32 = arith.mulf %30, %31 : vector<10x16xf32>
    %c0_17 = arith.constant 0 : index
    %c0_18 = arith.constant 0 : index
    %c0_19 = arith.constant 0 : index
    %33 = vector.load %arg5[%c0_17, %c0_18, %c0_19] : memref<4x64x16xbf16, #tpu.memory_space<vmem>>, vector<1x64x16xbf16>
    %34 = vector.shape_cast %33 : vector<1x64x16xbf16> to vector<64x16xbf16>
    %cst_20 = arith.constant dense<0.000000e+00> : vector<10x16xf32>
    %35 = tpu.matmul %25, %34, %cst_20 {dimension_numbers = #tpu.dot_dimension_numbers<[1], [0], [0], [1], [0, 0, 1, 1], [], []>} : vector<10x64xbf16>, vector<64x16xbf16>, vector<10x16xf32> -> vector<10x16xf32>
    %c0_21 = arith.constant 0 : index
    %c0_22 = arith.constant 0 : index
    %c0_23 = arith.constant 0 : index
    %36 = vector.load %arg6[%c0_21, %c0_22, %c0_23] : memref<4x64x16xbf16, #tpu.memory_space<vmem>>, vector<1x64x16xbf16>
    %37 = vector.shape_cast %36 : vector<1x64x16xbf16> to vector<64x16xbf16>
    %cst_24 = arith.constant dense<0.000000e+00> : vector<10x16xf32>
    %38 = tpu.matmul %25, %37, %cst_24 {dimension_numbers = #tpu.dot_dimension_numbers<[1], [0], [0], [1], [0, 0, 1, 1], [], []>} : vector<10x64xbf16>, vector<64x16xbf16>, vector<10x16xf32> -> vector<10x16xf32>
    %39 = arith.truncf %32 : vector<10x16xf32> to vector<10x16xbf16>
    %40 = arith.truncf %35 : vector<10x16xf32> to vector<10x16xbf16>
    %cst_25 = arith.constant dense<0.000000e+00> : vector<10x10xf32>
    %41 = tpu.matmul %39, %40, %cst_25 {dimension_numbers = #tpu.dot_dimension_numbers<[1], [1], [0], [0], [0, 0, 1, 0], [], []>} : vector<10x16xbf16>, vector<10x16xbf16>, vector<10x10xf32> -> vector<10x10xf32>
    %42 = arith.addf %41, %26 : vector<10x10xf32>
    %cst_26 = arith.constant dense<0xFF800000> : vector<10xf32>
    %43 = vector.multi_reduction <maximumf>, %42, %cst_26 [1] : vector<10x10xf32> to vector<10xf32>
    %44 = vector.shape_cast %43 : vector<10xf32> to vector<10x1xf32>
    %45 = vector.broadcast %44 : vector<10x1xf32> to vector<10x10xf32>
    %46 = arith.subf %42, %45 : vector<10x10xf32>
    %47 = math.exp %46 : vector<10x10xf32>
    %cst_27 = arith.constant dense<0.000000e+00> : vector<10xf32>
    %48 = vector.multi_reduction <add>, %47, %cst_27 [1] : vector<10x10xf32> to vector<10xf32>
    %49 = vector.shape_cast %48 : vector<10xf32> to vector<10x1xf32>
    %50 = tpu.reciprocal %49 {approx = true} : vector<10x1xf32> -> vector<10x1xf32>
    %51 = vector.broadcast %50 : vector<10x1xf32> to vector<10x10xf32>
    %52 = arith.mulf %47, %51 : vector<10x10xf32>
    %53 = arith.truncf %52 : vector<10x10xf32> to vector<10x10xbf16>
    %54 = arith.truncf %38 : vector<10x16xf32> to vector<10x16xbf16>
    %cst_28 = arith.constant dense<0.000000e+00> : vector<10x16xf32>
    %55 = tpu.matmul %53, %54, %cst_28 {dimension_numbers = #tpu.dot_dimension_numbers<[1], [0], [0], [1], [0, 0, 1, 1], [], []>} : vector<10x10xbf16>, vector<10x16xbf16>, vector<10x16xf32> -> vector<10x16xf32>
    %56 = arith.truncf %55 : vector<10x16xf32> to vector<10x16xbf16>
    %c0_29 = arith.constant 0 : index
    %c0_30 = arith.constant 0 : index
    %c0_31 = arith.constant 0 : index
    %57 = vector.load %arg7[%c0_29, %c0_30, %c0_31] : memref<4x16x64xbf16, #tpu.memory_space<vmem>>, vector<1x16x64xbf16>
    %58 = vector.shape_cast %57 : vector<1x16x64xbf16> to vector<16x64xbf16>
    %cst_32 = arith.constant dense<0.000000e+00> : vector<10x64xf32>
    %59 = tpu.matmul %56, %58, %cst_32 {dimension_numbers = #tpu.dot_dimension_numbers<[1], [0], [0], [1], [0, 0, 1, 1], [], []>} : vector<10x16xbf16>, vector<16x64xbf16>, vector<10x64xf32> -> vector<10x64xf32>
    %60 = arith.addf %27, %59 : vector<10x64xf32>
    %c1 = arith.constant 1 : index
    %c0_33 = arith.constant 0 : index
    %c0_34 = arith.constant 0 : index
    %61 = vector.load %arg4[%c1, %c0_33, %c0_34] : memref<4x64x16xbf16, #tpu.memory_space<vmem>>, vector<1x64x16xbf16>
    %62 = vector.shape_cast %61 : vector<1x64x16xbf16> to vector<64x16xbf16>
    %cst_35 = arith.constant dense<0.000000e+00> : vector<10x16xf32>
    %63 = tpu.matmul %25, %62, %cst_35 {dimension_numbers = #tpu.dot_dimension_numbers<[1], [0], [0], [1], [0, 0, 1, 1], [], []>} : vector<10x64xbf16>, vector<64x16xbf16>, vector<10x16xf32> -> vector<10x16xf32>
    %cst_36 = arith.constant 2.500000e-01 : f32
    %64 = vector.broadcast %cst_36 : f32 to vector<10x16xf32>
    %65 = arith.mulf %63, %64 : vector<10x16xf32>
    %c1_37 = arith.constant 1 : index
    %c0_38 = arith.constant 0 : index
    %c0_39 = arith.constant 0 : index
    %66 = vector.load %arg5[%c1_37, %c0_38, %c0_39] : memref<4x64x16xbf16, #tpu.memory_space<vmem>>, vector<1x64x16xbf16>
    %67 = vector.shape_cast %66 : vector<1x64x16xbf16> to vector<64x16xbf16>
    %cst_40 = arith.constant dense<0.000000e+00> : vector<10x16xf32>
    %68 = tpu.matmul %25, %67, %cst_40 {dimension_numbers = #tpu.dot_dimension_numbers<[1], [0], [0], [1], [0, 0, 1, 1], [], []>} : vector<10x64xbf16>, vector<64x16xbf16>, vector<10x16xf32> -> vector<10x16xf32>
    %c1_41 = arith.constant 1 : index
    %c0_42 = arith.constant 0 : index
    %c0_43 = arith.constant 0 : index
    %69 = vector.load %arg6[%c1_41, %c0_42, %c0_43] : memref<4x64x16xbf16, #tpu.memory_space<vmem>>, vector<1x64x16xbf16>
    %70 = vector.shape_cast %69 : vector<1x64x16xbf16> to vector<64x16xbf16>
    %cst_44 = arith.constant dense<0.000000e+00> : vector<10x16xf32>
    %71 = tpu.matmul %25, %70, %cst_44 {dimension_numbers = #tpu.dot_dimension_numbers<[1], [0], [0], [1], [0, 0, 1, 1], [], []>} : vector<10x64xbf16>, vector<64x16xbf16>, vector<10x16xf32> -> vector<10x16xf32>
    %72 = arith.truncf %65 : vector<10x16xf32> to vector<10x16xbf16>
    %73 = arith.truncf %68 : vector<10x16xf32> to vector<10x16xbf16>
    %cst_45 = arith.constant dense<0.000000e+00> : vector<10x10xf32>
    %74 = tpu.matmul %72, %73, %cst_45 {dimension_numbers = #tpu.dot_dimension_numbers<[1], [1], [0], [0], [0, 0, 1, 0], [], []>} : vector<10x16xbf16>, vector<10x16xbf16>, vector<10x10xf32> -> vector<10x10xf32>
    %75 = arith.addf %74, %26 : vector<10x10xf32>
    %cst_46 = arith.constant dense<0xFF800000> : vector<10xf32>
    %76 = vector.multi_reduction <maximumf>, %75, %cst_46 [1] : vector<10x10xf32> to vector<10xf32>
    %77 = vector.shape_cast %76 : vector<10xf32> to vector<10x1xf32>
    %78 = vector.broadcast %77 : vector<10x1xf32> to vector<10x10xf32>
    %79 = arith.subf %75, %78 : vector<10x10xf32>
    %80 = math.exp %79 : vector<10x10xf32>
    %cst_47 = arith.constant dense<0.000000e+00> : vector<10xf32>
    %81 = vector.multi_reduction <add>, %80, %cst_47 [1] : vector<10x10xf32> to vector<10xf32>
    %82 = vector.shape_cast %81 : vector<10xf32> to vector<10x1xf32>
    %83 = tpu.reciprocal %82 {approx = true} : vector<10x1xf32> -> vector<10x1xf32>
    %84 = vector.broadcast %83 : vector<10x1xf32> to vector<10x10xf32>
    %85 = arith.mulf %80, %84 : vector<10x10xf32>
    %86 = arith.truncf %85 : vector<10x10xf32> to vector<10x10xbf16>
    %87 = arith.truncf %71 : vector<10x16xf32> to vector<10x16xbf16>
    %cst_48 = arith.constant dense<0.000000e+00> : vector<10x16xf32>
    %88 = tpu.matmul %86, %87, %cst_48 {dimension_numbers = #tpu.dot_dimension_numbers<[1], [0], [0], [1], [0, 0, 1, 1], [], []>} : vector<10x10xbf16>, vector<10x16xbf16>, vector<10x16xf32> -> vector<10x16xf32>
    %89 = arith.truncf %88 : vector<10x16xf32> to vector<10x16xbf16>
    %c1_49 = arith.constant 1 : index
    %c0_50 = arith.constant 0 : index
    %c0_51 = arith.constant 0 : index
    %90 = vector.load %arg7[%c1_49, %c0_50, %c0_51] : memref<4x16x64xbf16, #tpu.memory_space<vmem>>, vector<1x16x64xbf16>
    %91 = vector.shape_cast %90 : vector<1x16x64xbf16> to vector<16x64xbf16>
    %cst_52 = arith.constant dense<0.000000e+00> : vector<10x64xf32>
    %92 = tpu.matmul %89, %91, %cst_52 {dimension_numbers = #tpu.dot_dimension_numbers<[1], [0], [0], [1], [0, 0, 1, 1], [], []>} : vector<10x16xbf16>, vector<16x64xbf16>, vector<10x64xf32> -> vector<10x64xf32>
    %93 = arith.addf %60, %92 : vector<10x64xf32>
    %c2 = arith.constant 2 : index
    %c0_53 = arith.constant 0 : index
    %c0_54 = arith.constant 0 : index
    %94 = vector.load %arg4[%c2, %c0_53, %c0_54] : memref<4x64x16xbf16, #tpu.memory_space<vmem>>, vector<1x64x16xbf16>
    %95 = vector.shape_cast %94 : vector<1x64x16xbf16> to vector<64x16xbf16>
    %cst_55 = arith.constant dense<0.000000e+00> : vector<10x16xf32>
    %96 = tpu.matmul %25, %95, %cst_55 {dimension_numbers = #tpu.dot_dimension_numbers<[1], [0], [0], [1], [0, 0, 1, 1], [], []>} : vector<10x64xbf16>, vector<64x16xbf16>, vector<10x16xf32> -> vector<10x16xf32>
    %cst_56 = arith.constant 2.500000e-01 : f32
    %97 = vector.broadcast %cst_56 : f32 to vector<10x16xf32>
    %98 = arith.mulf %96, %97 : vector<10x16xf32>
    %c2_57 = arith.constant 2 : index
    %c0_58 = arith.constant 0 : index
    %c0_59 = arith.constant 0 : index
    %99 = vector.load %arg5[%c2_57, %c0_58, %c0_59] : memref<4x64x16xbf16, #tpu.memory_space<vmem>>, vector<1x64x16xbf16>
    %100 = vector.shape_cast %99 : vector<1x64x16xbf16> to vector<64x16xbf16>
    %cst_60 = arith.constant dense<0.000000e+00> : vector<10x16xf32>
    %101 = tpu.matmul %25, %100, %cst_60 {dimension_numbers = #tpu.dot_dimension_numbers<[1], [0], [0], [1], [0, 0, 1, 1], [], []>} : vector<10x64xbf16>, vector<64x16xbf16>, vector<10x16xf32> -> vector<10x16xf32>
    %c2_61 = arith.constant 2 : index
    %c0_62 = arith.constant 0 : index
    %c0_63 = arith.constant 0 : index
    %102 = vector.load %arg6[%c2_61, %c0_62, %c0_63] : memref<4x64x16xbf16, #tpu.memory_space<vmem>>, vector<1x64x16xbf16>
    %103 = vector.shape_cast %102 : vector<1x64x16xbf16> to vector<64x16xbf16>
    %cst_64 = arith.constant dense<0.000000e+00> : vector<10x16xf32>
    %104 = tpu.matmul %25, %103, %cst_64 {dimension_numbers = #tpu.dot_dimension_numbers<[1], [0], [0], [1], [0, 0, 1, 1], [], []>} : vector<10x64xbf16>, vector<64x16xbf16>, vector<10x16xf32> -> vector<10x16xf32>
    %105 = arith.truncf %98 : vector<10x16xf32> to vector<10x16xbf16>
    %106 = arith.truncf %101 : vector<10x16xf32> to vector<10x16xbf16>
    %cst_65 = arith.constant dense<0.000000e+00> : vector<10x10xf32>
    %107 = tpu.matmul %105, %106, %cst_65 {dimension_numbers = #tpu.dot_dimension_numbers<[1], [1], [0], [0], [0, 0, 1, 0], [], []>} : vector<10x16xbf16>, vector<10x16xbf16>, vector<10x10xf32> -> vector<10x10xf32>
    %108 = arith.addf %107, %26 : vector<10x10xf32>
    %cst_66 = arith.constant dense<0xFF800000> : vector<10xf32>
    %109 = vector.multi_reduction <maximumf>, %108, %cst_66 [1] : vector<10x10xf32> to vector<10xf32>
    %110 = vector.shape_cast %109 : vector<10xf32> to vector<10x1xf32>
    %111 = vector.broadcast %110 : vector<10x1xf32> to vector<10x10xf32>
    %112 = arith.subf %108, %111 : vector<10x10xf32>
    %113 = math.exp %112 : vector<10x10xf32>
    %cst_67 = arith.constant dense<0.000000e+00> : vector<10xf32>
    %114 = vector.multi_reduction <add>, %113, %cst_67 [1] : vector<10x10xf32> to vector<10xf32>
    %115 = vector.shape_cast %114 : vector<10xf32> to vector<10x1xf32>
    %116 = tpu.reciprocal %115 {approx = true} : vector<10x1xf32> -> vector<10x1xf32>
    %117 = vector.broadcast %116 : vector<10x1xf32> to vector<10x10xf32>
    %118 = arith.mulf %113, %117 : vector<10x10xf32>
    %119 = arith.truncf %118 : vector<10x10xf32> to vector<10x10xbf16>
    %120 = arith.truncf %104 : vector<10x16xf32> to vector<10x16xbf16>
    %cst_68 = arith.constant dense<0.000000e+00> : vector<10x16xf32>
    %121 = tpu.matmul %119, %120, %cst_68 {dimension_numbers = #tpu.dot_dimension_numbers<[1], [0], [0], [1], [0, 0, 1, 1], [], []>} : vector<10x10xbf16>, vector<10x16xbf16>, vector<10x16xf32> -> vector<10x16xf32>
    %122 = arith.truncf %121 : vector<10x16xf32> to vector<10x16xbf16>
    %c2_69 = arith.constant 2 : index
    %c0_70 = arith.constant 0 : index
    %c0_71 = arith.constant 0 : index
    %123 = vector.load %arg7[%c2_69, %c0_70, %c0_71] : memref<4x16x64xbf16, #tpu.memory_space<vmem>>, vector<1x16x64xbf16>
    %124 = vector.shape_cast %123 : vector<1x16x64xbf16> to vector<16x64xbf16>
    %cst_72 = arith.constant dense<0.000000e+00> : vector<10x64xf32>
    %125 = tpu.matmul %122, %124, %cst_72 {dimension_numbers = #tpu.dot_dimension_numbers<[1], [0], [0], [1], [0, 0, 1, 1], [], []>} : vector<10x16xbf16>, vector<16x64xbf16>, vector<10x64xf32> -> vector<10x64xf32>
    %126 = arith.addf %93, %125 : vector<10x64xf32>
    %c3 = arith.constant 3 : index
    %c0_73 = arith.constant 0 : index
    %c0_74 = arith.constant 0 : index
    %127 = vector.load %arg4[%c3, %c0_73, %c0_74] : memref<4x64x16xbf16, #tpu.memory_space<vmem>>, vector<1x64x16xbf16>
    %128 = vector.shape_cast %127 : vector<1x64x16xbf16> to vector<64x16xbf16>
    %cst_75 = arith.constant dense<0.000000e+00> : vector<10x16xf32>
    %129 = tpu.matmul %25, %128, %cst_75 {dimension_numbers = #tpu.dot_dimension_numbers<[1], [0], [0], [1], [0, 0, 1, 1], [], []>} : vector<10x64xbf16>, vector<64x16xbf16>, vector<10x16xf32> -> vector<10x16xf32>
    %cst_76 = arith.constant 2.500000e-01 : f32
    %130 = vector.broadcast %cst_76 : f32 to vector<10x16xf32>
    %131 = arith.mulf %129, %130 : vector<10x16xf32>
    %c3_77 = arith.constant 3 : index
    %c0_78 = arith.constant 0 : index
    %c0_79 = arith.constant 0 : index
    %132 = vector.load %arg5[%c3_77, %c0_78, %c0_79] : memref<4x64x16xbf16, #tpu.memory_space<vmem>>, vector<1x64x16xbf16>
    %133 = vector.shape_cast %132 : vector<1x64x16xbf16> to vector<64x16xbf16>
    %cst_80 = arith.constant dense<0.000000e+00> : vector<10x16xf32>
    %134 = tpu.matmul %25, %133, %cst_80 {dimension_numbers = #tpu.dot_dimension_numbers<[1], [0], [0], [1], [0, 0, 1, 1], [], []>} : vector<10x64xbf16>, vector<64x16xbf16>, vector<10x16xf32> -> vector<10x16xf32>
    %c3_81 = arith.constant 3 : index
    %c0_82 = arith.constant 0 : index
    %c0_83 = arith.constant 0 : index
    %135 = vector.load %arg6[%c3_81, %c0_82, %c0_83] : memref<4x64x16xbf16, #tpu.memory_space<vmem>>, vector<1x64x16xbf16>
    %136 = vector.shape_cast %135 : vector<1x64x16xbf16> to vector<64x16xbf16>
    %cst_84 = arith.constant dense<0.000000e+00> : vector<10x16xf32>
    %137 = tpu.matmul %25, %136, %cst_84 {dimension_numbers = #tpu.dot_dimension_numbers<[1], [0], [0], [1], [0, 0, 1, 1], [], []>} : vector<10x64xbf16>, vector<64x16xbf16>, vector<10x16xf32> -> vector<10x16xf32>
    %138 = arith.truncf %131 : vector<10x16xf32> to vector<10x16xbf16>
    %139 = arith.truncf %134 : vector<10x16xf32> to vector<10x16xbf16>
    %cst_85 = arith.constant dense<0.000000e+00> : vector<10x10xf32>
    %140 = tpu.matmul %138, %139, %cst_85 {dimension_numbers = #tpu.dot_dimension_numbers<[1], [1], [0], [0], [0, 0, 1, 0], [], []>} : vector<10x16xbf16>, vector<10x16xbf16>, vector<10x10xf32> -> vector<10x10xf32>
    %141 = arith.addf %140, %26 : vector<10x10xf32>
    %cst_86 = arith.constant dense<0xFF800000> : vector<10xf32>
    %142 = vector.multi_reduction <maximumf>, %141, %cst_86 [1] : vector<10x10xf32> to vector<10xf32>
    %143 = vector.shape_cast %142 : vector<10xf32> to vector<10x1xf32>
    %144 = vector.broadcast %143 : vector<10x1xf32> to vector<10x10xf32>
    %145 = arith.subf %141, %144 : vector<10x10xf32>
    %146 = math.exp %145 : vector<10x10xf32>
    %cst_87 = arith.constant dense<0.000000e+00> : vector<10xf32>
    %147 = vector.multi_reduction <add>, %146, %cst_87 [1] : vector<10x10xf32> to vector<10xf32>
    %148 = vector.shape_cast %147 : vector<10xf32> to vector<10x1xf32>
    %149 = tpu.reciprocal %148 {approx = true} : vector<10x1xf32> -> vector<10x1xf32>
    %150 = vector.broadcast %149 : vector<10x1xf32> to vector<10x10xf32>
    %151 = arith.mulf %146, %150 : vector<10x10xf32>
    %152 = arith.truncf %151 : vector<10x10xf32> to vector<10x10xbf16>
    %153 = arith.truncf %137 : vector<10x16xf32> to vector<10x16xbf16>
    %cst_88 = arith.constant dense<0.000000e+00> : vector<10x16xf32>
    %154 = tpu.matmul %152, %153, %cst_88 {dimension_numbers = #tpu.dot_dimension_numbers<[1], [0], [0], [1], [0, 0, 1, 1], [], []>} : vector<10x10xbf16>, vector<10x16xbf16>, vector<10x16xf32> -> vector<10x16xf32>
    %155 = arith.truncf %154 : vector<10x16xf32> to vector<10x16xbf16>
    %c3_89 = arith.constant 3 : index
    %c0_90 = arith.constant 0 : index
    %c0_91 = arith.constant 0 : index
    %156 = vector.load %arg7[%c3_89, %c0_90, %c0_91] : memref<4x16x64xbf16, #tpu.memory_space<vmem>>, vector<1x16x64xbf16>
    %157 = vector.shape_cast %156 : vector<1x16x64xbf16> to vector<16x64xbf16>
    %cst_92 = arith.constant dense<0.000000e+00> : vector<10x64xf32>
    %158 = tpu.matmul %155, %157, %cst_92 {dimension_numbers = #tpu.dot_dimension_numbers<[1], [0], [0], [1], [0, 0, 1, 1], [], []>} : vector<10x16xbf16>, vector<16x64xbf16>, vector<10x64xf32> -> vector<10x64xf32>
    %159 = arith.addf %126, %158 : vector<10x64xf32>
    %160 = arith.addf %0, %159 : vector<10x64xf32>
    %c0_93 = arith.constant 0 : index
    %c0_94 = arith.constant 0 : index
    %161 = vector.load %arg8[%c0_93, %c0_94] : memref<1x64xf32, #tpu.memory_space<vmem>>, vector<1x64xf32>
    %162 = vector.broadcast %161 : vector<1x64xf32> to vector<10x64xf32>
    %163 = arith.addf %160, %162 : vector<10x64xf32>
    %c0_95 = arith.constant 0 : index
    %c0_96 = arith.constant 0 : index
    %164 = vector.load %arg9[%c0_95, %c0_96] : memref<1x64xf32, #tpu.memory_space<vmem>>, vector<1x64xf32>
    %c0_97 = arith.constant 0 : index
    %c0_98 = arith.constant 0 : index
    %165 = vector.load %arg10[%c0_97, %c0_98] : memref<1x64xf32, #tpu.memory_space<vmem>>, vector<1x64xf32>
    %cst_99 = arith.constant dense<0.000000e+00> : vector<10xf32>
    %166 = vector.multi_reduction <add>, %163, %cst_99 [1] : vector<10x64xf32> to vector<10xf32>
    %167 = vector.shape_cast %166 : vector<10xf32> to vector<10x1xf32>
    %cst_100 = arith.constant 6.400000e+01 : f32
    %168 = vector.broadcast %cst_100 : f32 to vector<10x1xf32>
    %169 = arith.divf %167, %168 : vector<10x1xf32>
    %170 = vector.broadcast %169 : vector<10x1xf32> to vector<10x64xf32>
    %171 = arith.subf %163, %170 : vector<10x64xf32>
    %172 = arith.mulf %171, %171 : vector<10x64xf32>
    %cst_101 = arith.constant dense<0.000000e+00> : vector<10xf32>
    %173 = vector.multi_reduction <add>, %172, %cst_101 [1] : vector<10x64xf32> to vector<10xf32>
    %174 = vector.shape_cast %173 : vector<10xf32> to vector<10x1xf32>
    %cst_102 = arith.constant 6.400000e+01 : f32
    %175 = vector.broadcast %cst_102 : f32 to vector<10x1xf32>
    %176 = arith.divf %174, %175 : vector<10x1xf32>
    %177 = vector.broadcast %169 : vector<10x1xf32> to vector<10x64xf32>
    %178 = arith.subf %163, %177 : vector<10x64xf32>
    %cst_103 = arith.constant 9.99999974E-6 : f32
    %179 = vector.broadcast %cst_103 : f32 to vector<10x1xf32>
    %180 = arith.addf %176, %179 : vector<10x1xf32>
    %181 = math.rsqrt %180 : vector<10x1xf32>
    %182 = vector.broadcast %181 : vector<10x1xf32> to vector<10x64xf32>
    %183 = arith.mulf %178, %182 : vector<10x64xf32>
    %184 = vector.broadcast %164 : vector<1x64xf32> to vector<10x64xf32>
    %185 = arith.mulf %183, %184 : vector<10x64xf32>
    %186 = vector.broadcast %165 : vector<1x64xf32> to vector<10x64xf32>
    %187 = arith.addf %185, %186 : vector<10x64xf32>
    %188 = arith.truncf %187 : vector<10x64xf32> to vector<10x64xbf16>
    %c0_104 = arith.constant 0 : index
    %c0_105 = arith.constant 0 : index
    %189 = vector.load %arg11[%c0_104, %c0_105] : memref<8x64xbf16, #tpu.memory_space<vmem>>, vector<8x64xbf16>
    %cst_106 = arith.constant dense<0.000000e+00> : vector<8x10xf32>
    %190 = tpu.matmul %189, %188, %cst_106 {dimension_numbers = #tpu.dot_dimension_numbers<[1], [1], [0], [0], [0, 0, 1, 0], [], []>} : vector<8x64xbf16>, vector<10x64xbf16>, vector<8x10xf32> -> vector<8x10xf32>
    %191 = arith.negf %190 : vector<8x10xf32>
    %192 = math.exp %191 : vector<8x10xf32>
    %cst_107 = arith.constant 1.000000e+00 : f32
    %193 = vector.broadcast %cst_107 : f32 to vector<8x10xf32>
    %194 = arith.addf %193, %192 : vector<8x10xf32>
    %195 = arith.divf %193, %194 : vector<8x10xf32>
    %196 = tpu.iota {dimensions = array<i32: 1>} : vector<8x10xi32>
    %197 = tpu.iota {dimensions = array<i32: 1>} : vector<1x8x1xi32>
    %198 = tpu.iota {dimensions = array<i32: 1>} : vector<1x8xi32>
    %cst_108 = arith.constant 0.000000e+00 : f32
    %199 = vector.broadcast %cst_108 : f32 to vector<8x8x10xf32>
    %cst_109 = arith.constant 0.000000e+00 : f32
    %200 = vector.broadcast %cst_109 : f32 to vector<8x8xf32>
    %cst_110 = arith.constant dense<0xFF800000> : vector<8xf32>
    %201 = vector.multi_reduction <maximumf>, %195, %cst_110 [1] : vector<8x10xf32> to vector<8xf32>
    %202 = vector.shape_cast %201 : vector<8xf32> to vector<8x1xf32>
    %203 = vector.broadcast %202 : vector<8x1xf32> to vector<8x10xf32>
    %204 = arith.cmpf oeq, %195, %203 : vector<8x10xf32>
    %c10_i32 = arith.constant 10 : i32
    %205 = vector.broadcast %c10_i32 : i32 to vector<8x10xi32>
    %206 = arith.select %204, %196, %205 : vector<8x10xi1>, vector<8x10xi32>
    %cst_111 = arith.constant dense<2147483647> : vector<8xi32>
    %207 = vector.multi_reduction <minsi>, %206, %cst_111 [1] : vector<8x10xi32> to vector<8xi32>
    %208 = vector.shape_cast %207 : vector<8xi32> to vector<8x1xi32>
    %209 = vector.broadcast %208 : vector<8x1xi32> to vector<8x10xi32>
    %210 = arith.cmpi eq, %196, %209 : vector<8x10xi32>
    %cst_112 = arith.constant 1.000000e+00 : f32
    %cst_113 = arith.constant 0.000000e+00 : f32
    %211 = vector.broadcast %cst_112 : f32 to vector<8x10xf32>
    %212 = vector.broadcast %cst_113 : f32 to vector<8x10xf32>
    %213 = arith.select %210, %211, %212 : vector<8x10xi1>, vector<8x10xf32>
    %214 = vector.shape_cast %213 : vector<8x10xf32> to vector<8x1x10xf32>
    %c0_i32 = arith.constant 0 : i32
    %215 = vector.broadcast %c0_i32 : i32 to vector<1x8x1xi32>
    %216 = arith.cmpi eq, %197, %215 : vector<1x8x1xi32>
    %217 = arith.extui %216 : vector<1x8x1xi1> to vector<1x8x1xi32>
    %218 = arith.sitofp %217 : vector<1x8x1xi32> to vector<1x8x1xf32>
    %219 = vector.broadcast %214 : vector<8x1x10xf32> to vector<8x8x10xf32>
    %220 = vector.broadcast %218 : vector<1x8x1xf32> to vector<8x8x10xf32>
    %221 = arith.mulf %219, %220 : vector<8x8x10xf32>
    %222 = arith.addf %199, %221 : vector<8x8x10xf32>
    %c0_i32_114 = arith.constant 0 : i32
    %223 = vector.broadcast %c0_i32_114 : i32 to vector<1x8xi32>
    %224 = arith.cmpi eq, %198, %223 : vector<1x8xi32>
    %225 = arith.extui %224 : vector<1x8xi1> to vector<1x8xi32>
    %226 = arith.sitofp %225 : vector<1x8xi32> to vector<1x8xf32>
    %227 = vector.broadcast %202 : vector<8x1xf32> to vector<8x8xf32>
    %228 = vector.broadcast %226 : vector<1x8xf32> to vector<8x8xf32>
    %229 = arith.mulf %227, %228 : vector<8x8xf32>
    %230 = arith.addf %200, %229 : vector<8x8xf32>
    %cst_115 = arith.constant -1.000000e+30 : f32
    %231 = vector.broadcast %cst_115 : f32 to vector<8x10xf32>
    %232 = arith.select %210, %231, %195 : vector<8x10xi1>, vector<8x10xf32>
    %cst_116 = arith.constant dense<0xFF800000> : vector<8xf32>
    %233 = vector.multi_reduction <maximumf>, %232, %cst_116 [1] : vector<8x10xf32> to vector<8xf32>
    %234 = vector.shape_cast %233 : vector<8xf32> to vector<8x1xf32>
    %235 = vector.broadcast %234 : vector<8x1xf32> to vector<8x10xf32>
    %236 = arith.cmpf oeq, %232, %235 : vector<8x10xf32>
    %c10_i32_117 = arith.constant 10 : i32
    %237 = vector.broadcast %c10_i32_117 : i32 to vector<8x10xi32>
    %238 = arith.select %236, %196, %237 : vector<8x10xi1>, vector<8x10xi32>
    %cst_118 = arith.constant dense<2147483647> : vector<8xi32>
    %239 = vector.multi_reduction <minsi>, %238, %cst_118 [1] : vector<8x10xi32> to vector<8xi32>
    %240 = vector.shape_cast %239 : vector<8xi32> to vector<8x1xi32>
    %241 = vector.broadcast %240 : vector<8x1xi32> to vector<8x10xi32>
    %242 = arith.cmpi eq, %196, %241 : vector<8x10xi32>
    %cst_119 = arith.constant 1.000000e+00 : f32
    %cst_120 = arith.constant 0.000000e+00 : f32
    %243 = vector.broadcast %cst_119 : f32 to vector<8x10xf32>
    %244 = vector.broadcast %cst_120 : f32 to vector<8x10xf32>
    %245 = arith.select %242, %243, %244 : vector<8x10xi1>, vector<8x10xf32>
    %246 = vector.shape_cast %245 : vector<8x10xf32> to vector<8x1x10xf32>
    %c1_i32 = arith.constant 1 : i32
    %247 = vector.broadcast %c1_i32 : i32 to vector<1x8x1xi32>
    %248 = arith.cmpi eq, %197, %247 : vector<1x8x1xi32>
    %249 = arith.extui %248 : vector<1x8x1xi1> to vector<1x8x1xi32>
    %250 = arith.sitofp %249 : vector<1x8x1xi32> to vector<1x8x1xf32>
    %251 = vector.broadcast %246 : vector<8x1x10xf32> to vector<8x8x10xf32>
    %252 = vector.broadcast %250 : vector<1x8x1xf32> to vector<8x8x10xf32>
    %253 = arith.mulf %251, %252 : vector<8x8x10xf32>
    %254 = arith.addf %222, %253 : vector<8x8x10xf32>
    %c1_i32_121 = arith.constant 1 : i32
    %255 = vector.broadcast %c1_i32_121 : i32 to vector<1x8xi32>
    %256 = arith.cmpi eq, %198, %255 : vector<1x8xi32>
    %257 = arith.extui %256 : vector<1x8xi1> to vector<1x8xi32>
    %258 = arith.sitofp %257 : vector<1x8xi32> to vector<1x8xf32>
    %259 = vector.broadcast %234 : vector<8x1xf32> to vector<8x8xf32>
    %260 = vector.broadcast %258 : vector<1x8xf32> to vector<8x8xf32>
    %261 = arith.mulf %259, %260 : vector<8x8xf32>
    %262 = arith.addf %230, %261 : vector<8x8xf32>
    %cst_122 = arith.constant -1.000000e+30 : f32
    %263 = vector.broadcast %cst_122 : f32 to vector<8x10xf32>
    %264 = arith.select %242, %263, %232 : vector<8x10xi1>, vector<8x10xf32>
    %cst_123 = arith.constant dense<0xFF800000> : vector<8xf32>
    %265 = vector.multi_reduction <maximumf>, %264, %cst_123 [1] : vector<8x10xf32> to vector<8xf32>
    %266 = vector.shape_cast %265 : vector<8xf32> to vector<8x1xf32>
    %267 = vector.broadcast %266 : vector<8x1xf32> to vector<8x10xf32>
    %268 = arith.cmpf oeq, %264, %267 : vector<8x10xf32>
    %c10_i32_124 = arith.constant 10 : i32
    %269 = vector.broadcast %c10_i32_124 : i32 to vector<8x10xi32>
    %270 = arith.select %268, %196, %269 : vector<8x10xi1>, vector<8x10xi32>
    %cst_125 = arith.constant dense<2147483647> : vector<8xi32>
    %271 = vector.multi_reduction <minsi>, %270, %cst_125 [1] : vector<8x10xi32> to vector<8xi32>
    %272 = vector.shape_cast %271 : vector<8xi32> to vector<8x1xi32>
    %273 = vector.broadcast %272 : vector<8x1xi32> to vector<8x10xi32>
    %274 = arith.cmpi eq, %196, %273 : vector<8x10xi32>
    %cst_126 = arith.constant 1.000000e+00 : f32
    %cst_127 = arith.constant 0.000000e+00 : f32
    %275 = vector.broadcast %cst_126 : f32 to vector<8x10xf32>
    %276 = vector.broadcast %cst_127 : f32 to vector<8x10xf32>
    %277 = arith.select %274, %275, %276 : vector<8x10xi1>, vector<8x10xf32>
    %278 = vector.shape_cast %277 : vector<8x10xf32> to vector<8x1x10xf32>
    %c2_i32 = arith.constant 2 : i32
    %279 = vector.broadcast %c2_i32 : i32 to vector<1x8x1xi32>
    %280 = arith.cmpi eq, %197, %279 : vector<1x8x1xi32>
    %281 = arith.extui %280 : vector<1x8x1xi1> to vector<1x8x1xi32>
    %282 = arith.sitofp %281 : vector<1x8x1xi32> to vector<1x8x1xf32>
    %283 = vector.broadcast %278 : vector<8x1x10xf32> to vector<8x8x10xf32>
    %284 = vector.broadcast %282 : vector<1x8x1xf32> to vector<8x8x10xf32>
    %285 = arith.mulf %283, %284 : vector<8x8x10xf32>
    %286 = arith.addf %254, %285 : vector<8x8x10xf32>
    %c2_i32_128 = arith.constant 2 : i32
    %287 = vector.broadcast %c2_i32_128 : i32 to vector<1x8xi32>
    %288 = arith.cmpi eq, %198, %287 : vector<1x8xi32>
    %289 = arith.extui %288 : vector<1x8xi1> to vector<1x8xi32>
    %290 = arith.sitofp %289 : vector<1x8xi32> to vector<1x8xf32>
    %291 = vector.broadcast %266 : vector<8x1xf32> to vector<8x8xf32>
    %292 = vector.broadcast %290 : vector<1x8xf32> to vector<8x8xf32>
    %293 = arith.mulf %291, %292 : vector<8x8xf32>
    %294 = arith.addf %262, %293 : vector<8x8xf32>
    %295 = vector.shape_cast %286 : vector<8x8x10xf32> to vector<64x10xf32>
    %296 = arith.truncf %295 : vector<64x10xf32> to vector<64x10xbf16>
    %cst_129 = arith.constant dense<0.000000e+00> : vector<64x64xf32>
    %297 = tpu.matmul %296, %188, %cst_129 {dimension_numbers = #tpu.dot_dimension_numbers<[1], [0], [0], [1], [0, 0, 1, 1], [], []>} : vector<64x10xbf16>, vector<10x64xbf16>, vector<64x64xf32> -> vector<64x64xf32>
    %298 = vector.shape_cast %297 : vector<64x64xf32> to vector<8x8x64xf32>
    %299 = arith.truncf %298 : vector<8x8x64xf32> to vector<8x8x64xbf16>
    %c0_130 = arith.constant 0 : index
    %c0_131 = arith.constant 0 : index
    %c0_132 = arith.constant 0 : index
    %300 = vector.load %arg12[%c0_130, %c0_131, %c0_132] : memref<8x64x64xbf16, #tpu.memory_space<vmem>>, vector<8x64x64xbf16>
    %cst_133 = arith.constant dense<0.000000e+00> : vector<8x8x64xf32>
    %301 = tpu.matmul %299, %300, %cst_133 {dimension_numbers = #tpu.dot_dimension_numbers<[2], [1], [1], [2], [0, 0, 0, 1, 1, 2], [0], [0]>} : vector<8x8x64xbf16>, vector<8x64x64xbf16>, vector<8x8x64xf32> -> vector<8x8x64xf32>
    %c0_134 = arith.constant 0 : index
    %c0_135 = arith.constant 0 : index
    %c0_136 = arith.constant 0 : index
    %302 = vector.load %arg13[%c0_134, %c0_135, %c0_136] : memref<8x1x64xf32, #tpu.memory_space<vmem>>, vector<8x1x64xf32>
    %303 = vector.broadcast %302 : vector<8x1x64xf32> to vector<8x8x64xf32>
    %304 = arith.addf %301, %303 : vector<8x8x64xf32>
    %305 = arith.negf %304 : vector<8x8x64xf32>
    %306 = math.exp %305 : vector<8x8x64xf32>
    %cst_137 = arith.constant 1.000000e+00 : f32
    %307 = vector.broadcast %cst_137 : f32 to vector<8x8x64xf32>
    %308 = arith.addf %307, %306 : vector<8x8x64xf32>
    %309 = arith.divf %307, %308 : vector<8x8x64xf32>
    %310 = arith.mulf %304, %309 : vector<8x8x64xf32>
    %311 = arith.truncf %310 : vector<8x8x64xf32> to vector<8x8x64xbf16>
    %c0_138 = arith.constant 0 : index
    %c0_139 = arith.constant 0 : index
    %c0_140 = arith.constant 0 : index
    %312 = vector.load %arg14[%c0_138, %c0_139, %c0_140] : memref<8x64x64xbf16, #tpu.memory_space<vmem>>, vector<8x64x64xbf16>
    %cst_141 = arith.constant dense<0.000000e+00> : vector<8x8x64xf32>
    %313 = tpu.matmul %311, %312, %cst_141 {dimension_numbers = #tpu.dot_dimension_numbers<[2], [1], [1], [2], [0, 0, 0, 1, 1, 2], [0], [0]>} : vector<8x8x64xbf16>, vector<8x64x64xbf16>, vector<8x8x64xf32> -> vector<8x8x64xf32>
    %c0_142 = arith.constant 0 : index
    %c0_143 = arith.constant 0 : index
    %c0_144 = arith.constant 0 : index
    %314 = vector.load %arg15[%c0_142, %c0_143, %c0_144] : memref<8x1x64xf32, #tpu.memory_space<vmem>>, vector<8x1x64xf32>
    %315 = vector.broadcast %314 : vector<8x1x64xf32> to vector<8x8x64xf32>
    %316 = arith.addf %313, %315 : vector<8x8x64xf32>
    %317 = vector.shape_cast %294 : vector<8x8xf32> to vector<8x8x1xf32>
    %318 = vector.broadcast %317 : vector<8x8x1xf32> to vector<8x8x10xf32>
    %319 = arith.mulf %286, %318 : vector<8x8x10xf32>
    %320 = vector.shape_cast %319 : vector<8x8x10xf32> to vector<64x10xf32>
    %321 = arith.truncf %320 : vector<64x10xf32> to vector<64x10xbf16>
    %322 = vector.shape_cast %316 : vector<8x8x64xf32> to vector<64x64xf32>
    %323 = arith.truncf %322 : vector<64x64xf32> to vector<64x64xbf16>
    %cst_145 = arith.constant dense<0.000000e+00> : vector<10x64xf32>
    %324 = tpu.matmul %321, %323, %cst_145 {dimension_numbers = #tpu.dot_dimension_numbers<[0], [0], [1], [1], [0, 1, 1, 1], [], []>} : vector<64x10xbf16>, vector<64x64xbf16>, vector<10x64xf32> -> vector<10x64xf32>
    %c0_146 = arith.constant 0 : index
    %c0_147 = arith.constant 0 : index
    %325 = vector.load %arg16[%c0_146, %c0_147] : memref<64x64xbf16, #tpu.memory_space<vmem>>, vector<64x64xbf16>
    %cst_148 = arith.constant dense<0.000000e+00> : vector<10x64xf32>
    %326 = tpu.matmul %188, %325, %cst_148 {dimension_numbers = #tpu.dot_dimension_numbers<[1], [0], [0], [1], [0, 0, 1, 1], [], []>} : vector<10x64xbf16>, vector<64x64xbf16>, vector<10x64xf32> -> vector<10x64xf32>
    %c0_149 = arith.constant 0 : index
    %c0_150 = arith.constant 0 : index
    %327 = vector.load %arg17[%c0_149, %c0_150] : memref<1x64xf32, #tpu.memory_space<vmem>>, vector<1x64xf32>
    %328 = vector.broadcast %327 : vector<1x64xf32> to vector<10x64xf32>
    %329 = arith.addf %326, %328 : vector<10x64xf32>
    %cst_151 = arith.constant 5.000000e-01 : f32
    %330 = vector.broadcast %cst_151 : f32 to vector<10x64xf32>
    %331 = arith.mulf %330, %329 : vector<10x64xf32>
    %cst_152 = arith.constant 4.471500e-02 : f32
    %332 = vector.broadcast %cst_152 : f32 to vector<10x64xf32>
    %333 = arith.mulf %332, %329 : vector<10x64xf32>
    %334 = arith.mulf %333, %329 : vector<10x64xf32>
    %335 = arith.mulf %334, %329 : vector<10x64xf32>
    %336 = arith.addf %329, %335 : vector<10x64xf32>
    %cst_153 = arith.constant 0.797884583 : f32
    %337 = vector.broadcast %cst_153 : f32 to vector<10x64xf32>
    %338 = arith.mulf %337, %336 : vector<10x64xf32>
    %339 = math.tanh %338 : vector<10x64xf32>
    %cst_154 = arith.constant 1.000000e+00 : f32
    %340 = vector.broadcast %cst_154 : f32 to vector<10x64xf32>
    %341 = arith.addf %340, %339 : vector<10x64xf32>
    %342 = arith.mulf %331, %341 : vector<10x64xf32>
    %343 = arith.truncf %342 : vector<10x64xf32> to vector<10x64xbf16>
    %c0_155 = arith.constant 0 : index
    %c0_156 = arith.constant 0 : index
    %344 = vector.load %arg18[%c0_155, %c0_156] : memref<64x64xbf16, #tpu.memory_space<vmem>>, vector<64x64xbf16>
    %cst_157 = arith.constant dense<0.000000e+00> : vector<10x64xf32>
    %345 = tpu.matmul %343, %344, %cst_157 {dimension_numbers = #tpu.dot_dimension_numbers<[1], [0], [0], [1], [0, 0, 1, 1], [], []>} : vector<10x64xbf16>, vector<64x64xbf16>, vector<10x64xf32> -> vector<10x64xf32>
    %c0_158 = arith.constant 0 : index
    %c0_159 = arith.constant 0 : index
    %346 = vector.load %arg19[%c0_158, %c0_159] : memref<1x64xf32, #tpu.memory_space<vmem>>, vector<1x64xf32>
    %347 = vector.broadcast %346 : vector<1x64xf32> to vector<10x64xf32>
    %348 = arith.addf %345, %347 : vector<10x64xf32>
    %349 = arith.addf %163, %324 : vector<10x64xf32>
    %350 = arith.addf %349, %348 : vector<10x64xf32>
    %c0_160 = arith.constant 0 : index
    %c0_161 = arith.constant 0 : index
    %351 = vector.load %arg20[%c0_160, %c0_161] : memref<10x64xf32, #tpu.memory_space<vmem>>, vector<10x64xf32>
    tpu.vector_store %arg20[%c0_160, %c0_161], %350 {strides = array<i32>} : memref<10x64xf32, #tpu.memory_space<vmem>>, vector<10x64xf32>,
    return
  }
}

module attributes {stable_mosaic.version = 11 : i64} {
  func.func @_block_kernel(%arg0: memref<10x64xf32, #tpu.memory_space<vmem>>, %arg1: memref<10x10xf32, #tpu.memory_space<vmem>>, %arg2: memref<1x64xf32, #tpu.memory_space<vmem>>, %arg3: memref<1x64xf32, #tpu.memory_space<vmem>>, %arg4: memref<4x64x16xbf16, #tpu.memory_space<vmem>>, %arg5: memref<4x64x16xbf16, #tpu.memory_space<vmem>>, %arg6: memref<4x64x16xbf16, #tpu.memory_space<vmem>>, %arg7: memref<4x16x64xbf16, #tpu.memory_space<vmem>>, %arg8: memref<1x64xf32, #tpu.memory_space<vmem>>, %arg9: memref<1x64xf32, #tpu.memory_space<vmem>>, %arg10: memref<1x64xf32, #tpu.memory_space<vmem>>, %arg11: memref<8x64xbf16, #tpu.memory_space<vmem>>, %arg12: memref<8x64x64xbf16, #tpu.memory_space<vmem>>, %arg13: memref<8x1x64xf32, #tpu.memory_space<vmem>>, %arg14: memref<8x64x64xbf16, #tpu.memory_space<vmem>>, %arg15: memref<8x1x64xf32, #tpu.memory_space<vmem>>, %arg16: memref<64x64xbf16, #tpu.memory_space<vmem>>, %arg17: memref<1x64xf32, #tpu.memory_space<vmem>>, %arg18: memref<64x64xbf16, #tpu.memory_space<vmem>>, %arg19: memref<1x64xf32, #tpu.memory_space<vmem>>, %arg20: memref<10x64xf32, #tpu.memory_space<vmem>>) attributes {dimension_semantics = [], scalar_prefetch = 0 : i64, scratch_operands = 0 : i64, tpu.core_type = #tpu.core_type<tc>} {
    %c0 = arith.constant 0 : index
    %c0_0 = arith.constant 0 : index
    %0 = vector.load %arg0[%c0, %c0_0] : memref<10x64xf32, #tpu.memory_space<vmem>>, vector<10x64xf32>
    %c0_1 = arith.constant 0 : index
    %c0_2 = arith.constant 0 : index
    %1 = vector.load %arg2[%c0_1, %c0_2] : memref<1x64xf32, #tpu.memory_space<vmem>>, vector<1x64xf32>
    %c0_3 = arith.constant 0 : index
    %c0_4 = arith.constant 0 : index
    %2 = vector.load %arg3[%c0_3, %c0_4] : memref<1x64xf32, #tpu.memory_space<vmem>>, vector<1x64xf32>
    %cst = arith.constant dense<0.000000e+00> : vector<10xf32>
    %3 = vector.multi_reduction <add>, %0, %cst [1] : vector<10x64xf32> to vector<10xf32>
    %4 = vector.shape_cast %3 : vector<10xf32> to vector<10x1xf32>
    %cst_5 = arith.constant 6.400000e+01 : f32
    %5 = vector.broadcast %cst_5 : f32 to vector<10x1xf32>
    %6 = arith.divf %4, %5 : vector<10x1xf32>
    %7 = vector.broadcast %6 : vector<10x1xf32> to vector<10x64xf32>
    %8 = arith.subf %0, %7 : vector<10x64xf32>
    %9 = arith.mulf %8, %8 : vector<10x64xf32>
    %cst_6 = arith.constant dense<0.000000e+00> : vector<10xf32>
    %10 = vector.multi_reduction <add>, %9, %cst_6 [1] : vector<10x64xf32> to vector<10xf32>
    %11 = vector.shape_cast %10 : vector<10xf32> to vector<10x1xf32>
    %cst_7 = arith.constant 6.400000e+01 : f32
    %12 = vector.broadcast %cst_7 : f32 to vector<10x1xf32>
    %13 = arith.divf %11, %12 : vector<10x1xf32>
    %14 = vector.broadcast %6 : vector<10x1xf32> to vector<10x64xf32>
    %15 = arith.subf %0, %14 : vector<10x64xf32>
    %cst_8 = arith.constant 9.99999974E-6 : f32
    %16 = vector.broadcast %cst_8 : f32 to vector<10x1xf32>
    %17 = arith.addf %13, %16 : vector<10x1xf32>
    %18 = math.rsqrt %17 : vector<10x1xf32>
    %19 = vector.broadcast %18 : vector<10x1xf32> to vector<10x64xf32>
    %20 = arith.mulf %15, %19 : vector<10x64xf32>
    %21 = vector.broadcast %1 : vector<1x64xf32> to vector<10x64xf32>
    %22 = arith.mulf %20, %21 : vector<10x64xf32>
    %23 = vector.broadcast %2 : vector<1x64xf32> to vector<10x64xf32>
    %24 = arith.addf %22, %23 : vector<10x64xf32>
    %25 = arith.truncf %24 : vector<10x64xf32> to vector<10x64xbf16>
    %c0_9 = arith.constant 0 : index
    %c0_10 = arith.constant 0 : index
    %26 = vector.load %arg1[%c0_9, %c0_10] : memref<10x10xf32, #tpu.memory_space<vmem>>, vector<10x10xf32>
    %cst_11 = arith.constant 0.000000e+00 : f32
    %27 = vector.broadcast %cst_11 : f32 to vector<10x64xf32>
    %c0_12 = arith.constant 0 : index
    %c0_13 = arith.constant 0 : index
    %c0_14 = arith.constant 0 : index
    %28 = vector.load %arg4[%c0_12, %c0_13, %c0_14] : memref<4x64x16xbf16, #tpu.memory_space<vmem>>, vector<1x64x16xbf16>
    %29 = vector.shape_cast %28 : vector<1x64x16xbf16> to vector<64x16xbf16>
    %cst_15 = arith.constant dense<0.000000e+00> : vector<10x16xf32>
    %30 = tpu.matmul %25, %29, %cst_15 {dimension_numbers = #tpu.dot_dimension_numbers<[1], [0], [0], [1], [0, 0, 1, 1], [], []>} : vector<10x64xbf16>, vector<64x16xbf16>, vector<10x16xf32> -> vector<10x16xf32>
    %cst_16 = arith.constant 2.500000e-01 : f32
    %31 = vector.broadcast %cst_16 : f32 to vector<10x16xf32>
    %32 = arith.mulf %30, %31 : vector<10x16xf32>
    %c0_17 = arith.constant 0 : index
    %c0_18 = arith.constant 0 : index
    %c0_19 = arith.constant 0 : index
    %33 = vector.load %arg5[%c0_17, %c0_18, %c0_19] : memref<4x64x16xbf16, #tpu.memory_space<vmem>>, vector<1x64x16xbf16>
    %34 = vector.shape_cast %33 : vector<1x64x16xbf16> to vector<64x16xbf16>
    %cst_20 = arith.constant dense<0.000000e+00> : vector<10x16xf32>
    %35 = tpu.matmul %25, %34, %cst_20 {dimension_numbers = #tpu.dot_dimension_numbers<[1], [0], [0], [1], [0, 0, 1, 1], [], []>} : vector<10x64xbf16>, vector<64x16xbf16>, vector<10x16xf32> -> vector<10x16xf32>
    %c0_21 = arith.constant 0 : index
    %c0_22 = arith.constant 0 : index
    %c0_23 = arith.constant 0 : index
    %36 = vector.load %arg6[%c0_21, %c0_22, %c0_23] : memref<4x64x16xbf16, #tpu.memory_space<vmem>>, vector<1x64x16xbf16>
    %37 = vector.shape_cast %36 : vector<1x64x16xbf16> to vector<64x16xbf16>
    %cst_24 = arith.constant dense<0.000000e+00> : vector<10x16xf32>
    %38 = tpu.matmul %25, %37, %cst_24 {dimension_numbers = #tpu.dot_dimension_numbers<[1], [0], [0], [1], [0, 0, 1, 1], [], []>} : vector<10x64xbf16>, vector<64x16xbf16>, vector<10x16xf32> -> vector<10x16xf32>
    %39 = arith.truncf %32 : vector<10x16xf32> to vector<10x16xbf16>
    %40 = arith.truncf %35 : vector<10x16xf32> to vector<10x16xbf16>
    %cst_25 = arith.constant dense<0.000000e+00> : vector<10x10xf32>
    %41 = tpu.matmul %39, %40, %cst_25 {dimension_numbers = #tpu.dot_dimension_numbers<[1], [1], [0], [0], [0, 0, 1, 0], [], []>} : vector<10x16xbf16>, vector<10x16xbf16>, vector<10x10xf32> -> vector<10x10xf32>
    %42 = arith.addf %41, %26 : vector<10x10xf32>
    %cst_26 = arith.constant dense<0xFF800000> : vector<10xf32>
    %43 = vector.multi_reduction <maximumf>, %42, %cst_26 [1] : vector<10x10xf32> to vector<10xf32>
    %44 = vector.shape_cast %43 : vector<10xf32> to vector<10x1xf32>
    %45 = vector.broadcast %44 : vector<10x1xf32> to vector<10x10xf32>
    %46 = arith.subf %42, %45 : vector<10x10xf32>
    %47 = math.exp %46 : vector<10x10xf32>
    %cst_27 = arith.constant dense<0.000000e+00> : vector<10xf32>
    %48 = vector.multi_reduction <add>, %47, %cst_27 [1] : vector<10x10xf32> to vector<10xf32>
    %49 = vector.shape_cast %48 : vector<10xf32> to vector<10x1xf32>
    %50 = tpu.reciprocal %49 {approx = true} : vector<10x1xf32> -> vector<10x1xf32>
    %51 = vector.broadcast %50 : vector<10x1xf32> to vector<10x10xf32>
    %52 = arith.mulf %47, %51 : vector<10x10xf32>
    %53 = arith.truncf %52 : vector<10x10xf32> to vector<10x10xbf16>
    %54 = arith.truncf %38 : vector<10x16xf32> to vector<10x16xbf16>
    %cst_28 = arith.constant dense<0.000000e+00> : vector<10x16xf32>
    %55 = tpu.matmul %53, %54, %cst_28 {dimension_numbers = #tpu.dot_dimension_numbers<[1], [0], [0], [1], [0, 0, 1, 1], [], []>} : vector<10x10xbf16>, vector<10x16xbf16>, vector<10x16xf32> -> vector<10x16xf32>
    %56 = arith.truncf %55 : vector<10x16xf32> to vector<10x16xbf16>
    %c0_29 = arith.constant 0 : index
    %c0_30 = arith.constant 0 : index
    %c0_31 = arith.constant 0 : index
    %57 = vector.load %arg7[%c0_29, %c0_30, %c0_31] : memref<4x16x64xbf16, #tpu.memory_space<vmem>>, vector<1x16x64xbf16>
    %58 = vector.shape_cast %57 : vector<1x16x64xbf16> to vector<16x64xbf16>
    %cst_32 = arith.constant dense<0.000000e+00> : vector<10x64xf32>
    %59 = tpu.matmul %56, %58, %cst_32 {dimension_numbers = #tpu.dot_dimension_numbers<[1], [0], [0], [1], [0, 0, 1, 1], [], []>} : vector<10x16xbf16>, vector<16x64xbf16>, vector<10x64xf32> -> vector<10x64xf32>
    %60 = arith.addf %27, %59 : vector<10x64xf32>
    %c1 = arith.constant 1 : index
    %c0_33 = arith.constant 0 : index
    %c0_34 = arith.constant 0 : index
    %61 = vector.load %arg4[%c1, %c0_33, %c0_34] : memref<4x64x16xbf16, #tpu.memory_space<vmem>>, vector<1x64x16xbf16>
    %62 = vector.shape_cast %61 : vector<1x64x16xbf16> to vector<64x16xbf16>
    %cst_35 = arith.constant dense<0.000000e+00> : vector<10x16xf32>
    %63 = tpu.matmul %25, %62, %cst_35 {dimension_numbers = #tpu.dot_dimension_numbers<[1], [0], [0], [1], [0, 0, 1, 1], [], []>} : vector<10x64xbf16>, vector<64x16xbf16>, vector<10x16xf32> -> vector<10x16xf32>
    %cst_36 = arith.constant 2.500000e-01 : f32
    %64 = vector.broadcast %cst_36 : f32 to vector<10x16xf32>
    %65 = arith.mulf %63, %64 : vector<10x16xf32>
    %c1_37 = arith.constant 1 : index
    %c0_38 = arith.constant 0 : index
    %c0_39 = arith.constant 0 : index
    %66 = vector.load %arg5[%c1_37, %c0_38, %c0_39] : memref<4x64x16xbf16, #tpu.memory_space<vmem>>, vector<1x64x16xbf16>
    %67 = vector.shape_cast %66 : vector<1x64x16xbf16> to vector<64x16xbf16>
    %cst_40 = arith.constant dense<0.000000e+00> : vector<10x16xf32>
    %68 = tpu.matmul %25, %67, %cst_40 {dimension_numbers = #tpu.dot_dimension_numbers<[1], [0], [0], [1], [0, 0, 1, 1], [], []>} : vector<10x64xbf16>, vector<64x16xbf16>, vector<10x16xf32> -> vector<10x16xf32>
    %c1_41 = arith.constant 1 : index
    %c0_42 = arith.constant 0 : index
    %c0_43 = arith.constant 0 : index
    %69 = vector.load %arg6[%c1_41, %c0_42, %c0_43] : memref<4x64x16xbf16, #tpu.memory_space<vmem>>, vector<1x64x16xbf16>
    %70 = vector.shape_cast %69 : vector<1x64x16xbf16> to vector<64x16xbf16>
    %cst_44 = arith.constant dense<0.000000e+00> : vector<10x16xf32>
    %71 = tpu.matmul %25, %70, %cst_44 {dimension_numbers = #tpu.dot_dimension_numbers<[1], [0], [0], [1], [0, 0, 1, 1], [], []>} : vector<10x64xbf16>, vector<64x16xbf16>, vector<10x16xf32> -> vector<10x16xf32>
    %72 = arith.truncf %65 : vector<10x16xf32> to vector<10x16xbf16>
    %73 = arith.truncf %68 : vector<10x16xf32> to vector<10x16xbf16>
    %cst_45 = arith.constant dense<0.000000e+00> : vector<10x10xf32>
    %74 = tpu.matmul %72, %73, %cst_45 {dimension_numbers = #tpu.dot_dimension_numbers<[1], [1], [0], [0], [0, 0, 1, 0], [], []>} : vector<10x16xbf16>, vector<10x16xbf16>, vector<10x10xf32> -> vector<10x10xf32>
    %75 = arith.addf %74, %26 : vector<10x10xf32>
    %cst_46 = arith.constant dense<0xFF800000> : vector<10xf32>
    %76 = vector.multi_reduction <maximumf>, %75, %cst_46 [1] : vector<10x10xf32> to vector<10xf32>
    %77 = vector.shape_cast %76 : vector<10xf32> to vector<10x1xf32>
    %78 = vector.broadcast %77 : vector<10x1xf32> to vector<10x10xf32>
    %79 = arith.subf %75, %78 : vector<10x10xf32>
    %80 = math.exp %79 : vector<10x10xf32>
    %cst_47 = arith.constant dense<0.000000e+00> : vector<10xf32>
    %81 = vector.multi_reduction <add>, %80, %cst_47 [1] : vector<10x10xf32> to vector<10xf32>
    %82 = vector.shape_cast %81 : vector<10xf32> to vector<10x1xf32>
    %83 = tpu.reciprocal %82 {approx = true} : vector<10x1xf32> -> vector<10x1xf32>
    %84 = vector.broadcast %83 : vector<10x1xf32> to vector<10x10xf32>
    %85 = arith.mulf %80, %84 : vector<10x10xf32>
    %86 = arith.truncf %85 : vector<10x10xf32> to vector<10x10xbf16>
    %87 = arith.truncf %71 : vector<10x16xf32> to vector<10x16xbf16>
    %cst_48 = arith.constant dense<0.000000e+00> : vector<10x16xf32>
    %88 = tpu.matmul %86, %87, %cst_48 {dimension_numbers = #tpu.dot_dimension_numbers<[1], [0], [0], [1], [0, 0, 1, 1], [], []>} : vector<10x10xbf16>, vector<10x16xbf16>, vector<10x16xf32> -> vector<10x16xf32>
    %89 = arith.truncf %88 : vector<10x16xf32> to vector<10x16xbf16>
    %c1_49 = arith.constant 1 : index
    %c0_50 = arith.constant 0 : index
    %c0_51 = arith.constant 0 : index
    %90 = vector.load %arg7[%c1_49, %c0_50, %c0_51] : memref<4x16x64xbf16, #tpu.memory_space<vmem>>, vector<1x16x64xbf16>
    %91 = vector.shape_cast %90 : vector<1x16x64xbf16> to vector<16x64xbf16>
    %cst_52 = arith.constant dense<0.000000e+00> : vector<10x64xf32>
    %92 = tpu.matmul %89, %91, %cst_52 {dimension_numbers = #tpu.dot_dimension_numbers<[1], [0], [0], [1], [0, 0, 1, 1], [], []>} : vector<10x16xbf16>, vector<16x64xbf16>, vector<10x64xf32> -> vector<10x64xf32>
    %93 = arith.addf %60, %92 : vector<10x64xf32>
    %c2 = arith.constant 2 : index
    %c0_53 = arith.constant 0 : index
    %c0_54 = arith.constant 0 : index
    %94 = vector.load %arg4[%c2, %c0_53, %c0_54] : memref<4x64x16xbf16, #tpu.memory_space<vmem>>, vector<1x64x16xbf16>
    %95 = vector.shape_cast %94 : vector<1x64x16xbf16> to vector<64x16xbf16>
    %cst_55 = arith.constant dense<0.000000e+00> : vector<10x16xf32>
    %96 = tpu.matmul %25, %95, %cst_55 {dimension_numbers = #tpu.dot_dimension_numbers<[1], [0], [0], [1], [0, 0, 1, 1], [], []>} : vector<10x64xbf16>, vector<64x16xbf16>, vector<10x16xf32> -> vector<10x16xf32>
    %cst_56 = arith.constant 2.500000e-01 : f32
    %97 = vector.broadcast %cst_56 : f32 to vector<10x16xf32>
    %98 = arith.mulf %96, %97 : vector<10x16xf32>
    %c2_57 = arith.constant 2 : index
    %c0_58 = arith.constant 0 : index
    %c0_59 = arith.constant 0 : index
    %99 = vector.load %arg5[%c2_57, %c0_58, %c0_59] : memref<4x64x16xbf16, #tpu.memory_space<vmem>>, vector<1x64x16xbf16>
    %100 = vector.shape_cast %99 : vector<1x64x16xbf16> to vector<64x16xbf16>
    %cst_60 = arith.constant dense<0.000000e+00> : vector<10x16xf32>
    %101 = tpu.matmul %25, %100, %cst_60 {dimension_numbers = #tpu.dot_dimension_numbers<[1], [0], [0], [1], [0, 0, 1, 1], [], []>} : vector<10x64xbf16>, vector<64x16xbf16>, vector<10x16xf32> -> vector<10x16xf32>
    %c2_61 = arith.constant 2 : index
    %c0_62 = arith.constant 0 : index
    %c0_63 = arith.constant 0 : index
    %102 = vector.load %arg6[%c2_61, %c0_62, %c0_63] : memref<4x64x16xbf16, #tpu.memory_space<vmem>>, vector<1x64x16xbf16>
    %103 = vector.shape_cast %102 : vector<1x64x16xbf16> to vector<64x16xbf16>
    %cst_64 = arith.constant dense<0.000000e+00> : vector<10x16xf32>
    %104 = tpu.matmul %25, %103, %cst_64 {dimension_numbers = #tpu.dot_dimension_numbers<[1], [0], [0], [1], [0, 0, 1, 1], [], []>} : vector<10x64xbf16>, vector<64x16xbf16>, vector<10x16xf32> -> vector<10x16xf32>
    %105 = arith.truncf %98 : vector<10x16xf32> to vector<10x16xbf16>
    %106 = arith.truncf %101 : vector<10x16xf32> to vector<10x16xbf16>
    %cst_65 = arith.constant dense<0.000000e+00> : vector<10x10xf32>
    %107 = tpu.matmul %105, %106, %cst_65 {dimension_numbers = #tpu.dot_dimension_numbers<[1], [1], [0], [0], [0, 0, 1, 0], [], []>} : vector<10x16xbf16>, vector<10x16xbf16>, vector<10x10xf32> -> vector<10x10xf32>
    %108 = arith.addf %107, %26 : vector<10x10xf32>
    %cst_66 = arith.constant dense<0xFF800000> : vector<10xf32>
    %109 = vector.multi_reduction <maximumf>, %108, %cst_66 [1] : vector<10x10xf32> to vector<10xf32>
    %110 = vector.shape_cast %109 : vector<10xf32> to vector<10x1xf32>
    %111 = vector.broadcast %110 : vector<10x1xf32> to vector<10x10xf32>
    %112 = arith.subf %108, %111 : vector<10x10xf32>
    %113 = math.exp %112 : vector<10x10xf32>
    %cst_67 = arith.constant dense<0.000000e+00> : vector<10xf32>
    %114 = vector.multi_reduction <add>, %113, %cst_67 [1] : vector<10x10xf32> to vector<10xf32>
    %115 = vector.shape_cast %114 : vector<10xf32> to vector<10x1xf32>
    %116 = tpu.reciprocal %115 {approx = true} : vector<10x1xf32> -> vector<10x1xf32>
    %117 = vector.broadcast %116 : vector<10x1xf32> to vector<10x10xf32>
    %118 = arith.mulf %113, %117 : vector<10x10xf32>
    %119 = arith.truncf %118 : vector<10x10xf32> to vector<10x10xbf16>
    %120 = arith.truncf %104 : vector<10x16xf32> to vector<10x16xbf16>
    %cst_68 = arith.constant dense<0.000000e+00> : vector<10x16xf32>
    %121 = tpu.matmul %119, %120, %cst_68 {dimension_numbers = #tpu.dot_dimension_numbers<[1], [0], [0], [1], [0, 0, 1, 1], [], []>} : vector<10x10xbf16>, vector<10x16xbf16>, vector<10x16xf32> -> vector<10x16xf32>
    %122 = arith.truncf %121 : vector<10x16xf32> to vector<10x16xbf16>
    %c2_69 = arith.constant 2 : index
    %c0_70 = arith.constant 0 : index
    %c0_71 = arith.constant 0 : index
    %123 = vector.load %arg7[%c2_69, %c0_70, %c0_71] : memref<4x16x64xbf16, #tpu.memory_space<vmem>>, vector<1x16x64xbf16>
    %124 = vector.shape_cast %123 : vector<1x16x64xbf16> to vector<16x64xbf16>
    %cst_72 = arith.constant dense<0.000000e+00> : vector<10x64xf32>
    %125 = tpu.matmul %122, %124, %cst_72 {dimension_numbers = #tpu.dot_dimension_numbers<[1], [0], [0], [1], [0, 0, 1, 1], [], []>} : vector<10x16xbf16>, vector<16x64xbf16>, vector<10x64xf32> -> vector<10x64xf32>
    %126 = arith.addf %93, %125 : vector<10x64xf32>
    %c3 = arith.constant 3 : index
    %c0_73 = arith.constant 0 : index
    %c0_74 = arith.constant 0 : index
    %127 = vector.load %arg4[%c3, %c0_73, %c0_74] : memref<4x64x16xbf16, #tpu.memory_space<vmem>>, vector<1x64x16xbf16>
    %128 = vector.shape_cast %127 : vector<1x64x16xbf16> to vector<64x16xbf16>
    %cst_75 = arith.constant dense<0.000000e+00> : vector<10x16xf32>
    %129 = tpu.matmul %25, %128, %cst_75 {dimension_numbers = #tpu.dot_dimension_numbers<[1], [0], [0], [1], [0, 0, 1, 1], [], []>} : vector<10x64xbf16>, vector<64x16xbf16>, vector<10x16xf32> -> vector<10x16xf32>
    %cst_76 = arith.constant 2.500000e-01 : f32
    %130 = vector.broadcast %cst_76 : f32 to vector<10x16xf32>
    %131 = arith.mulf %129, %130 : vector<10x16xf32>
    %c3_77 = arith.constant 3 : index
    %c0_78 = arith.constant 0 : index
    %c0_79 = arith.constant 0 : index
    %132 = vector.load %arg5[%c3_77, %c0_78, %c0_79] : memref<4x64x16xbf16, #tpu.memory_space<vmem>>, vector<1x64x16xbf16>
    %133 = vector.shape_cast %132 : vector<1x64x16xbf16> to vector<64x16xbf16>
    %cst_80 = arith.constant dense<0.000000e+00> : vector<10x16xf32>
    %134 = tpu.matmul %25, %133, %cst_80 {dimension_numbers = #tpu.dot_dimension_numbers<[1], [0], [0], [1], [0, 0, 1, 1], [], []>} : vector<10x64xbf16>, vector<64x16xbf16>, vector<10x16xf32> -> vector<10x16xf32>
    %c3_81 = arith.constant 3 : index
    %c0_82 = arith.constant 0 : index
    %c0_83 = arith.constant 0 : index
    %135 = vector.load %arg6[%c3_81, %c0_82, %c0_83] : memref<4x64x16xbf16, #tpu.memory_space<vmem>>, vector<1x64x16xbf16>
    %136 = vector.shape_cast %135 : vector<1x64x16xbf16> to vector<64x16xbf16>
    %cst_84 = arith.constant dense<0.000000e+00> : vector<10x16xf32>
    %137 = tpu.matmul %25, %136, %cst_84 {dimension_numbers = #tpu.dot_dimension_numbers<[1], [0], [0], [1], [0, 0, 1, 1], [], []>} : vector<10x64xbf16>, vector<64x16xbf16>, vector<10x16xf32> -> vector<10x16xf32>
    %138 = arith.truncf %131 : vector<10x16xf32> to vector<10x16xbf16>
    %139 = arith.truncf %134 : vector<10x16xf32> to vector<10x16xbf16>
    %cst_85 = arith.constant dense<0.000000e+00> : vector<10x10xf32>
    %140 = tpu.matmul %138, %139, %cst_85 {dimension_numbers = #tpu.dot_dimension_numbers<[1], [1], [0], [0], [0, 0, 1, 0], [], []>} : vector<10x16xbf16>, vector<10x16xbf16>, vector<10x10xf32> -> vector<10x10xf32>
    %141 = arith.addf %140, %26 : vector<10x10xf32>
    %cst_86 = arith.constant dense<0xFF800000> : vector<10xf32>
    %142 = vector.multi_reduction <maximumf>, %141, %cst_86 [1] : vector<10x10xf32> to vector<10xf32>
    %143 = vector.shape_cast %142 : vector<10xf32> to vector<10x1xf32>
    %144 = vector.broadcast %143 : vector<10x1xf32> to vector<10x10xf32>
    %145 = arith.subf %141, %144 : vector<10x10xf32>
    %146 = math.exp %145 : vector<10x10xf32>
    %cst_87 = arith.constant dense<0.000000e+00> : vector<10xf32>
    %147 = vector.multi_reduction <add>, %146, %cst_87 [1] : vector<10x10xf32> to vector<10xf32>
    %148 = vector.shape_cast %147 : vector<10xf32> to vector<10x1xf32>
    %149 = tpu.reciprocal %148 {approx = true} : vector<10x1xf32> -> vector<10x1xf32>
    %150 = vector.broadcast %149 : vector<10x1xf32> to vector<10x10xf32>
    %151 = arith.mulf %146, %150 : vector<10x10xf32>
    %152 = arith.truncf %151 : vector<10x10xf32> to vector<10x10xbf16>
    %153 = arith.truncf %137 : vector<10x16xf32> to vector<10x16xbf16>
    %cst_88 = arith.constant dense<0.000000e+00> : vector<10x16xf32>
    %154 = tpu.matmul %152, %153, %cst_88 {dimension_numbers = #tpu.dot_dimension_numbers<[1], [0], [0], [1], [0, 0, 1, 1], [], []>} : vector<10x10xbf16>, vector<10x16xbf16>, vector<10x16xf32> -> vector<10x16xf32>
    %155 = arith.truncf %154 : vector<10x16xf32> to vector<10x16xbf16>
    %c3_89 = arith.constant 3 : index
    %c0_90 = arith.constant 0 : index
    %c0_91 = arith.constant 0 : index
    %156 = vector.load %arg7[%c3_89, %c0_90, %c0_91] : memref<4x16x64xbf16, #tpu.memory_space<vmem>>, vector<1x16x64xbf16>
    %157 = vector.shape_cast %156 : vector<1x16x64xbf16> to vector<16x64xbf16>
    %cst_92 = arith.constant dense<0.000000e+00> : vector<10x64xf32>
    %158 = tpu.matmul %155, %157, %cst_92 {dimension_numbers = #tpu.dot_dimension_numbers<[1], [0], [0], [1], [0, 0, 1, 1], [], []>} : vector<10x16xbf16>, vector<16x64xbf16>, vector<10x64xf32> -> vector<10x64xf32>
    %159 = arith.addf %126, %158 : vector<10x64xf32>
    %160 = arith.addf %0, %159 : vector<10x64xf32>
    %c0_93 = arith.constant 0 : index
    %c0_94 = arith.constant 0 : index
    %161 = vector.load %arg8[%c0_93, %c0_94] : memref<1x64xf32, #tpu.memory_space<vmem>>, vector<1x64xf32>
    %162 = vector.broadcast %161 : vector<1x64xf32> to vector<10x64xf32>
    %163 = arith.addf %160, %162 : vector<10x64xf32>
    %c0_95 = arith.constant 0 : index
    %c0_96 = arith.constant 0 : index
    %164 = vector.load %arg9[%c0_95, %c0_96] : memref<1x64xf32, #tpu.memory_space<vmem>>, vector<1x64xf32>
    %c0_97 = arith.constant 0 : index
    %c0_98 = arith.constant 0 : index
    %165 = vector.load %arg10[%c0_97, %c0_98] : memref<1x64xf32, #tpu.memory_space<vmem>>, vector<1x64xf32>
    %cst_99 = arith.constant dense<0.000000e+00> : vector<10xf32>
    %166 = vector.multi_reduction <add>, %163, %cst_99 [1] : vector<10x64xf32> to vector<10xf32>
    %167 = vector.shape_cast %166 : vector<10xf32> to vector<10x1xf32>
    %cst_100 = arith.constant 6.400000e+01 : f32
    %168 = vector.broadcast %cst_100 : f32 to vector<10x1xf32>
    %169 = arith.divf %167, %168 : vector<10x1xf32>
    %170 = vector.broadcast %169 : vector<10x1xf32> to vector<10x64xf32>
    %171 = arith.subf %163, %170 : vector<10x64xf32>
    %172 = arith.mulf %171, %171 : vector<10x64xf32>
    %cst_101 = arith.constant dense<0.000000e+00> : vector<10xf32>
    %173 = vector.multi_reduction <add>, %172, %cst_101 [1] : vector<10x64xf32> to vector<10xf32>
    %174 = vector.shape_cast %173 : vector<10xf32> to vector<10x1xf32>
    %cst_102 = arith.constant 6.400000e+01 : f32
    %175 = vector.broadcast %cst_102 : f32 to vector<10x1xf32>
    %176 = arith.divf %174, %175 : vector<10x1xf32>
    %177 = vector.broadcast %169 : vector<10x1xf32> to vector<10x64xf32>
    %178 = arith.subf %163, %177 : vector<10x64xf32>
    %cst_103 = arith.constant 9.99999974E-6 : f32
    %179 = vector.broadcast %cst_103 : f32 to vector<10x1xf32>
    %180 = arith.addf %176, %179 : vector<10x1xf32>
    %181 = math.rsqrt %180 : vector<10x1xf32>
    %182 = vector.broadcast %181 : vector<10x1xf32> to vector<10x64xf32>
    %183 = arith.mulf %178, %182 : vector<10x64xf32>
    %184 = vector.broadcast %164 : vector<1x64xf32> to vector<10x64xf32>
    %185 = arith.mulf %183, %184 : vector<10x64xf32>
    %186 = vector.broadcast %165 : vector<1x64xf32> to vector<10x64xf32>
    %187 = arith.addf %185, %186 : vector<10x64xf32>
    %188 = arith.truncf %187 : vector<10x64xf32> to vector<10x64xbf16>
    %c0_104 = arith.constant 0 : index
    %c0_105 = arith.constant 0 : index
    %189 = vector.load %arg11[%c0_104, %c0_105] : memref<8x64xbf16, #tpu.memory_space<vmem>>, vector<8x64xbf16>
    %cst_106 = arith.constant dense<0.000000e+00> : vector<8x10xf32>
    %190 = tpu.matmul %189, %188, %cst_106 {dimension_numbers = #tpu.dot_dimension_numbers<[1], [1], [0], [0], [0, 0, 1, 0], [], []>} : vector<8x64xbf16>, vector<10x64xbf16>, vector<8x10xf32> -> vector<8x10xf32>
    %191 = arith.negf %190 : vector<8x10xf32>
    %192 = math.exp %191 : vector<8x10xf32>
    %cst_107 = arith.constant 1.000000e+00 : f32
    %193 = vector.broadcast %cst_107 : f32 to vector<8x10xf32>
    %194 = arith.addf %193, %192 : vector<8x10xf32>
    %195 = arith.divf %193, %194 : vector<8x10xf32>
    %196 = tpu.iota {dimensions = array<i32: 1>} : vector<8x10xi32>
    %197 = tpu.iota {dimensions = array<i32: 1>} : vector<1x8x1xi32>
    %198 = tpu.iota {dimensions = array<i32: 1>} : vector<1x8xi32>
    %cst_108 = arith.constant 0.000000e+00 : f32
    %199 = vector.broadcast %cst_108 : f32 to vector<8x8x10xf32>
    %cst_109 = arith.constant 0.000000e+00 : f32
    %200 = vector.broadcast %cst_109 : f32 to vector<8x8xf32>
    %cst_110 = arith.constant dense<0xFF800000> : vector<8xf32>
    %201 = vector.multi_reduction <maximumf>, %195, %cst_110 [1] : vector<8x10xf32> to vector<8xf32>
    %202 = vector.shape_cast %201 : vector<8xf32> to vector<8x1xf32>
    %203 = vector.broadcast %202 : vector<8x1xf32> to vector<8x10xf32>
    %204 = arith.cmpf oeq, %195, %203 : vector<8x10xf32>
    %c10_i32 = arith.constant 10 : i32
    %205 = vector.broadcast %c10_i32 : i32 to vector<8x10xi32>
    %206 = arith.select %204, %196, %205 : vector<8x10xi1>, vector<8x10xi32>
    %cst_111 = arith.constant dense<2147483647> : vector<8xi32>
    %207 = vector.multi_reduction <minsi>, %206, %cst_111 [1] : vector<8x10xi32> to vector<8xi32>
    %208 = vector.shape_cast %207 : vector<8xi32> to vector<8x1xi32>
    %209 = vector.broadcast %208 : vector<8x1xi32> to vector<8x10xi32>
    %210 = arith.cmpi eq, %196, %209 : vector<8x10xi32>
    %cst_112 = arith.constant 1.000000e+00 : f32
    %cst_113 = arith.constant 0.000000e+00 : f32
    %211 = vector.broadcast %cst_112 : f32 to vector<8x10xf32>
    %212 = vector.broadcast %cst_113 : f32 to vector<8x10xf32>
    %213 = arith.select %210, %211, %212 : vector<8x10xi1>, vector<8x10xf32>
    %214 = vector.shape_cast %213 : vector<8x10xf32> to vector<8x1x10xf32>
    %c0_i32 = arith.constant 0 : i32
    %215 = vector.broadcast %c0_i32 : i32 to vector<1x8x1xi32>
    %216 = arith.cmpi eq, %197, %215 : vector<1x8x1xi32>
    %217 = arith.extui %216 : vector<1x8x1xi1> to vector<1x8x1xi32>
    %218 = arith.sitofp %217 : vector<1x8x1xi32> to vector<1x8x1xf32>
    %219 = vector.broadcast %214 : vector<8x1x10xf32> to vector<8x8x10xf32>
    %220 = vector.broadcast %218 : vector<1x8x1xf32> to vector<8x8x10xf32>
    %221 = arith.mulf %219, %220 : vector<8x8x10xf32>
    %222 = arith.addf %199, %221 : vector<8x8x10xf32>
    %c0_i32_114 = arith.constant 0 : i32
    %223 = vector.broadcast %c0_i32_114 : i32 to vector<1x8xi32>
    %224 = arith.cmpi eq, %198, %223 : vector<1x8xi32>
    %225 = arith.extui %224 : vector<1x8xi1> to vector<1x8xi32>
    %226 = arith.sitofp %225 : vector<1x8xi32> to vector<1x8xf32>
    %227 = vector.broadcast %202 : vector<8x1xf32> to vector<8x8xf32>
    %228 = vector.broadcast %226 : vector<1x8xf32> to vector<8x8xf32>
    %229 = arith.mulf %227, %228 : vector<8x8xf32>
    %230 = arith.addf %200, %229 : vector<8x8xf32>
    %cst_115 = arith.constant -1.000000e+30 : f32
    %231 = vector.broadcast %cst_115 : f32 to vector<8x10xf32>
    %232 = arith.select %210, %231, %195 : vector<8x10xi1>, vector<8x10xf32>
    %cst_116 = arith.constant dense<0xFF800000> : vector<8xf32>
    %233 = vector.multi_reduction <maximumf>, %232, %cst_116 [1] : vector<8x10xf32> to vector<8xf32>
    %234 = vector.shape_cast %233 : vector<8xf32> to vector<8x1xf32>
    %235 = vector.broadcast %234 : vector<8x1xf32> to vector<8x10xf32>
    %236 = arith.cmpf oeq, %232, %235 : vector<8x10xf32>
    %c10_i32_117 = arith.constant 10 : i32
    %237 = vector.broadcast %c10_i32_117 : i32 to vector<8x10xi32>
    %238 = arith.select %236, %196, %237 : vector<8x10xi1>, vector<8x10xi32>
    %cst_118 = arith.constant dense<2147483647> : vector<8xi32>
    %239 = vector.multi_reduction <minsi>, %238, %cst_118 [1] : vector<8x10xi32> to vector<8xi32>
    %240 = vector.shape_cast %239 : vector<8xi32> to vector<8x1xi32>
    %241 = vector.broadcast %240 : vector<8x1xi32> to vector<8x10xi32>
    %242 = arith.cmpi eq, %196, %241 : vector<8x10xi32>
    %cst_119 = arith.constant 1.000000e+00 : f32
    %cst_120 = arith.constant 0.000000e+00 : f32
    %243 = vector.broadcast %cst_119 : f32 to vector<8x10xf32>
    %244 = vector.broadcast %cst_120 : f32 to vector<8x10xf32>
    %245 = arith.select %242, %243, %244 : vector<8x10xi1>, vector<8x10xf32>
    %246 = vector.shape_cast %245 : vector<8x10xf32> to vector<8x1x10xf32>
    %c1_i32 = arith.constant 1 : i32
    %247 = vector.broadcast %c1_i32 : i32 to vector<1x8x1xi32>
    %248 = arith.cmpi eq, %197, %247 : vector<1x8x1xi32>
    %249 = arith.extui %248 : vector<1x8x1xi1> to vector<1x8x1xi32>
    %250 = arith.sitofp %249 : vector<1x8x1xi32> to vector<1x8x1xf32>
    %251 = vector.broadcast %246 : vector<8x1x10xf32> to vector<8x8x10xf32>
    %252 = vector.broadcast %250 : vector<1x8x1xf32> to vector<8x8x10xf32>
    %253 = arith.mulf %251, %252 : vector<8x8x10xf32>
    %254 = arith.addf %222, %253 : vector<8x8x10xf32>
    %c1_i32_121 = arith.constant 1 : i32
    %255 = vector.broadcast %c1_i32_121 : i32 to vector<1x8xi32>
    %256 = arith.cmpi eq, %198, %255 : vector<1x8xi32>
    %257 = arith.extui %256 : vector<1x8xi1> to vector<1x8xi32>
    %258 = arith.sitofp %257 : vector<1x8xi32> to vector<1x8xf32>
    %259 = vector.broadcast %234 : vector<8x1xf32> to vector<8x8xf32>
    %260 = vector.broadcast %258 : vector<1x8xf32> to vector<8x8xf32>
    %261 = arith.mulf %259, %260 : vector<8x8xf32>
    %262 = arith.addf %230, %261 : vector<8x8xf32>
    %cst_122 = arith.constant -1.000000e+30 : f32
    %263 = vector.broadcast %cst_122 : f32 to vector<8x10xf32>
    %264 = arith.select %242, %263, %232 : vector<8x10xi1>, vector<8x10xf32>
    %cst_123 = arith.constant dense<0xFF800000> : vector<8xf32>
    %265 = vector.multi_reduction <maximumf>, %264, %cst_123 [1] : vector<8x10xf32> to vector<8xf32>
    %266 = vector.shape_cast %265 : vector<8xf32> to vector<8x1xf32>
    %267 = vector.broadcast %266 : vector<8x1xf32> to vector<8x10xf32>
    %268 = arith.cmpf oeq, %264, %267 : vector<8x10xf32>
    %c10_i32_124 = arith.constant 10 : i32
    %269 = vector.broadcast %c10_i32_124 : i32 to vector<8x10xi32>
    %270 = arith.select %268, %196, %269 : vector<8x10xi1>, vector<8x10xi32>
    %cst_125 = arith.constant dense<2147483647> : vector<8xi32>
    %271 = vector.multi_reduction <minsi>, %270, %cst_125 [1] : vector<8x10xi32> to vector<8xi32>
    %272 = vector.shape_cast %271 : vector<8xi32> to vector<8x1xi32>
    %273 = vector.broadcast %272 : vector<8x1xi32> to vector<8x10xi32>
    %274 = arith.cmpi eq, %196, %273 : vector<8x10xi32>
    %cst_126 = arith.constant 1.000000e+00 : f32
    %cst_127 = arith.constant 0.000000e+00 : f32
    %275 = vector.broadcast %cst_126 : f32 to vector<8x10xf32>
    %276 = vector.broadcast %cst_127 : f32 to vector<8x10xf32>
    %277 = arith.select %274, %275, %276 : vector<8x10xi1>, vector<8x10xf32>
    %278 = vector.shape_cast %277 : vector<8x10xf32> to vector<8x1x10xf32>
    %c2_i32 = arith.constant 2 : i32
    %279 = vector.broadcast %c2_i32 : i32 to vector<1x8x1xi32>
    %280 = arith.cmpi eq, %197, %279 : vector<1x8x1xi32>
    %281 = arith.extui %280 : vector<1x8x1xi1> to vector<1x8x1xi32>
    %282 = arith.sitofp %281 : vector<1x8x1xi32> to vector<1x8x1xf32>
    %283 = vector.broadcast %278 : vector<8x1x10xf32> to vector<8x8x10xf32>
    %284 = vector.broadcast %282 : vector<1x8x1xf32> to vector<8x8x10xf32>
    %285 = arith.mulf %283, %284 : vector<8x8x10xf32>
    %286 = arith.addf %254, %285 : vector<8x8x10xf32>
    %c2_i32_128 = arith.constant 2 : i32
    %287 = vector.broadcast %c2_i32_128 : i32 to vector<1x8xi32>
    %288 = arith.cmpi eq, %198, %287 : vector<1x8xi32>
    %289 = arith.extui %288 : vector<1x8xi1> to vector<1x8xi32>
    %290 = arith.sitofp %289 : vector<1x8xi32> to vector<1x8xf32>
    %291 = vector.broadcast %266 : vector<8x1xf32> to vector<8x8xf32>
    %292 = vector.broadcast %290 : vector<1x8xf32> to vector<8x8xf32>
    %293 = arith.mulf %291, %292 : vector<8x8xf32>
    %294 = arith.addf %262, %293 : vector<8x8xf32>
    %295 = vector.shape_cast %286 : vector<8x8x10xf32> to vector<64x10xf32>
    %296 = arith.truncf %295 : vector<64x10xf32> to vector<64x10xbf16>
    %cst_129 = arith.constant dense<0.000000e+00> : vector<64x64xf32>
    %297 = tpu.matmul %296, %188, %cst_129 {dimension_numbers = #tpu.dot_dimension_numbers<[1], [0], [0], [1], [0, 0, 1, 1], [], []>} : vector<64x10xbf16>, vector<10x64xbf16>, vector<64x64xf32> -> vector<64x64xf32>
    %298 = vector.shape_cast %297 : vector<64x64xf32> to vector<8x8x64xf32>
    %299 = arith.truncf %298 : vector<8x8x64xf32> to vector<8x8x64xbf16>
    %c0_130 = arith.constant 0 : index
    %c0_131 = arith.constant 0 : index
    %c0_132 = arith.constant 0 : index
    %300 = vector.load %arg12[%c0_130, %c0_131, %c0_132] : memref<8x64x64xbf16, #tpu.memory_space<vmem>>, vector<8x64x64xbf16>
    %cst_133 = arith.constant dense<0.000000e+00> : vector<8x8x64xf32>
    %301 = tpu.matmul %299, %300, %cst_133 {dimension_numbers = #tpu.dot_dimension_numbers<[2], [1], [1], [2], [0, 0, 0, 1, 1, 2], [0], [0]>} : vector<8x8x64xbf16>, vector<8x64x64xbf16>, vector<8x8x64xf32> -> vector<8x8x64xf32>
    %c0_134 = arith.constant 0 : index
    %c0_135 = arith.constant 0 : index
    %c0_136 = arith.constant 0 : index
    %302 = vector.load %arg13[%c0_134, %c0_135, %c0_136] : memref<8x1x64xf32, #tpu.memory_space<vmem>>, vector<8x1x64xf32>
    %303 = vector.broadcast %302 : vector<8x1x64xf32> to vector<8x8x64xf32>
    %304 = arith.addf %301, %303 : vector<8x8x64xf32>
    %305 = arith.negf %304 : vector<8x8x64xf32>
    %306 = math.exp %305 : vector<8x8x64xf32>
    %cst_137 = arith.constant 1.000000e+00 : f32
    %307 = vector.broadcast %cst_137 : f32 to vector<8x8x64xf32>
    %308 = arith.addf %307, %306 : vector<8x8x64xf32>
    %309 = arith.divf %307, %308 : vector<8x8x64xf32>
    %310 = arith.mulf %304, %309 : vector<8x8x64xf32>
    %311 = arith.truncf %310 : vector<8x8x64xf32> to vector<8x8x64xbf16>
    %c0_138 = arith.constant 0 : index
    %c0_139 = arith.constant 0 : index
    %c0_140 = arith.constant 0 : index
    %312 = vector.load %arg14[%c0_138, %c0_139, %c0_140] : memref<8x64x64xbf16, #tpu.memory_space<vmem>>, vector<8x64x64xbf16>
    %cst_141 = arith.constant dense<0.000000e+00> : vector<8x8x64xf32>
    %313 = tpu.matmul %311, %312, %cst_141 {dimension_numbers = #tpu.dot_dimension_numbers<[2], [1], [1], [2], [0, 0, 0, 1, 1, 2], [0], [0]>} : vector<8x8x64xbf16>, vector<8x64x64xbf16>, vector<8x8x64xf32> -> vector<8x8x64xf32>
    %c0_142 = arith.constant 0 : index
    %c0_143 = arith.constant 0 : index
    %c0_144 = arith.constant 0 : index
    %314 = vector.load %arg15[%c0_142, %c0_143, %c0_144] : memref<8x1x64xf32, #tpu.memory_space<vmem>>, vector<8x1x64xf32>
    %315 = vector.broadcast %314 : vector<8x1x64xf32> to vector<8x8x64xf32>
    %316 = arith.addf %313, %315 : vector<8x8x64xf32>
    %317 = vector.shape_cast %294 : vector<8x8xf32> to vector<8x8x1xf32>
    %318 = vector.broadcast %317 : vector<8x8x1xf32> to vector<8x8x10xf32>
    %319 = arith.mulf %286, %318 : vector<8x8x10xf32>
    %320 = vector.shape_cast %319 : vector<8x8x10xf32> to vector<64x10xf32>
    %321 = arith.truncf %320 : vector<64x10xf32> to vector<64x10xbf16>
    %322 = vector.shape_cast %316 : vector<8x8x64xf32> to vector<64x64xf32>
    %323 = arith.truncf %322 : vector<64x64xf32> to vector<64x64xbf16>
    %cst_145 = arith.constant dense<0.000000e+00> : vector<10x64xf32>
    %324 = tpu.matmul %321, %323, %cst_145 {dimension_numbers = #tpu.dot_dimension_numbers<[0], [0], [1], [1], [0, 1, 1, 1], [], []>} : vector<64x10xbf16>, vector<64x64xbf16>, vector<10x64xf32> -> vector<10x64xf32>
    %c0_146 = arith.constant 0 : index
    %c0_147 = arith.constant 0 : index
    %325 = vector.load %arg16[%c0_146, %c0_147] : memref<64x64xbf16, #tpu.memory_space<vmem>>, vector<64x64xbf16>
    %cst_148 = arith.constant dense<0.000000e+00> : vector<10x64xf32>
    %326 = tpu.matmul %188, %325, %cst_148 {dimension_numbers = #tpu.dot_dimension_numbers<[1], [0], [0], [1], [0, 0, 1, 1], [], []>} : vector<10x64xbf16>, vector<64x64xbf16>, vector<10x64xf32> -> vector<10x64xf32>
    %c0_149 = arith.constant 0 : index
    %c0_150 = arith.constant 0 : index
    %327 = vector.load %arg17[%c0_149, %c0_150] : memref<1x64xf32, #tpu.memory_space<vmem>>, vector<1x64xf32>
    %328 = vector.broadcast %327 : vector<1x64xf32> to vector<10x64xf32>
    %329 = arith.addf %326, %328 : vector<10x64xf32>
    %cst_151 = arith.constant 5.000000e-01 : f32
    %330 = vector.broadcast %cst_151 : f32 to vector<10x64xf32>
    %331 = arith.mulf %330, %329 : vector<10x64xf32>
    %cst_152 = arith.constant 4.471500e-02 : f32
    %332 = vector.broadcast %cst_152 : f32 to vector<10x64xf32>
    %333 = arith.mulf %332, %329 : vector<10x64xf32>
    %334 = arith.mulf %333, %329 : vector<10x64xf32>
    %335 = arith.mulf %334, %329 : vector<10x64xf32>
    %336 = arith.addf %329, %335 : vector<10x64xf32>
    %cst_153 = arith.constant 0.797884583 : f32
    %337 = vector.broadcast %cst_153 : f32 to vector<10x64xf32>
    %338 = arith.mulf %337, %336 : vector<10x64xf32>
    %339 = math.tanh %338 : vector<10x64xf32>
    %cst_154 = arith.constant 1.000000e+00 : f32
    %340 = vector.broadcast %cst_154 : f32 to vector<10x64xf32>
    %341 = arith.addf %340, %339 : vector<10x64xf32>
    %342 = arith.mulf %331, %341 : vector<10x64xf32>
    %343 = arith.truncf %342 : vector<10x64xf32> to vector<10x64xbf16>
    %c0_155 = arith.constant 0 : index
    %c0_156 = arith.constant 0 : index
    %344 = vector.load %arg18[%c0_155, %c0_156] : memref<64x64xbf16, #tpu.memory_space<vmem>>, vector<64x64xbf16>
    %cst_157 = arith.constant dense<0.000000e+00> : vector<10x64xf32>
    %345 = tpu.matmul %343, %344, %cst_157 {dimension_numbers = #tpu.dot_dimension_numbers<[1], [0], [0], [1], [0, 0, 1, 1], [], []>} : vector<10x64xbf16>, vector<64x64xbf16>, vector<10x64xf32> -> vector<10x64xf32>
    %c0_158 = arith.constant 0 : index
    %c0_159 = arith.constant 0 : index
    %346 = vector.load %arg19[%c0_158, %c0_159] : memref<1x64xf32, #tpu.memory_space<vmem>>, vector<1x64xf32>
    %347 = vector.broadcast %346 : vector<1x64xf32> to vector<10x64xf32>
    %348 = arith.addf %345, %347 : vector<10x64xf32>
    %349 = arith.addf %163, %324 : vector<10x64xf32>
    %350 = arith.addf %349, %348 : vector<10x64xf32>
    %c0_160 = arith.constant 0 : index
    %c0_161 = arith.constant 0 : index
    %351 = vector.load %arg20[%c0_160, %c0_161] : memref<10x64xf32, #tpu.memory_space<vmem>>, vector<10x64xf32>
    tpu.vector_store %arg20[%c0_160, %c0_161], %350 {strides = array<i32>} : memref<10x64xf32, #tpu.memory_space<vmem>>, vector<10x64xf32>,
    return
  }
}

module attributes {stable_mosaic.version = 11 : i64} {
  func.func @_norm_head_kernel(%arg0: memref<2x64xf32, #tpu.memory_space<vmem>>, %arg1: memref<1x64xf32, #tpu.memory_space<vmem>>, %arg2: memref<1x64xf32, #tpu.memory_space<vmem>>, %arg3: memref<64x16xbf16, #tpu.memory_space<vmem>>, %arg4: memref<1x16xf32, #tpu.memory_space<vmem>>, %arg5: memref<2x16xf32, #tpu.memory_space<vmem>>) attributes {dimension_semantics = [], scalar_prefetch = 0 : i64, scratch_operands = 0 : i64, tpu.core_type = #tpu.core_type<tc>} {
    %c0 = arith.constant 0 : index
    %c0_0 = arith.constant 0 : index
    %0 = vector.load %arg0[%c0, %c0_0] : memref<2x64xf32, #tpu.memory_space<vmem>>, vector<2x64xf32>
    %c0_1 = arith.constant 0 : index
    %c0_2 = arith.constant 0 : index
    %1 = vector.load %arg1[%c0_1, %c0_2] : memref<1x64xf32, #tpu.memory_space<vmem>>, vector<1x64xf32>
    %c0_3 = arith.constant 0 : index
    %c0_4 = arith.constant 0 : index
    %2 = vector.load %arg2[%c0_3, %c0_4] : memref<1x64xf32, #tpu.memory_space<vmem>>, vector<1x64xf32>
    %cst = arith.constant dense<0.000000e+00> : vector<2xf32>
    %3 = vector.multi_reduction <add>, %0, %cst [1] : vector<2x64xf32> to vector<2xf32>
    %4 = vector.shape_cast %3 : vector<2xf32> to vector<2x1xf32>
    %cst_5 = arith.constant 6.400000e+01 : f32
    %5 = vector.broadcast %cst_5 : f32 to vector<2x1xf32>
    %6 = arith.divf %4, %5 : vector<2x1xf32>
    %7 = vector.broadcast %6 : vector<2x1xf32> to vector<2x64xf32>
    %8 = arith.subf %0, %7 : vector<2x64xf32>
    %9 = arith.mulf %8, %8 : vector<2x64xf32>
    %cst_6 = arith.constant dense<0.000000e+00> : vector<2xf32>
    %10 = vector.multi_reduction <add>, %9, %cst_6 [1] : vector<2x64xf32> to vector<2xf32>
    %11 = vector.shape_cast %10 : vector<2xf32> to vector<2x1xf32>
    %cst_7 = arith.constant 6.400000e+01 : f32
    %12 = vector.broadcast %cst_7 : f32 to vector<2x1xf32>
    %13 = arith.divf %11, %12 : vector<2x1xf32>
    %14 = vector.broadcast %6 : vector<2x1xf32> to vector<2x64xf32>
    %15 = arith.subf %0, %14 : vector<2x64xf32>
    %cst_8 = arith.constant 9.99999974E-6 : f32
    %16 = vector.broadcast %cst_8 : f32 to vector<2x1xf32>
    %17 = arith.addf %13, %16 : vector<2x1xf32>
    %18 = math.rsqrt %17 : vector<2x1xf32>
    %19 = vector.broadcast %18 : vector<2x1xf32> to vector<2x64xf32>
    %20 = arith.mulf %15, %19 : vector<2x64xf32>
    %21 = vector.broadcast %1 : vector<1x64xf32> to vector<2x64xf32>
    %22 = arith.mulf %20, %21 : vector<2x64xf32>
    %23 = vector.broadcast %2 : vector<1x64xf32> to vector<2x64xf32>
    %24 = arith.addf %22, %23 : vector<2x64xf32>
    %25 = arith.truncf %24 : vector<2x64xf32> to vector<2x64xbf16>
    %c0_9 = arith.constant 0 : index
    %c0_10 = arith.constant 0 : index
    %26 = vector.load %arg3[%c0_9, %c0_10] : memref<64x16xbf16, #tpu.memory_space<vmem>>, vector<64x16xbf16>
    %cst_11 = arith.constant dense<0.000000e+00> : vector<2x16xf32>
    %27 = tpu.matmul %25, %26, %cst_11 {dimension_numbers = #tpu.dot_dimension_numbers<[1], [0], [0], [1], [0, 0, 1, 1], [], []>} : vector<2x64xbf16>, vector<64x16xbf16>, vector<2x16xf32> -> vector<2x16xf32>
    %c0_12 = arith.constant 0 : index
    %c0_13 = arith.constant 0 : index
    %28 = vector.load %arg4[%c0_12, %c0_13] : memref<1x16xf32, #tpu.memory_space<vmem>>, vector<1x16xf32>
    %29 = vector.broadcast %28 : vector<1x16xf32> to vector<2x16xf32>
    %30 = arith.addf %27, %29 : vector<2x16xf32>
    %c0_14 = arith.constant 0 : index
    %c0_15 = arith.constant 0 : index
    %31 = vector.load %arg5[%c0_14, %c0_15] : memref<2x16xf32, #tpu.memory_space<vmem>>, vector<2x16xf32>
    tpu.vector_store %arg5[%c0_14, %c0_15], %30 {strides = array<i32>} : memref<2x16xf32, #tpu.memory_space<vmem>>, vector<2x16xf32>,
    return
  }
}

</mosaic_0001>

<bundles_post_ra>
// kernel: vit_forward.6
= control target key start
LH: loop header
LB: loop body
LE: loop exit
PB: predicated region body
PF: predicated region fallthrough
CT: control target
= control target key end

     0   :  { %vm119_vm0 = vcmask 523264   ;;  %s286_s1 = inlined_call_operand.vmem [shape: bf16[192,64], index: 1, kind: input, shape index: {}]   ;;  %s287_s0 = inlined_call_operand.vmem [shape: f32[8,192], index: 0, kind: input, shape index: {}]   ;;  %s288_s2 = inlined_call_operand.vmem [shape: f32[1,64], index: 2, kind: input, shape index: {}]   ;;  %s289_s3 = inlined_call_operand.vmem [shape: f32[8,64], index: 3, kind: output, shape index: {}]  }
   0x1   :  { %v210_v0 = vld [vmem:[%s286_s1 + $0x38] sm:$0xff]  ;;  %v209_v2 = vld [vmem:[%s286_s1 + $0x30] sm:$0xff]  ;;  %v208_v4 = vld [vmem:[%s286_s1 + $0x28] sm:$0xff] }
   0x2   :  { %v214_v1 = vld [vmem:[%s286_s1 + $0x58] sm:$0xff]  ;;  %123 = vmatpush.bf16.msra.mxu0 %v210_v0  ;;  %v213_v3 = vld [vmem:[%s286_s1 + $0x50] sm:$0xff]  ;;  %v212_v5 = vld [vmem:[%s286_s1 + $0x48] sm:$0xff] }
   0x3   :  { %140 = vmatpush.bf16.msra.mxu1 %v214_v1  ;;  %v207_v6 = vld [vmem:[%s286_s1 + $0x20] sm:$0xff]  ;;  %v16_v8 = vld [vmem:[%s287_s0 + $0x8] sm:$0xff]  ;;  %v206_v9 = vld [vmem:[%s286_s1 + $0x18] sm:$0xff] }
   0x4   :  { %v211_v7 = vld [vmem:[%s286_s1 + $0x40] sm:$0xff]  ;;  %v18_v10 = vpack.c.bf16 %v16_v8, %v16_v8  ;;  %v205_v11 = vld [vmem:[%s286_s1 + $0x10] sm:$0xff]  ;;  %v204_v12 = vld [vmem:[%s286_s1 + $0x8] sm:$0xff] }
   0x5   :  { %v203_v13 = vld [vmem:[%s286_s1] sm:$0xff] }
   0x6   :  { %124 = vmatpush.bf16.msra.mxu0 %v209_v2  ;;  %v15_v14 = vld [vmem:[%s287_s0] sm:$0xff] }
   0x7   :  { %141 = vmatpush.bf16.msra.mxu1 %v213_v3  ;;  %v17_v15 = vpack.c.bf16 %v15_v14, %v15_v14  ;;  %v215_v18 = vld [vmem:[%s288_s2] ss:$0 sm:$0xff] }
   0xa   :  { %125 = vmatpush.bf16.msra.mxu0 %v208_v4 }
   0xb   :  { %142 = vmatpush.bf16.msra.mxu1 %v212_v5 }
   0xe   :  { %126 = vmatpush.bf16.msra.mxu0 %v207_v6 }
   0xf   :  { %143 = vmatpush.bf16.msra.mxu1 %v211_v7 }
  0x12   :  { %127 = vmatpush.bf16.msra.mxu0 %v206_v9  ;;  %202 = vmatmul.msk.bf16.vlgmr.msra.gmra.mxu1 %vm119_vm0, %v18_v10 }
  0x16   :  { %128 = vmatpush.bf16.msra.mxu0 %v205_v11 }
  0x1a   :  { %129 = vmatpush.bf16.msra.mxu0 %v204_v12 }
  0x1e   :  { %130 = vmatpush.bf16.msra.mxu0 %v203_v13 }
  0x21   :  { %131 = vmatmul.bf16.vlgmr.msra.gmra.mxu0 %v17_v15 }
  0x8f   :  { %v145_v16 = vpop.f32.mrf.mxu1 }
  0x97   :  { %v147_v17 = vpop.f32.mrf.mxu1 }
  0x9e   :  { %v132_v19 = vpop.f32.mrf.mxu0 }
  0x9f   :  { %v133_v20 = vadd.f32 %v215_v18, %v132_v19 }
  0xa1   :  { %v146_v21 = vadd.f32 %v145_v16, %v133_v20 }
  0xa3   :  { %149 = vst.msk [vmem:[%s289_s3] sm:$0xff] %vm119_vm0, %v146_v21 }
  0xa6   :  { %v134_v22 = vpop.f32.mrf.mxu0 }

// kernel: vit_forward.11
= control target key start
LH: loop header
LB: loop body
LE: loop exit
PB: predicated region body
PF: predicated region fallthrough
CT: control target
= control target key end

     0   :  { %vm25_vm0 = vcmask 517120   ;;  %s252_s0 = inlined_call_operand.vmem [shape: f32[2,64], index: 0, kind: input, shape index: {}]   ;;  %s253_s1 = inlined_call_operand.vmem [shape: f32[1,64], index: 1, kind: input, shape index: {}]   ;;  %s254_s2 = inlined_call_operand.vmem [shape: f32[1,64], index: 2, kind: input, shape index: {}]   ;;  %s255_s3 = inlined_call_operand.vmem [shape: bf16[64,16], index: 3, kind: input, shape index: {}]   ;;  %s256_s4 = inlined_call_operand.vmem [shape: f32[1,16], index: 4, kind: input, shape index: {}]   ;;  %s257_s5 = inlined_call_operand.hbm [shape: f32[2,16], index: 5, kind: output, shape index: {}]  }
   0x1   :  { %v22_v0 = vld [vmem:[%s252_s0] sm:$0x3] }
   0x2   :  { %v26_v1 = vsel %vm25_vm0, %v22_v0, 0.0 }
   0x3   :  { %27 = vadd.xlane.f32.xlu0 %v26_v1 }
   0x4   :  { %10 = vsyncpa [#allocation3], 0  ;;  %v191_v2 = vmov 64.0   ;;  %v155_v14 = vld [vmem:[%s255_s3 + $0x18] sm:$0xff]  ;;  %v154_v15 = vld [vmem:[%s255_s3 + $0x10] sm:$0xff]  ;;  %vm100_vm5 = vcmask 523264  }
   0x5   :  { %161 = vrcp.f32 %v191_v2  ;;  %108 = vmatpush.bf16.msra.mxu0 %v155_v14  ;;  %v153_v16 = vld [vmem:[%s255_s3 + $0x8] sm:$0xff]  ;;  %v152_v17 = vld [vmem:[%s255_s3] sm:$0xff]  ;;  %s192_s7 = smov [#allocation2]   ;;  %vm117_vm6 = vcmask 123904  }
   0x6   :  { %v158_v27 = vld [vmem:[%s253_s1] ss:$0 sm:$0xff]  ;;  %s124_s8 = sshll.u32 %s192_s7, 4  ;;  %s126_s1 = sshll.u32 %s257_s5, 4  ;;  %s125_s8 = int_to_ptr.vmem [resolvable:$true] %s124_s8  ;;  %s127_s1 = int_to_ptr.hbm [resolvable:$true] %s126_s1 }
   0x7   :  { %v159_v30 = vld [vmem:[%s254_s2] ss:$0 sm:$0xff] }
   0x8   :  { %v160_v34 = vld [vmem:[%s256_s4] ss:$0 sm:$0xff] }
   0x9   :  { %109 = vmatpush.bf16.msra.mxu0 %v154_v15 }
   0xb   :  { %v162_v3 = vpop.eup %161 }
   0xc   :  { %v30_v4 = vmul.f32 64.0, %v162_v3  ;;  %vm34_vm1 = vweird.f32 %v162_v3 }
   0xd   :  { %110 = vmatpush.bf16.msra.mxu0 %v153_v16 }
   0xe   :  { %v31_v5 = vsub.f32 1.0, %v30_v4 }
  0x10   :  { %v32_v6 = vmul.f32 %v162_v3, %v31_v5 }
  0x11   :  { %111 = vmatpush.bf16.msra.mxu0 %v152_v17 }
  0x12   :  { %v33_v7 = vadd.f32 %v162_v3, %v32_v6 }
  0x14   :  { %v35_v8 = vsel %vm34_vm1, %v162_v3, %v33_v7 }
  0x76   :  { %v28_v9 = vpop.xlane.xlu0 %27 }
  0x77   :  { %v36_v10 = vmul.f32 %v35_v8, %v28_v9 }
  0x79   :  { %v37_v11 = vsub.f32 %v22_v0, %v36_v10 }
  0x7b   :  { %v38_v12 = vmul.f32 %v37_v11, %v37_v11 }
  0x7d   :  { %v39_v13 = vsel %vm25_vm0, %v38_v12, 0.0 }
  0x7e   :  { %40 = vadd.xlane.f32.xlu0 %v39_v13 }
  0xf1   :  { %v41_v18 = vpop.xlane.xlu0 %40 }
  0xf2   :  { %v42_v19 = vmul.f32 %v41_v18, %v35_v8 }
  0xf4   :  { %v43_v20 = vadd.f32 1e-05, %v42_v19 }
  0xf6   :  { %163 = vrsqrt.f32 %v43_v20  ;;  %vm50_vm3 = vweird.f32 %v43_v20 }
  0xfc   :  { %v164_v21 = vpop.eup %163 }
  0xfd   :  { %v45_v22 = vmul.f32 %v164_v21, %v43_v20  ;;  %vm51_vm2 = vweird.f32 %v164_v21 }
  0xfe   :  { %vm52_vm4 = vmor %vm50_vm3, %vm51_vm2 }
  0xff   :  { %v46_v23 = vmul.f32 %v164_v21, %v45_v22 }
 0x101   :  { %v47_v24 = vmul.f32 0.5, %v46_v23 }
 0x103   :  { %v48_v25 = vsub.f32 1.5, %v47_v24 }
 0x105   :  { %v49_v26 = vmul.f32 %v164_v21, %v48_v25 }
 0x107   :  { %v53_v28 = vsel %vm52_vm4, %v164_v21, %v49_v26 }
 0x108   :  { %v54_v29 = vmul.f32 %v53_v28, %v37_v11 }
 0x10a   :  { %v58_v31 = vmul.f32 %v158_v27, %v54_v29 }
 0x10c   :  { %v62_v32 = vadd.f32 %v159_v30, %v58_v31 }
 0x10e   :  { %v63_v33 = vpack.c.bf16 %v62_v32, %v62_v32 }
 0x110   :  { %151 = vmatmul.msk.bf16.vlgmr.msra.gmra.mxu0 %vm100_vm5, %v63_v33 }
 0x18d   :  { %v113_v35 = vpop.f32.mrf.mxu0 }
 0x18e   :  { %v114_v36 = vadd.f32 %v160_v34, %v113_v35 }
 0x190   :  { %118 = vst.msk [vmem:[#allocation2] sm:$0x3] %vm117_vm6, %v114_v36 }
 0x191   :  { %129 = dma.vmem_to_hbm [thread:$0]  %s125_s8, 32, %s127_s1, [#allocation3]  }
 0x195   :  { %v115_v37 = vpop.f32.mrf.mxu0 }
 0x196   :  { %189 = dma.done.wait [#allocation3], 32  }
 0x197   :  { %190 = vsyncadd [#allocation3], 4294967264 }
 0x198   :  { %134 = vsyncpa [#allocation3], 1 }

// kernel: vit_forward.10
= control target key start
LH: loop header
LB: loop body
LE: loop exit
PB: predicated region body
PF: predicated region fallthrough
CT: control target
= control target key end

     0   :  { %s4383_s0 = inlined_call_operand.vmem [shape: f32[10,64], index: 0, kind: input, shape index: {}]   ;;  %s4384_s1 = inlined_call_operand.vmem [shape: f32[10,10], index: 1, kind: input, shape index: {}]   ;;  %s4385_s2 = inlined_call_operand.vmem [shape: f32[1,64], index: 2, kind: input, shape index: {}]   ;;  %s4386_s3 = inlined_call_operand.vmem [shape: f32[1,64], index: 3, kind: input, shape index: {}]   ;;  %s4387_s4 = inlined_call_operand.vmem [shape: bf16[4,64,16], index: 4, kind: input, shape index: {}]   ;;  %s4388_s5 = inlined_call_operand.vmem [shape: bf16[4,64,16], index: 5, kind: input, shape index: {}]   ;;  %s4389_s6 = inlined_call_operand.vmem [shape: bf16[4,64,16], index: 6, kind: input, shape index: {}]   ;;  %s4390_s7 = inlined_call_operand.vmem [shape: bf16[4,16,64], index: 7, kind: input, shape index: {}]   ;;  %s4391_s8 = inlined_call_operand.vmem [shape: f32[1,64], index: 8, kind: input, shape index: {}]   ;;  %s4392_s9 = inlined_call_operand.vmem [shape: f32[1,64], index: 9, kind: input, shape index: {}]   ;;  %s4393_s10 = inlined_call_operand.vmem [shape: f32[1,64], index: 10, kind: input, shape index: {}]   ;;  %s4394_s11 = inlined_call_operand.vmem [shape: bf16[8,64], index: 11, kind: input, shape index: {}]   ;;  %s4395_s12 = inlined_call_operand.vmem [shape: bf16[8,64,64], index: 12, kind: input, shape index: {}]   ;;  %s4396_s13 = inlined_call_operand.vmem [shape: f32[8,1,64], index: 13, kind: input, shape index: {}]   ;;  %s4397_s14 = inlined_call_operand.hbm [shape: bf16[8,64,64], index: 14, kind: input, shape index: {}]   ;;  %s4398_s15 = inlined_call_operand.vmem [shape: f32[8,1,64], index: 15, kind: input, shape index: {}]   ;;  %s4399_s16 = inlined_call_operand.vmem [shape: bf16[64,64], index: 16, kind: input, shape index: {}]   ;;  %s4400_s17 = inlined_call_operand.vmem [shape: f32[1,64], index: 17, kind: input, shape index: {}]   ;;  %s4401_s18 = inlined_call_operand.vmem [shape: bf16[64,64], index: 18, kind: input, shape index: {}]   ;;  %s4402_s19 = inlined_call_operand.vmem [shape: f32[1,64], index: 19, kind: input, shape index: {}]   ;;  %s4403_s20 = inlined_call_operand.vmem [shape: f32[10,64], index: 20, kind: output, shape index: {}]  }
   0x1   :  { %4407 = sst [smem:[#allocation5_spill]] %s4383_s0 }
   0x2   :  { %4408 = sst [smem:[#allocation6_spill]] %s4384_s1 }
   0x3   :  { %4409 = sst [smem:[#allocation7_spill]] %s4385_s2 }
   0x4   :  { %4410 = sst [smem:[#allocation8_spill]] %s4386_s3 }
   0x5   :  { %4411 = sst [smem:[#allocation9_spill]] %s4387_s4 }
   0x6   :  { %25 = vsyncpa [#allocation3], 0  ;;  %s58_s23 = sshll.u32 %s4397_s14, 4  ;;  %s3617_s24 = smov [#allocation2]   ;;  %s59_s23 = int_to_ptr.hbm [resolvable:$true] %s58_s23 }
   0x7   :  { %s60_s2 = sshll.u32 %s3617_s24, 4  ;;  %s3618_s25 = smov 64   ;;  %s61_s2 = int_to_ptr.vmem [resolvable:$true] %s60_s2 }
   0x8   :  { %s3619_s3 = smov 4  }
   0x9   :  { %66 = dma.hbm_to_vmem [thread:$0]  %s59_s23, 4096, %s61_s2, [#allocation3], %s3618_s25, %s3618_s25, %s3619_s3  }
   0xa   :  { %3615 = dma.done.wait [#allocation3], 4096  }
   0xb   :  { %3616 = vsyncadd [#allocation3], 4294963200  ;;  %vm86_vm0 = vcmask 523264   ;;  %s4412_s28 = sld [smem:[#allocation5_spill]]  ;;  %vm90_vm1 = vcmask 517120   ;;  %v3620_v4 = vmov 64.0  }
   0xc   :  { %3509 = vrcp.f32 %v3620_v4  ;;  %s4413_s0 = sld [smem:[#allocation9_spill]]  ;;  %v3360_v22 = vld [vmem:[%s4388_s5 + $0x18] sm:$0xff]  ;;  %v3359_v25 = vld [vmem:[%s4388_s5 + $0x10] sm:$0xff]  ;;  %v3358_v28 = vld [vmem:[%s4388_s5 + $0x8] sm:$0xff]  ;;  %vm297_vm9 = vcmask 130048   ;;  %vm347_vm10 = vcmask 1044480  }
   0xd   :  { %v3364_v23 = vld [vmem:[%s4389_s6 + $0x18] sm:$0xff]  ;;  %239 = vmatpush.bf16.msra.mxu1 %v3360_v22  ;;  %v3363_v26 = vld [vmem:[%s4389_s6 + $0x10] sm:$0xff]  ;;  %v3362_v29 = vld [vmem:[%s4389_s6 + $0x8] sm:$0xff]  ;;  %s4414_s23 = sld [smem:[#allocation7_spill]]  ;;  %vm318_vm11 = vcmask 80896   ;;  %vm322_vm12 = vcmask 74752  }
   0xe   :  { %285 = vmatpush.bf16.msra.mxu2 %v3364_v23  ;;  %v3357_v33 = vld [vmem:[%s4388_s5] sm:$0xff]  ;;  %v3373_v37 = vld [vmem:[%s4388_s5 + $0x38] sm:$0xff]  ;;  %v3372_v42 = vld [vmem:[%s4388_s5 + $0x30] sm:$0xff]  ;;  %s4415_s25 = sld [smem:[#allocation8_spill]] }
   0xf   :  { %v3361_v34 = vld [vmem:[%s4389_s6] sm:$0xff]  ;;  %v3377_v38 = vld [vmem:[%s4389_s6 + $0x38] sm:$0xff]  ;;  %v3376_v43 = vld [vmem:[%s4389_s6 + $0x30] sm:$0xff]  ;;  %s4416_s27 = sld [smem:[#allocation6_spill]] }
  0x10   :  { %v3371_v48 = vld [vmem:[%s4388_s5 + $0x28] sm:$0xff]  ;;  %v3370_v53 = vld [vmem:[%s4388_s5 + $0x20] sm:$0xff] }
  0x11   :  { %v3733_v0 = vld [vmem:[%s4412_s28] sm:$0xff]  ;;  %v3738_v1 = vld [vmem:[%s4412_s28 + $0x8] sm:$0x3]  ;;  %240 = vmatpush.bf16.msra.mxu1 %v3359_v25 }
  0x12   :  { %v87_v2 = vsel %vm86_vm0, %v3733_v0, 0.0  ;;  %v91_v3 = vsel %vm90_vm1, %v3738_v1, 0.0  ;;  %v3510_v5 = vpop.eup %3509  ;;  %v3356_v21 = vld [vmem:[%s4413_s0 + $0x18] sm:$0xff]  ;;  %v3355_v24 = vld [vmem:[%s4413_s0 + $0x10] sm:$0xff]  ;;  %286 = vmatpush.bf16.msra.mxu2 %v3363_v26  ;;  %v3354_v27 = vld [vmem:[%s4413_s0 + $0x8] sm:$0xff] }
  0x13   :  { %88 = vadd.xlane.f32.xlu0 %v87_v2  ;;  %v95_v6 = vmul.f32 64.0, %v3510_v5  ;;  %vm99_vm2 = vweird.f32 %v3510_v5  ;;  %191 = vmatpush.bf16.msra.mxu0 %v3356_v21  ;;  %v3353_v32 = vld [vmem:[%s4413_s0] sm:$0xff]  ;;  %v3369_v36 = vld [vmem:[%s4413_s0 + $0x38] sm:$0xff]  ;;  %v3368_v41 = vld [vmem:[%s4413_s0 + $0x30] sm:$0xff] }
  0x14   :  { %v3367_v47 = vld [vmem:[%s4413_s0 + $0x28] sm:$0xff]  ;;  %v3366_v52 = vld [vmem:[%s4413_s0 + $0x20] sm:$0xff] }
  0x15   :  { %v96_v7 = vsub.f32 1.0, %v95_v6  ;;  %241 = vmatpush.bf16.msra.mxu1 %v3358_v28  ;;  %v3375_v50 = vld [vmem:[%s4389_s6 + $0x28] sm:$0xff]  ;;  %v3374_v55 = vld [vmem:[%s4389_s6 + $0x20] sm:$0xff] }
  0x16   :  { %287 = vmatpush.bf16.msra.mxu2 %v3362_v29  ;;  %v3486_v63 = vld [vmem:[%s4414_s23] ss:$0 sm:$0xff] }
  0x17   :  { %v97_v8 = vmul.f32 %v3510_v5, %v96_v7  ;;  %192 = vmatpush.bf16.msra.mxu0 %v3355_v24 }
  0x19   :  { %v98_v9 = vadd.f32 %v3510_v5, %v97_v8  ;;  %242 = vmatpush.bf16.msra.mxu1 %v3357_v33 }
  0x1a   :  { %288 = vmatpush.bf16.msra.mxu2 %v3361_v34  ;;  %v3864_v34 = vld [vmem:[%s4416_s27] sm:$0xff] }
  0x1b   :  { %92 = vadd.xlane.f32.xlu0 %v91_v3  ;;  %v3744_v10 = vsel %vm99_vm2, %v3510_v5, %v98_v9  ;;  %193 = vmatpush.bf16.msra.mxu0 %v3354_v27  ;;  %v3487_v5 = vld [vmem:[%s4415_s25] ss:$0 sm:$0xff] }
  0x1d   :  { %454 = vmatpush.bf16.msrb.mxu1 %v3373_v37 }
  0x1e   :  { %501 = vmatpush.bf16.msrb.mxu2 %v3377_v38  ;;  %v3871_v38 = vld [vmem:[%s4416_s27 + $0x8] sm:$0x3] }
  0x1f   :  { %194 = vmatpush.bf16.msra.mxu0 %v3353_v32 }
  0x21   :  { %455 = vmatpush.bf16.msrb.mxu1 %v3372_v42 }
  0x22   :  { %502 = vmatpush.bf16.msrb.mxu2 %v3376_v43 }
  0x23   :  { %405 = vmatpush.bf16.msrb.mxu0 %v3369_v36 }
  0x25   :  { %456 = vmatpush.bf16.msrb.mxu1 %v3371_v48 }
  0x26   :  { %503 = vmatpush.bf16.msrb.mxu2 %v3375_v50 }
  0x27   :  { %406 = vmatpush.bf16.msrb.mxu0 %v3368_v41 }
  0x29   :  { %457 = vmatpush.bf16.msrb.mxu1 %v3370_v53 }
  0x2a   :  { %504 = vmatpush.bf16.msrb.mxu2 %v3374_v55 }
  0x2b   :  { %407 = vmatpush.bf16.msrb.mxu0 %v3367_v47 }
  0x2f   :  { %408 = vmatpush.bf16.msrb.mxu0 %v3366_v52 }
  0x86   :  { %v89_v11 = vpop.xlane.xlu0 %88 }
  0x87   :  { %v101_v12 = vmul.f32 %v3744_v10, %v89_v11 }
  0x89   :  { %v3748_v13 = vsub.f32 %v3733_v0, %v101_v12 }
  0x8b   :  { %v105_v14 = vmul.f32 %v3748_v13, %v3748_v13 }
  0x8d   :  { %v107_v15 = vsel %vm86_vm0, %v105_v14, 0.0 }
  0x8e   :  { %108 = vadd.xlane.f32.xlu1 %v107_v15  ;;  %v93_v16 = vpop.xlane.xlu0 %92 }
  0x8f   :  { %v102_v17 = vmul.f32 %v3744_v10, %v93_v16 }
  0x91   :  { %v3755_v18 = vsub.f32 %v3738_v1, %v102_v17 }
  0x93   :  { %v106_v19 = vmul.f32 %v3755_v18, %v3755_v18 }
  0x95   :  { %v110_v20 = vsel %vm90_vm1, %v106_v19, 0.0 }
  0x96   :  { %111 = vadd.xlane.f32.xlu1 %v110_v20 }
 0x101   :  { %v109_v30 = vpop.xlane.xlu1 %108 }
 0x102   :  { %v113_v31 = vmul.f32 %v109_v30, %v3744_v10 }
 0x104   :  { %v115_v35 = vadd.f32 1e-05, %v113_v31 }
 0x106   :  { %3511 = vrsqrt.f32 %v115_v35  ;;  %vm123_vm4 = vweird.f32 %v115_v35 }
 0x109   :  { %v112_v39 = vpop.xlane.xlu1 %111 }
 0x10a   :  { %v114_v40 = vmul.f32 %v112_v39, %v3744_v10 }
 0x10c   :  { %v3512_v44 = vpop.eup %3511  ;;  %v116_v45 = vadd.f32 1e-05, %v114_v40 }
 0x10d   :  { %v118_v46 = vmul.f32 %v3512_v44, %v115_v35  ;;  %vm124_vm3 = vweird.f32 %v3512_v44 }
 0x10e   :  { %3513 = vrsqrt.f32 %v116_v45  ;;  %vm125_vm5 = vmor %vm123_vm4, %vm124_vm3  ;;  %vm133_vm7 = vweird.f32 %v116_v45 }
 0x10f   :  { %v119_v49 = vmul.f32 %v3512_v44, %v118_v46 }
 0x111   :  { %v120_v51 = vmul.f32 0.5, %v119_v49 }
 0x113   :  { %v121_v54 = vsub.f32 1.5, %v120_v51 }
 0x114   :  { %v3514_v56 = vpop.eup %3513 }
 0x115   :  { %v122_v57 = vmul.f32 %v3512_v44, %v121_v54  ;;  %v128_v58 = vmul.f32 %v3514_v56, %v116_v45  ;;  %vm134_vm6 = vweird.f32 %v3514_v56 }
 0x116   :  { %vm135_vm8 = vmor %vm133_vm7, %vm134_vm6 }
 0x117   :  { %v129_v59 = vmul.f32 %v3514_v56, %v128_v58  ;;  %v126_v60 = vsel %vm125_vm5, %v3512_v44, %v122_v57 }
 0x118   :  { %v137_v2 = vmul.f32 %v126_v60, %v3748_v13 }
 0x119   :  { %v130_v61 = vmul.f32 0.5, %v129_v59  ;;  %v3382_v59 = vld [vmem:[%s4413_s0 + $0x58] sm:$0xff] }
 0x11a   :  { %v142_v6 = vmul.f32 %v3486_v63, %v137_v2  ;;  %v3379_v2 = vld [vmem:[%s4413_s0 + $0x40] sm:$0xff] }
 0x11b   :  { %v131_v62 = vsub.f32 1.5, %v130_v61  ;;  %v3381_v61 = vld [vmem:[%s4413_s0 + $0x50] sm:$0xff] }
 0x11c   :  { %v147_v9 = vadd.f32 %v3487_v5, %v142_v6  ;;  %v3365_v6 = vld [vmem:[%s4390_s7] sm:$0xff] }
 0x11d   :  { %v132_v3 = vmul.f32 %v3514_v56, %v131_v62  ;;  %v3380_v62 = vld [vmem:[%s4413_s0 + $0x48] sm:$0xff] }
 0x11f   :  { %v136_v4 = vsel %vm135_vm8, %v3514_v56, %v132_v3 }
 0x120   :  { %v138_v7 = vmul.f32 %v136_v4, %v3755_v18 }
 0x122   :  { %v143_v8 = vmul.f32 %v3486_v63, %v138_v7 }
 0x124   :  { %v148_v11 = vadd.f32 %v3487_v5, %v143_v8 }
 0x126   :  { %v3842_v12 = vpack.c.bf16 %v148_v11, %v147_v9 }
 0x128   :  { %2732 = vmatmul.msk.bf16.vlgmr.msra.gmra.mxu0 %vm86_vm0, %v3842_v12  ;;  %2749 = vmatmul.msk.bf16.vlgmr.msra.gmra.mxu1 %vm86_vm0, %v3842_v12 }
 0x129   :  { %2766 = vmatmul.msk.bf16.vlgmr.msra.gmra.mxu2 %vm86_vm0, %v3842_v12 }
 0x12a   :  { %620 = vmatpush.bf16.msra.mxu2 %v3365_v6 }
 0x138   :  { %2793 = vmatmul.msk.bf16.vlgmr.msrb.gmra.mxu0 %vm86_vm0, %v3842_v12  ;;  %2818 = vmatmul.msk.bf16.vlgmr.msrb.gmra.mxu1 %vm86_vm0, %v3842_v12 }
 0x139   :  { %2843 = vmatmul.msk.bf16.vlgmr.msrb.gmra.mxu2 %vm86_vm0, %v3842_v12 }
 0x1a5   :  { %v244_v13 = vpop.f32.mrf.mxu1  ;;  %v196_v14 = vpop.f32.mrf.mxu0 }
 0x1a6   :  { %v201_v22 = vmul.f32 0.25, %v196_v14 }
 0x1ac   :  { %v290_v15 = vpop.f32.mrf.mxu2 }
 0x1ad   :  { %v246_v16 = vpop.f32.mrf.mxu1  ;;  %v198_v18 = vpop.f32.mrf.mxu0 }
 0x1ae   :  { %v296_v17 = vpack.c.bf16 %v246_v16, %v244_v13  ;;  %v202_v20 = vmul.f32 0.25, %v198_v18 }
 0x1b0   :  { %v302_v19 = vsel %vm297_vm9, %v296_v17, 0  ;;  %v295_v25 = vpack.c.bf16 %v202_v20, %v201_v22 }
 0x1b1   :  { %311 = vmatpush.bf16.xpose.msra.mxu3 %v302_v19 }
 0x1b4   :  { %v292_v21 = vpop.f32.mrf.mxu2 }
 0x1b5   :  { %v343_v23 = vpack.c.bf16 %v292_v21, %v290_v15  ;;  %v459_v24 = vpop.f32.mrf.mxu1  ;;  %v410_v58 = vpop.f32.mrf.mxu0 }
 0x1b6   :  { %v415_v4 = vmul.f32 0.25, %v410_v58 }
 0x1b7   :  { %v349_v26 = vsel %vm347_vm10, %v343_v23, 0 }
 0x1b8   :  { %2767 = vmatmul.msk.bf16.vlgmr.msra.gmra.mxu3 %vm297_vm9, %v295_v25 }
 0x1b9   :  { %358 = vmatpush.bf16.msrb.mxu3 %v349_v26 }
 0x1bc   :  { %v506_v27 = vpop.f32.mrf.mxu2 }
 0x1bd   :  { %v461_v28 = vpop.f32.mrf.mxu1  ;;  %v412_v63 = vpop.f32.mrf.mxu0 }
 0x1be   :  { %v512_v29 = vpack.c.bf16 %v461_v28, %v459_v24  ;;  %v416_v3 = vmul.f32 0.25, %v412_v63  ;;  %v3386_v28 = vld [vmem:[%s4388_s5 + $0x58] sm:$0xff] }
 0x1c0   :  { %v517_v30 = vsel %vm297_vm9, %v512_v29, 0  ;;  %v511_v5 = vpack.c.bf16 %v416_v3, %v415_v4  ;;  %v3385_v29 = vld [vmem:[%s4388_s5 + $0x50] sm:$0xff]  ;;  %v3396_v3 = vld [vmem:[%s4388_s5 + $0x60] sm:$0xff] }
 0x1c1   :  { %526 = vmatpush.bf16.xpose.msra.mxu3 %v517_v30  ;;  %v3384_v30 = vld [vmem:[%s4388_s5 + $0x48] sm:$0xff] }
 0x1c4   :  { %v508_v31 = vpop.f32.mrf.mxu2 }
 0x1c5   :  { %v556_v32 = vpack.c.bf16 %v508_v31, %v506_v27  ;;  %v3383_v31 = vld [vmem:[%s4388_s5 + $0x40] sm:$0xff] }
 0x1c7   :  { %v561_v33 = vsel %vm347_vm10, %v556_v32, 0 }
 0x1c8   :  { %570 = vmatpush.bf16.msra.mxu0 %v561_v33 }
 0x1cc   :  { %713 = vmatpush.bf16.msrb.mxu0 %v3386_v28 }
 0x1d0   :  { %714 = vmatpush.bf16.msrb.mxu0 %v3385_v29 }
 0x1d4   :  { %715 = vmatpush.bf16.msrb.mxu0 %v3384_v30 }
 0x1d8   :  { %716 = vmatpush.bf16.msrb.mxu0 %v3383_v31 }
 0x23b   :  { %v313_v35 = vpop.f32.mrf.mxu3 }
 0x23c   :  { %v314_v36 = vadd.f32 %v313_v35, %v3864_v34 }
 0x23e   :  { %v319_v37 = vsel %vm318_vm11, %v314_v36, -inf }
 0x23f   :  { %320 = vmax.xlane.f32.xlu2 %v319_v37 }
 0x243   :  { %v315_v39 = vpop.f32.mrf.mxu3 }
 0x244   :  { %v316_v40 = vadd.f32 %v315_v39, %v3871_v38 }
 0x246   :  { %v323_v41 = vsel %vm322_vm12, %v316_v40, -inf }
 0x247   :  { %324 = vmax.xlane.f32.xlu2 %v323_v41  ;;  %v3378_v41 = vld [vmem:[%s4390_s7 + $0x8] sm:$0xff] }
 0x248   :  { %597 = vmatpush.bf16.msra.mxu1 %v3378_v41  ;;  %v3400_v41 = vld [vmem:[%s4389_s6 + $0x60] sm:$0xff] }
 0x2b2   :  { %v321_v42 = vpop.xlane.xlu2 %320 }
 0x2b3   :  { %v326_v43 = vsub.f32 %v314_v36, %v321_v42  ;;  %v3390_v42 = vld [vmem:[%s4389_s6 + $0x58] sm:$0xff] }
 0x2b4   :  { %760 = vmatpush.bf16.msrb.mxu1 %v3390_v42 }
 0x2b5   :  { %v328_v44 = vmul.f32 1.442695, %v326_v43  ;;  %v3389_v43 = vld [vmem:[%s4389_s6 + $0x50] sm:$0xff] }
 0x2b7   :  { %3515 = vpow2.f32 %v328_v44  ;;  %v3388_v44 = vld [vmem:[%s4389_s6 + $0x48] sm:$0xff] }
 0x2b8   :  { %761 = vmatpush.bf16.msrb.mxu1 %v3389_v43 }
 0x2ba   :  { %v325_v45 = vpop.xlane.xlu2 %324 }
 0x2bb   :  { %v327_v46 = vsub.f32 %v316_v40, %v325_v45  ;;  %v3387_v45 = vld [vmem:[%s4389_s6 + $0x40] sm:$0xff] }
 0x2bc   :  { %762 = vmatpush.bf16.msrb.mxu1 %v3388_v44 }
 0x2bd   :  { %v3516_v47 = vpop.eup %3515  ;;  %v330_v48 = vmul.f32 1.442695, %v327_v46 }
 0x2be   :  { %v332_v49 = vsel %vm318_vm11, %v3516_v47, 0.0 }
 0x2bf   :  { %3517 = vpow2.f32 %v330_v48  ;;  %333 = vadd.xlane.f32.xlu0 %v332_v49  ;;  %v3395_v48 = vld [vmem:[%s4413_s0 + $0x78] sm:$0xff] }
 0x2c0   :  { %763 = vmatpush.bf16.msrb.mxu1 %v3387_v45 }
 0x2c5   :  { %v3518_v50 = vpop.eup %3517 }
 0x2c6   :  { %v335_v51 = vsel %vm322_vm12, %v3518_v50, 0.0 }
 0x2c7   :  { %336 = vadd.xlane.f32.xlu1 %v335_v51 }
 0x332   :  { %v334_v52 = vpop.xlane.xlu0 %333 }
 0x333   :  { %3519 = vrcp.f32 %v334_v52 }
 0x339   :  { %v3520_v54 = vpop.eup %3519 }
 0x33a   :  { %v337_v53 = vpop.xlane.xlu1 %336  ;;  %v340_v56 = vmul.f32 %v3520_v54, %v3516_v47  ;;  %v3392_v54 = vld [vmem:[%s4413_s0 + $0x60] sm:$0xff] }
 0x33b   :  { %3521 = vrcp.f32 %v337_v53  ;;  %v3393_v53 = vld [vmem:[%s4413_s0 + $0x68] sm:$0xff] }
 0x341   :  { %v3522_v55 = vpop.eup %3521 }
 0x342   :  { %v341_v57 = vmul.f32 %v3522_v55, %v3518_v50  ;;  %v3394_v50 = vld [vmem:[%s4413_s0 + $0x70] sm:$0xff] }
 0x344   :  { %v342_v60 = vpack.c.bf16 %v341_v57, %v340_v56  ;;  %v3399_v57 = vld [vmem:[%s4388_s5 + $0x78] sm:$0xff] }
 0x346   :  { %2768 = vmatmul.msk.bf16.vlgmr.msrb.gmra.mxu3 %vm318_vm11, %v342_v60 }
 0x347   :  { %664 = vmatpush.bf16.msrb.mxu3 %v3382_v59 }
 0x34b   :  { %665 = vmatpush.bf16.msrb.mxu3 %v3381_v61  ;;  %v3398_v61 = vld [vmem:[%s4388_s5 + $0x70] sm:$0xff] }
 0x34f   :  { %666 = vmatpush.bf16.msrb.mxu3 %v3380_v62 }
 0x353   :  { %667 = vmatpush.bf16.msrb.mxu3 %v3379_v2  ;;  %v3397_v2 = vld [vmem:[%s4388_s5 + $0x68] sm:$0xff] }
 0x356   :  { %2844 = vmatmul.msk.bf16.vlgmr.msra.gmra.mxu3 %vm297_vm9, %v511_v5 }
 0x366   :  { %2882 = vmatmul.msk.bf16.vlgmr.msrb.gmra.mxu3 %vm86_vm0, %v3842_v12 }
 0x3c9   :  { %v360_v7 = vpop.f32.mrf.mxu3 }
 0x3d1   :  { %v362_v8 = vpop.f32.mrf.mxu3 }
 0x3d2   :  { %v365_v9 = vpack.c.bf16 %v362_v8, %v360_v7 }
 0x3d4   :  { %2857 = vmatmul.msk.bf16.vlgmr.msra.gmra.mxu2 %vm297_vm9, %v365_v9 }
 0x3d9   :  { %v528_v11 = vpop.f32.mrf.mxu3 }
 0x3da   :  { %v529_v13 = vadd.f32 %v528_v11, %v3864_v34  ;;  %v3391_v11 = vld [vmem:[%s4390_s7 + $0x10] sm:$0xff] }
 0x3dc   :  { %v533_v14 = vsel %vm318_vm11, %v529_v13, -inf }
 0x3dd   :  { %534 = vmax.xlane.f32.xlu2 %v533_v14 }
 0x3e1   :  { %v530_v15 = vpop.f32.mrf.mxu3 }
 0x3e2   :  { %v531_v16 = vadd.f32 %v530_v15, %v3871_v38 }
 0x3e4   :  { %v536_v17 = vsel %vm322_vm12, %v531_v16, -inf }
 0x3e5   :  { %537 = vmax.xlane.f32.xlu0 %v536_v17 }
 0x3e9   :  { %v669_v51 = vpop.f32.mrf.mxu3 }
 0x3ea   :  { %v674_v62 = vmul.f32 0.25, %v669_v51 }
 0x3f1   :  { %v671_v58 = vpop.f32.mrf.mxu3 }
 0x3f2   :  { %v675_v60 = vmul.f32 0.25, %v671_v58 }
 0x3f4   :  { %v770_v63 = vpack.c.bf16 %v675_v60, %v674_v62 }
 0x450   :  { %v535_v18 = vpop.xlane.xlu2 %534 }
 0x451   :  { %v539_v19 = vsub.f32 %v529_v13, %v535_v18 }
 0x453   :  { %v541_v20 = vmul.f32 1.442695, %v539_v19 }
 0x455   :  { %3523 = vpow2.f32 %v541_v20 }
 0x457   :  { %v3966_v4 = vpop.f32.mrf.mxu2 }
 0x458   :  { %v538_v21 = vpop.xlane.xlu0 %537 }
 0x459   :  { %v540_v22 = vsub.f32 %v531_v16, %v538_v21 }
 0x45b   :  { %v3524_v23 = vpop.eup %3523  ;;  %v543_v24 = vmul.f32 1.442695, %v540_v22 }
 0x45c   :  { %v545_v25 = vsel %vm318_vm11, %v3524_v23, 0.0 }
 0x45d   :  { %3525 = vpow2.f32 %v543_v24  ;;  %546 = vadd.xlane.f32.xlu1 %v545_v25 }
 0x45f   :  { %v624_v6 = vpop.f32.mrf.mxu2 }
 0x463   :  { %v3526_v26 = vpop.eup %3525 }
 0x464   :  { %v548_v27 = vsel %vm322_vm12, %v3526_v26, 0.0 }
 0x465   :  { %549 = vadd.xlane.f32.xlu2 %v548_v27 }
 0x4d0   :  { %v547_v32 = vpop.xlane.xlu1 %546 }
 0x4d1   :  { %3527 = vrcp.f32 %v547_v32 }
 0x4d7   :  { %v3528_v35 = vpop.eup %3527 }
 0x4d8   :  { %v550_v33 = vpop.xlane.xlu2 %549  ;;  %v553_v37 = vmul.f32 %v3528_v35, %v3524_v23 }
 0x4d9   :  { %3529 = vrcp.f32 %v550_v33 }
 0x4df   :  { %v3530_v36 = vpop.eup %3529 }
 0x4e0   :  { %v554_v39 = vmul.f32 %v3530_v36, %v3526_v26 }
 0x4e2   :  { %v555_v40 = vpack.c.bf16 %v554_v39, %v553_v37  ;;  %v3403_v37 = vld [vmem:[%s4389_s6 + $0x78] sm:$0xff]  ;;  %v3402_v39 = vld [vmem:[%s4389_s6 + $0x70] sm:$0xff] }
 0x4e4   :  { %2845 = vmatmul.msk.bf16.vlgmr.msra.gmra.mxu0 %vm318_vm11, %v555_v40  ;;  %v3401_v40 = vld [vmem:[%s4389_s6 + $0x68] sm:$0xff] }
 0x4e5   :  { %856 = vmatpush.bf16.msra.mxu0 %v3391_v11 }
 0x4f4   :  { %2907 = vmatmul.msk.bf16.vlgmr.msrb.gmra.mxu0 %vm86_vm0, %v3842_v12 }
 0x561   :  { %v572_v46 = vpop.f32.mrf.mxu0 }
 0x569   :  { %v574_v47 = vpop.f32.mrf.mxu0 }
 0x56a   :  { %v577_v49 = vpack.c.bf16 %v574_v47, %v572_v46 }
 0x56c   :  { %2852 = vmatmul.msk.bf16.vlgmr.msra.gmra.mxu1 %vm297_vm9, %v577_v49 }
 0x56d   :  { %902 = vmatpush.bf16.msra.mxu1 %v3395_v48 }
 0x571   :  { %v718_v52 = vpop.f32.mrf.mxu0  ;;  %903 = vmatpush.bf16.msra.mxu1 %v3394_v50 }
 0x575   :  { %904 = vmatpush.bf16.msra.mxu1 %v3393_v53 }
 0x579   :  { %v720_v55 = vpop.f32.mrf.mxu0  ;;  %905 = vmatpush.bf16.msra.mxu1 %v3392_v54 }
 0x57a   :  { %v771_v56 = vpack.c.bf16 %v720_v55, %v718_v52 }
 0x57c   :  { %v776_v59 = vsel %vm297_vm9, %v771_v56, 0  ;;  %2932 = vmatmul.msk.bf16.vlgmr.msrb.gmra.mxu1 %vm86_vm0, %v3842_v12 }
 0x57d   :  { %785 = vmatpush.bf16.xpose.msrb.mxu2 %v776_v59 }
 0x584   :  { %2933 = vmatmul.msk.bf16.vlgmr.msrb.gmra.mxu2 %vm297_vm9, %v770_v63 }
 0x585   :  { %951 = vmatpush.bf16.msra.mxu2 %v3399_v57 }
 0x589   :  { %952 = vmatpush.bf16.msra.mxu2 %v3398_v61 }
 0x58c   :  { %2966 = vmatmul.msk.bf16.vlgmr.msra.gmra.mxu1 %vm86_vm0, %v3842_v12 }
 0x58d   :  { %953 = vmatpush.bf16.msra.mxu2 %v3397_v2 }
 0x591   :  { %954 = vmatpush.bf16.msra.mxu2 %v3396_v3 }
 0x594   :  { %2991 = vmatmul.msk.bf16.vlgmr.msra.gmra.mxu2 %vm86_vm0, %v3842_v12 }
 0x5e9   :  { %v3968_v5 = vpop.f32.mrf.mxu1 }
 0x5f1   :  { %v601_v7 = vpop.f32.mrf.mxu1 }
 0x5f2   :  { %v3970_v8 = vadd.f32 %v624_v6, %v601_v7 }
 0x5f9   :  { %v765_v9 = vpop.f32.mrf.mxu1 }
 0x601   :  { %v767_v13 = vpop.f32.mrf.mxu1 }
 0x602   :  { %v815_v14 = vpack.c.bf16 %v767_v13, %v765_v9 }
 0x604   :  { %v820_v15 = vsel %vm347_vm10, %v815_v14, 0 }
 0x605   :  { %829 = vmatpush.bf16.msra.mxu3 %v820_v15 }
 0x607   :  { %v787_v16 = vpop.f32.mrf.mxu2 }
 0x608   :  { %v788_v17 = vadd.f32 %v787_v16, %v3864_v34 }
 0x609   :  { %998 = vmatpush.bf16.msrb.mxu3 %v3403_v37  ;;  %v907_v50 = vpop.f32.mrf.mxu1 }
 0x60a   :  { %v792_v18 = vsel %vm318_vm11, %v788_v17, -inf  ;;  %v912_v56 = vmul.f32 0.25, %v907_v50 }
 0x60b   :  { %793 = vmax.xlane.f32.xlu0 %v792_v18 }
 0x60d   :  { %999 = vmatpush.bf16.msrb.mxu3 %v3402_v39 }
 0x60f   :  { %v789_v19 = vpop.f32.mrf.mxu2 }
 0x610   :  { %v790_v20 = vadd.f32 %v789_v19, %v3871_v38 }
 0x611   :  { %1000 = vmatpush.bf16.msrb.mxu3 %v3401_v40  ;;  %v909_v54 = vpop.f32.mrf.mxu1 }
 0x612   :  { %v795_v21 = vsel %vm322_vm12, %v790_v20, -inf  ;;  %v913_v55 = vmul.f32 0.25, %v909_v54 }
 0x613   :  { %796 = vmax.xlane.f32.xlu1 %v795_v21 }
 0x614   :  { %v1008_v58 = vpack.c.bf16 %v913_v55, %v912_v56 }
 0x615   :  { %1001 = vmatpush.bf16.msrb.mxu3 %v3400_v41 }
 0x617   :  { %v956_v22 = vpop.f32.mrf.mxu2 }
 0x61f   :  { %v958_v23 = vpop.f32.mrf.mxu2 }
 0x620   :  { %v1009_v24 = vpack.c.bf16 %v958_v23, %v956_v22 }
 0x622   :  { %v1014_v25 = vsel %vm297_vm9, %v1009_v24, 0 }
 0x623   :  { %1023 = vmatpush.bf16.xpose.msrb.mxu0 %v1014_v25 }
 0x67e   :  { %v794_v26 = vpop.xlane.xlu0 %793 }
 0x67f   :  { %v798_v27 = vsub.f32 %v788_v17, %v794_v26  ;;  %v3404_v26 = vld [vmem:[%s4390_s7 + $0x18] sm:$0xff] }
 0x680   :  { %1094 = vmatpush.bf16.msrb.mxu2 %v3404_v26 }
 0x681   :  { %v800_v28 = vmul.f32 1.442695, %v798_v27 }
 0x683   :  { %3531 = vpow2.f32 %v800_v28 }
 0x686   :  { %v797_v29 = vpop.xlane.xlu1 %796 }
 0x687   :  { %v799_v30 = vsub.f32 %v790_v20, %v797_v29 }
 0x689   :  { %v3532_v31 = vpop.eup %3531  ;;  %v802_v32 = vmul.f32 1.442695, %v799_v30 }
 0x68a   :  { %v804_v33 = vsel %vm318_vm11, %v3532_v31, 0.0 }
 0x68b   :  { %3533 = vpow2.f32 %v802_v32  ;;  %805 = vadd.xlane.f32.xlu2 %v804_v33  ;;  %v3488_v32 = vld [vmem:[%s4391_s8] ss:$0 sm:$0xff] }
 0x691   :  { %v3534_v35 = vpop.eup %3533 }
 0x692   :  { %v807_v36 = vsel %vm322_vm12, %v3534_v35, 0.0 }
 0x693   :  { %808 = vadd.xlane.f32.xlu0 %v807_v36 }
 0x6fe   :  { %v806_v42 = vpop.xlane.xlu2 %805 }
 0x6ff   :  { %3535 = vrcp.f32 %v806_v42 }
 0x705   :  { %v3536_v44 = vpop.eup %3535 }
 0x706   :  { %v809_v43 = vpop.xlane.xlu0 %808  ;;  %v812_v46 = vmul.f32 %v3536_v44, %v3532_v31 }
 0x707   :  { %3537 = vrcp.f32 %v809_v43 }
 0x70d   :  { %v3538_v45 = vpop.eup %3537 }
 0x70e   :  { %v813_v47 = vmul.f32 %v3538_v45, %v3534_v35 }
 0x710   :  { %v814_v48 = vpack.c.bf16 %v813_v47, %v812_v46 }
 0x712   :  { %2934 = vmatmul.msk.bf16.vlgmr.msra.gmra.mxu3 %vm318_vm11, %v814_v48 }
 0x722   :  { %3016 = vmatmul.msk.bf16.vlgmr.msrb.gmra.mxu3 %vm86_vm0, %v3842_v12  ;;  %v623_v12 = vadd.f32 %v3966_v4, %v3968_v5 }
 0x795   :  { %v831_v49 = vpop.f32.mrf.mxu3 }
 0x79d   :  { %v833_v51 = vpop.f32.mrf.mxu3 }
 0x79e   :  { %v836_v52 = vpack.c.bf16 %v833_v51, %v831_v49 }
 0x7a0   :  { %2941 = vmatmul.msk.bf16.vlgmr.msra.gmra.mxu0 %vm297_vm9, %v836_v52 }
 0x7a5   :  { %v1003_v53 = vpop.f32.mrf.mxu3 }
 0x7ad   :  { %v1005_v57 = vpop.f32.mrf.mxu3 }
 0x7ae   :  { %v1053_v59 = vpack.c.bf16 %v1005_v57, %v1003_v53 }
 0x7b0   :  { %v1058_v60 = vsel %vm347_vm10, %v1053_v59, 0  ;;  %3017 = vmatmul.msk.bf16.vlgmr.msrb.gmra.mxu0 %vm297_vm9, %v1008_v58 }
 0x7b1   :  { %1067 = vmatpush.bf16.msrb.mxu1 %v1058_v60 }
 0x81d   :  { %v858_v61 = vpop.f32.mrf.mxu0 }
 0x81e   :  { %v863_v62 = vadd.f32 %v858_v61, %v623_v12 }
 0x825   :  { %v860_v63 = vpop.f32.mrf.mxu0 }
 0x826   :  { %v864_v2 = vadd.f32 %v860_v63, %v3970_v8 }
 0x82d   :  { %v1025_v3 = vpop.f32.mrf.mxu0 }
 0x82e   :  { %v1026_v6 = vadd.f32 %v1025_v3, %v3864_v34 }
 0x830   :  { %v1030_v7 = vsel %vm318_vm11, %v1026_v6, -inf }
 0x831   :  { %1031 = vmax.xlane.f32.xlu1 %v1030_v7 }
 0x835   :  { %v1027_v9 = vpop.f32.mrf.mxu0 }
 0x836   :  { %v1028_v11 = vadd.f32 %v1027_v9, %v3871_v38 }
 0x838   :  { %v1033_v13 = vsel %vm322_vm12, %v1028_v11, -inf }
 0x839   :  { %1034 = vmax.xlane.f32.xlu2 %v1033_v13 }
 0x8a4   :  { %v1032_v14 = vpop.xlane.xlu1 %1031 }
 0x8a5   :  { %v1036_v15 = vsub.f32 %v1026_v6, %v1032_v14 }
 0x8a7   :  { %v1038_v4 = vmul.f32 1.442695, %v1036_v15 }
 0x8a9   :  { %3539 = vpow2.f32 %v1038_v4  ;;  %v3490_v4 = vld [vmem:[%s4393_s10] ss:$0 sm:$0xff] }
 0x8ac   :  { %v1035_v5 = vpop.xlane.xlu2 %1034 }
 0x8ad   :  { %v1037_v16 = vsub.f32 %v1028_v11, %v1035_v5 }
 0x8af   :  { %v3540_v17 = vpop.eup %3539  ;;  %v1040_v8 = vmul.f32 1.442695, %v1037_v16 }
 0x8b0   :  { %v1042_v18 = vsel %vm318_vm11, %v3540_v17, 0.0 }
 0x8b1   :  { %3541 = vpow2.f32 %v1040_v8  ;;  %1043 = vadd.xlane.f32.xlu0 %v1042_v18 }
 0x8b7   :  { %v3542_v34 = vpop.eup %3541 }
 0x8b8   :  { %v1045_v19 = vsel %vm322_vm12, %v3542_v34, 0.0 }
 0x8b9   :  { %1046 = vadd.xlane.f32.xlu1 %v1045_v19  ;;  %v1168_v19 = vld [vmem:[%s4394_s11] sm:$0xf] }
 0x924   :  { %v1044_v38 = vpop.xlane.xlu0 %1043 }
 0x925   :  { %3543 = vrcp.f32 %v1044_v38 }
 0x92b   :  { %v3544_v21 = vpop.eup %3543 }
 0x92c   :  { %v1047_v20 = vpop.xlane.xlu1 %1046  ;;  %v1050_v23 = vmul.f32 %v3544_v21, %v3540_v17 }
 0x92d   :  { %3545 = vrcp.f32 %v1047_v20 }
 0x933   :  { %v3546_v22 = vpop.eup %3545 }
 0x934   :  { %v1051_v24 = vmul.f32 %v3546_v22, %v3542_v34 }
 0x936   :  { %v1052_v25 = vpack.c.bf16 %v1051_v24, %v1050_v23 }
 0x938   :  { %3018 = vmatmul.msk.bf16.vlgmr.msrb.gmra.mxu1 %vm318_vm11, %v1052_v25 }
 0x9b5   :  { %v1069_v27 = vpop.f32.mrf.mxu1 }
 0x9bd   :  { %v1071_v28 = vpop.f32.mrf.mxu1 }
 0x9be   :  { %v1074_v29 = vpack.c.bf16 %v1071_v28, %v1069_v27 }
 0x9c0   :  { %3025 = vmatmul.msk.bf16.vlgmr.msrb.gmra.mxu2 %vm297_vm9, %v1074_v29 }
 0xa43   :  { %v1096_v30 = vpop.f32.mrf.mxu2 }
 0xa44   :  { %v1101_v31 = vadd.f32 %v1096_v30, %v863_v62 }
 0xa46   :  { %v1103_v33 = vadd.f32 %v1101_v31, %v3733_v0 }
 0xa48   :  { %v4019_v35 = vadd.f32 %v3488_v32, %v1103_v33 }
 0xa4a   :  { %v1113_v36 = vsel %vm86_vm0, %v4019_v35, 0.0 }
 0xa4b   :  { %v1098_v37 = vpop.f32.mrf.mxu2  ;;  %1114 = vadd.xlane.f32.xlu2 %v1113_v36 }
 0xa4c   :  { %v1102_v39 = vadd.f32 %v1098_v37, %v864_v2  ;;  %v1207_v37 = vlaneseq }
 0xa4e   :  { %v1104_v40 = vadd.f32 %v1102_v39, %v3738_v1  ;;  %v4053_v39 = vand.u32 127, %v1207_v37 }
 0xa50   :  { %v4024_v41 = vadd.f32 %v3488_v32, %v1104_v40 }
 0xa52   :  { %v1116_v42 = vsel %vm90_vm1, %v4024_v41, 0.0 }
 0xa53   :  { %1117 = vadd.xlane.f32.xlu0 %v1116_v42 }
 0xabe   :  { %v1115_v43 = vpop.xlane.xlu2 %1114 }
 0xabf   :  { %v1119_v44 = vmul.f32 %v1115_v43, %v3744_v10 }
 0xac1   :  { %v1121_v0 = vsub.f32 %v4019_v35, %v1119_v44 }
 0xac3   :  { %v1123_v45 = vmul.f32 %v1121_v0, %v1121_v0 }
 0xac5   :  { %v1125_v46 = vsel %vm86_vm0, %v1123_v45, 0.0 }
 0xac6   :  { %v1118_v47 = vpop.xlane.xlu0 %1117  ;;  %1126 = vadd.xlane.f32.xlu1 %v1125_v46 }
 0xac7   :  { %v1120_v48 = vmul.f32 %v1118_v47, %v3744_v10 }
 0xac9   :  { %v1122_v1 = vsub.f32 %v4024_v41, %v1120_v48 }
 0xacb   :  { %v1124_v49 = vmul.f32 %v1122_v1, %v1122_v1 }
 0xacd   :  { %v1128_v50 = vsel %vm90_vm1, %v1124_v49, 0.0 }
 0xace   :  { %1129 = vadd.xlane.f32.xlu2 %v1128_v50 }
 0xb39   :  { %v1127_v51 = vpop.xlane.xlu1 %1126 }
 0xb3a   :  { %v1131_v52 = vmul.f32 %v1127_v51, %v3744_v10 }
 0xb3c   :  { %v1133_v53 = vadd.f32 1e-05, %v1131_v52 }
 0xb3e   :  { %3547 = vrsqrt.f32 %v1133_v53  ;;  %vm1141_vm14 = vweird.f32 %v1133_v53 }
 0xb41   :  { %v1130_v54 = vpop.xlane.xlu2 %1129 }
 0xb42   :  { %v1132_v55 = vmul.f32 %v1130_v54, %v3744_v10  ;;  %v3489_v10 = vld [vmem:[%s4392_s9] ss:$0 sm:$0xff] }
 0xb44   :  { %v3548_v56 = vpop.eup %3547  ;;  %v1134_v57 = vadd.f32 1e-05, %v1132_v55 }
 0xb45   :  { %v1136_v58 = vmul.f32 %v3548_v56, %v1133_v53  ;;  %vm1142_vm13 = vweird.f32 %v3548_v56 }
 0xb46   :  { %3549 = vrsqrt.f32 %v1134_v57  ;;  %vm1143_vm15 = vmor %vm1141_vm14, %vm1142_vm13  ;;  %vm1151_vm3 = vweird.f32 %v1134_v57 }
 0xb47   :  { %v1137_v59 = vmul.f32 %v3548_v56, %v1136_v58 }
 0xb49   :  { %v1138_v60 = vmul.f32 0.5, %v1137_v59 }
 0xb4b   :  { %v1139_v12 = vsub.f32 1.5, %v1138_v60 }
 0xb4c   :  { %v3550_v61 = vpop.eup %3549 }
 0xb4d   :  { %v1140_v62 = vmul.f32 %v3548_v56, %v1139_v12  ;;  %v1146_v63 = vmul.f32 %v3550_v61, %v1134_v57  ;;  %vm1152_vm2 = vweird.f32 %v3550_v61 }
 0xb4e   :  { %vm1153_vm4 = vmor %vm1151_vm3, %vm1152_vm2 }
 0xb4f   :  { %v1147_v2 = vmul.f32 %v3550_v61, %v1146_v63  ;;  %v1144_v3 = vsel %vm1143_vm15, %v3548_v56, %v1140_v62 }
 0xb50   :  { %v1155_v9 = vmul.f32 %v1144_v3, %v1121_v0 }
 0xb51   :  { %v1148_v6 = vmul.f32 0.5, %v1147_v2  ;;  %v3621_v2 = vmov 0.0  }
 0xb52   :  { %v1160_v14 = vmul.f32 %v3489_v10, %v1155_v9 }
 0xb53   :  { %v1149_v7 = vsub.f32 1.5, %v1148_v6 }
 0xb54   :  { %v1165_v16 = vadd.f32 %v3490_v4, %v1160_v14 }
 0xb55   :  { %v1150_v11 = vmul.f32 %v3550_v61, %v1149_v7 }
 0xb57   :  { %v1154_v13 = vsel %vm1153_vm4, %v3550_v61, %v1150_v11  ;;  %vm1347_vm4 = vcmp.eq.s32.totalorder %v4053_v39, 1 }
 0xb58   :  { %v1156_v15 = vmul.f32 %v1154_v13, %v1122_v1  ;;  %v4060_v1 = vshrl.u32 %v1207_v37, 7 }
 0xb5a   :  { %v1161_v5 = vmul.f32 %v3489_v10, %v1156_v15  ;;  %3483 = vset.pattern.permute.xlu0 %v4060_v1  ;;  %3484 = vset.pattern.permute.xlu1 %v4060_v1  ;;  %vm1241_vm15 = vcmp.eq.s32.totalorder %v4060_v1, 0  ;;  %vm1312_vm2 = vcmp.eq.s32.totalorder %v4060_v1, 1 }
 0xb5b   :  { %3485 = vset.pattern.permute.xlu2 %v4060_v1  ;;  %v3028_v15 = vsel %vm1241_vm15, 1.0, %v3621_v2 }
 0xb5c   :  { %v1166_v17 = vadd.f32 %v3490_v4, %v1161_v5 }
 0xb5e   :  { %v4042_v8 = vpack.c.bf16 %v1166_v17, %v1165_v16 }
 0xb60   :  { %v1173_v18 = vsel %vm86_vm0, %v4042_v8, 0  ;;  %v1439_v34 = vsel %vm347_vm10, %v4042_v8, 0 }
 0xb61   :  { %1182 = vmatpush.bf16.xpose.msra.mxu3 %v1173_v18  ;;  %1448 = vmatpush.bf16.msra.mxu0 %v1439_v34 }
 0xb68   :  { %3026 = vmatmul.msk.bf16.vlgmr.msra.gmra.mxu3 %vm86_vm0, %v1168_v19 }
 0xbeb   :  { %v1184_v38 = vpop.f32.mrf.mxu3 }
 0xbec   :  { %v3027_v20 = vmul.f32 -1.442695, %v1184_v38 }
 0xbee   :  { %3551 = vpow2.f32 %v3027_v20 }
 0xbf3   :  { %v1186_v21 = vpop.f32.mrf.mxu3 }
 0xbf4   :  { %v3552_v22 = vpop.eup %3551 }
 0xbf5   :  { %v1191_v23 = vadd.f32 1.0, %v3552_v22 }
 0xbf7   :  { %3553 = vrcp.f32 %v1191_v23  ;;  %v1203_v27 = vand.u32 2147483648, %v1191_v23  ;;  %v1201_v29 = vand.u32 2147483647, %v1191_v23  ;;  %vm1197_vm6 = vweird.f32 %v1191_v23 }
 0xbf9   :  { %v1204_v31 = vor.u32 1.1754944e-38, %v1203_v27  ;;  %vm1202_vm8 = vcmp.eq.f32.partialorder %v1201_v29, 8.507059e+37 }
 0xbfd   :  { %v3554_v24 = vpop.eup %3553 }
 0xbfe   :  { %v1193_v25 = vmul.f32 %v3554_v24, %v1191_v23  ;;  %vm1198_vm5 = vweird.f32 %v3554_v24 }
 0xbff   :  { %vm1199_vm7 = vmor %vm1197_vm6, %vm1198_vm5  ;;  %vm1276_vm5 = vcmp.eq.s32.totalorder %v4053_v39, 0  ;;  %vm1418_vm6 = vcmp.eq.s32.totalorder %v4053_v39, 2 }
 0xc00   :  { %v1194_v26 = vsub.f32 1.0, %v1193_v25 }
 0xc02   :  { %v1195_v28 = vmul.f32 %v3554_v24, %v1194_v26 }
 0xc04   :  { %v1196_v30 = vadd.f32 %v3554_v24, %v1195_v28 }
 0xc06   :  { %v1200_v32 = vsel %vm1199_vm7, %v3554_v24, %v1196_v30 }
 0xc07   :  { %v1205_v33 = vsel %vm1202_vm8, %v1204_v31, %v1200_v32 }
 0xc08   :  { %v1211_v36 = vsel %vm318_vm11, %v1205_v33, -inf }
 0xc09   :  { %1212 = vmax.xlane.f32.xlu0 %v1211_v36 }
 0xc7c   :  { %v4055_v40 = vpop.xlane.xlu0 %1212 }
 0xc7d   :  { %vm1214_vm9 = vcmp.eq.f32.partialorder %v1205_v33, %v4055_v40 }
 0xc7e   :  { %v1215_v42 = vsel %vm1214_vm9, %v4053_v39, 10  ;;  %vm1383_vm9 = vcmp.eq.s32.totalorder %v4060_v1, 2 }
 0xc7f   :  { %v1216_v43 = vsel %vm318_vm11, %v1215_v42, 2147483647 }
 0xc80   :  { %v1218_v44 = vshra.s32 %v1216_v43, 16  ;;  %v1217_v45 = vand.u32 65535, %v1216_v43 }
 0xc82   :  { %v1220_v0 = vcvt.s32.f32 %v1218_v44  ;;  %v1219_v47 = vcvt.s32.f32 %v1217_v45 }
 0xc84   :  { %1221 = vmin.xlane.f32.xlu1 %v1220_v0 }
 0xcf7   :  { %v1222_v46 = vpop.xlane.xlu1 %1221 }
 0xcf8   :  { %vm1223_vm10 = vcmp.eq.f32.partialorder %v1220_v0, %v1222_v46  ;;  %v1228_v49 = vcvt.f32.s32 %v1222_v46 }
 0xcf9   :  { %v1224_v48 = vsel %vm1223_vm10, %v1219_v47, inf }
 0xcfa   :  { %1225 = vmin.xlane.f32.xlu2 %v1224_v48  ;;  %v1229_v51 = vshll.u32 %v1228_v49, 16 }
 0xd6d   :  { %v1226_v50 = vpop.xlane.xlu2 %1225 }
 0xd6e   :  { %v1227_v52 = vcvt.f32.s32 %v1226_v50 }
 0xd70   :  { %v1230_v53 = vadd.s32 %v1229_v51, %v1227_v52 }
 0xd72   :  { %vm1231_vm12 = vcmp.eq.s32.totalorder %v4053_v39, %v1230_v53 }
 0xd73   :  { %v1281_v54 = vsel %vm1231_vm12, -1e+30, %v1205_v33  ;;  %v1232_v3 = vsel %vm1231_vm12, 1.0, %v3621_v2  ;;  %v3030_v33 = vsel %vm1312_vm2, 1.0, %v3621_v2 }
 0xd74   :  { %v1282_v55 = vsel %vm318_vm11, %v1281_v54, -inf  ;;  %v1235_v6 = vrot.slane %v1232_v3, 2  ;;  %v1236_v7 = vrot.slane %v1232_v3, 3  ;;  %v1234_v10 = vrot.slane %v1232_v3, 1 }
 0xd75   :  { %1283 = vmax.xlane.f32.xlu0 %v1282_v55  ;;  %v1237_v11 = vrot.slane %v1232_v3, 4  ;;  %v1238_v13 = vrot.slane %v1232_v3, 5  ;;  %v1239_v14 = vrot.slane %v1232_v3, 6  ;;  %v1244_v4 = vperm.slane %v1232_v3, 0 }
 0xd76   :  { %v1246_v16 = vperm.slane %v1235_v6, 0  ;;  %v1247_v17 = vperm.slane %v1236_v7, 0  ;;  %v1245_v18 = vperm.slane %v1234_v10, 0  ;;  %v1240_v34 = vrot.slane %v1232_v3, 7 }
 0xd77   :  { %v1248_v20 = vperm.slane %v1237_v11, 0  ;;  %v1249_v21 = vperm.slane %v1238_v13, 0  ;;  %v1250_v22 = vperm.slane %v1239_v14, 0  ;;  %v1260_v26 = vmul.f32 %v3028_v15, %v1244_v4 }
 0xd78   :  { %v1262_v24 = vmul.f32 %v3028_v15, %v1246_v16  ;;  %v1263_v25 = vmul.f32 %v3028_v15, %v1247_v17  ;;  %v1261_v27 = vmul.f32 %v3028_v15, %v1245_v18  ;;  %v1251_v30 = vperm.slane %v1240_v34, 0 }
 0xd79   :  { %v1264_v28 = vmul.f32 %v3028_v15, %v1248_v20  ;;  %v1265_v29 = vmul.f32 %v3028_v15, %v1249_v21  ;;  %v1266_v36 = vmul.f32 %v3028_v15, %v1250_v22  ;;  %v3033_v17 = vsel %vm1418_vm6, 1.0, %v3621_v2 }
 0xd7a   :  { %v1267_v7 = vmul.f32 %v3028_v15, %v1251_v30  ;;  %v3029_v15 = vsel %vm1276_vm5, 1.0, %v3621_v2 }
 0xd7b   :  { %v1279_v18 = vmul.f32 %v3029_v15, %v4055_v40 }
 0xde8   :  { %v4069_v56 = vpop.xlane.xlu0 %1283 }
 0xde9   :  { %vm1285_vm13 = vcmp.eq.f32.partialorder %v1281_v54, %v4069_v56 }
 0xdea   :  { %v1286_v57 = vsel %vm1285_vm13, %v4053_v39, 10 }
 0xdeb   :  { %v1287_v58 = vsel %vm318_vm11, %v1286_v57, 2147483647 }
 0xdec   :  { %v1289_v59 = vshra.s32 %v1287_v58, 16  ;;  %v1288_v12 = vand.u32 65535, %v1287_v58 }
 0xdee   :  { %v1291_v60 = vcvt.s32.f32 %v1289_v59  ;;  %v1290_v62 = vcvt.s32.f32 %v1288_v12 }
 0xdf0   :  { %1292 = vmin.xlane.f32.xlu1 %v1291_v60 }
 0xe63   :  { %v1293_v61 = vpop.xlane.xlu1 %1292 }
 0xe64   :  { %vm1294_vm14 = vcmp.eq.f32.partialorder %v1291_v60, %v1293_v61  ;;  %v1299_v9 = vcvt.f32.s32 %v1293_v61 }
 0xe65   :  { %v1295_v63 = vsel %vm1294_vm14, %v1290_v62, inf }
 0xe66   :  { %1296 = vmin.xlane.f32.xlu2 %v1295_v63  ;;  %v1300_v19 = vshll.u32 %v1299_v9, 16 }
 0xed9   :  { %v1297_v5 = vpop.xlane.xlu2 %1296 }
 0xeda   :  { %v1298_v38 = vcvt.f32.s32 %v1297_v5  ;;  %v3031_v5 = vsel %vm1347_vm4, 1.0, %v3621_v2 }
 0xedb   :  { %v1350_v16 = vmul.f32 %v3031_v5, %v4069_v56 }
 0xedc   :  { %v1301_v23 = vadd.s32 %v1300_v19, %v1298_v38 }
 0xedd   :  { %v1351_v19 = vadd.f32 %v1350_v16, %v1279_v18 }
 0xede   :  { %vm1302_vm3 = vcmp.eq.s32.totalorder %v4053_v39, %v1301_v23 }
 0xedf   :  { %v1352_v31 = vsel %vm1302_vm3, -1e+30, %v1281_v54  ;;  %v1303_v32 = vsel %vm1302_vm3, 1.0, %v3621_v2 }
 0xee0   :  { %v1353_v37 = vsel %vm318_vm11, %v1352_v31, -inf  ;;  %v1305_v42 = vrot.slane %v1303_v32, 1  ;;  %v1315_v43 = vperm.slane %v1303_v32, 0  ;;  %v1306_v44 = vrot.slane %v1303_v32, 2 }
 0xee1   :  { %1354 = vmax.xlane.f32.xlu0 %v1353_v37  ;;  %v1307_v0 = vrot.slane %v1303_v32, 3  ;;  %v1308_v45 = vrot.slane %v1303_v32, 4  ;;  %v1309_v46 = vrot.slane %v1303_v32, 5  ;;  %v1310_v47 = vrot.slane %v1303_v32, 6 }
 0xee2   :  { %v1317_v48 = vperm.slane %v1306_v44, 0  ;;  %v1316_v49 = vperm.slane %v1305_v42, 0  ;;  %v1331_v50 = vmul.f32 %v3030_v33, %v1315_v43  ;;  %v1311_v51 = vrot.slane %v1303_v32, 7 }
 0xee3   :  { %v1318_v52 = vperm.slane %v1307_v0, 0  ;;  %v1319_v53 = vperm.slane %v1308_v45, 0  ;;  %v1320_v54 = vperm.slane %v1309_v46, 0  ;;  %v1321_v55 = vperm.slane %v1310_v47, 0 }
 0xee4   :  { %v1333_v57 = vmul.f32 %v3030_v33, %v1317_v48  ;;  %v1332_v58 = vmul.f32 %v3030_v33, %v1316_v49  ;;  %v4084_v59 = vadd.f32 %v1331_v50, %v1260_v26  ;;  %v1322_v60 = vperm.slane %v1311_v51, 0 }
 0xee5   :  { %v1334_v12 = vmul.f32 %v3030_v33, %v1318_v52  ;;  %v1335_v61 = vmul.f32 %v3030_v33, %v1319_v53  ;;  %v1336_v62 = vmul.f32 %v3030_v33, %v1320_v54  ;;  %v1337_v63 = vmul.f32 %v3030_v33, %v1321_v55 }
 0xee6   :  { %v4086_v3 = vadd.f32 %v1333_v57, %v1262_v24  ;;  %v4088_v6 = vadd.f32 %v1332_v58, %v1261_v27  ;;  %v1338_v10 = vmul.f32 %v3030_v33, %v1322_v60  ;;  %v3032_v49 = vsel %vm1383_vm9, 1.0, %v3621_v2 }
 0xee7   :  { %v4090_v9 = vadd.f32 %v1334_v12, %v1263_v25  ;;  %v4092_v11 = vadd.f32 %v1335_v61, %v1264_v28  ;;  %v4094_v13 = vadd.f32 %v1336_v62, %v1265_v29  ;;  %v4096_v14 = vadd.f32 %v1337_v63, %v1266_v36 }
 0xee8   :  { %v4098_v4 = vadd.f32 %v1338_v10, %v1267_v7 }
 0xf54   :  { %v1355_v34 = vpop.xlane.xlu0 %1354 }
 0xf55   :  { %vm1356_vm7 = vcmp.eq.f32.partialorder %v1352_v31, %v1355_v34  ;;  %v1421_v38 = vmul.f32 %v3033_v17, %v1355_v34 }
 0xf56   :  { %v1357_v20 = vsel %vm1356_vm7, %v4053_v39, 10 }
 0xf57   :  { %v1422_v21 = vadd.f32 %v1421_v38, %v1351_v19  ;;  %v1358_v22 = vsel %vm318_vm11, %v1357_v20, 2147483647 }
 0xf58   :  { %v1360_v23 = vshra.s32 %v1358_v22, 16  ;;  %v1359_v28 = vand.u32 65535, %v1358_v22 }
 0xf59   :  { %v2478_v24 = vperm.slane %v1422_v21, 0  ;;  %v2527_v26 = vperm.slane %v1422_v21, 7  ;;  %v2485_v56 = vperm.slane %v1422_v21, 1  ;;  %v2506_v27 = vperm.slane %v1422_v21, 4 }
 0xf5a   :  { %v1362_v25 = vcvt.s32.f32 %v1360_v23  ;;  %v2520_v40 = vperm.slane %v1422_v21, 6  ;;  %v1361_v30 = vcvt.s32.f32 %v1359_v28  ;;  %v2492_v32 = vperm.slane %v1422_v21, 2 }
 0xf5b   :  { %2483 = vperm.xlu0 %3483, %v2478_v24   ;;  %v2499_v33 = vperm.slane %v1422_v21, 3  ;;  %v2513_v36 = vperm.slane %v1422_v21, 5 }
 0xf5c   :  { %1363 = vmin.xlane.f32.xlu1 %v1362_v25 }
 0xf63   :  { %2532 = vperm.xlu0 %3483, %v2527_v26  }
 0xf75   :  { %2490 = vperm.xlu1 %3484, %v2485_v56  }
 0xf7d   :  { %2511 = vperm.xlu1 %3484, %v2506_v27  }
 0xf85   :  { %2525 = vperm.xlu1 %3484, %v2520_v40  }
 0xfcd   :  { %v2484_v47 = vpop.permute.xlu0 %2483 }
 0xfcf   :  { %v1364_v29 = vpop.xlane.xlu1 %1363 }
 0xfd0   :  { %vm1365_vm8 = vcmp.eq.f32.partialorder %v1362_v25, %v1364_v29  ;;  %v1370_v42 = vcvt.f32.s32 %v1364_v29 }
 0xfd1   :  { %v1366_v31 = vsel %vm1365_vm8, %v1361_v30, inf }
 0xfd2   :  { %1367 = vmin.xlane.f32.xlu2 %v1366_v31  ;;  %v1371_v44 = vshll.u32 %v1370_v42, 16 }
 0xfd5   :  { %v2533_v28 = vpop.permute.xlu0 %2532 }
 0xfe7   :  { %v2491_v37 = vpop.permute.xlu1 %2490 }
 0xfea   :  { %2497 = vperm.xlu2 %3485, %v2492_v32  }
 0xfef   :  { %v2512_v46 = vpop.permute.xlu1 %2511 }
 0xff2   :  { %2504 = vperm.xlu2 %3485, %v2499_v33  }
 0xff7   :  { %v2526_v26 = vpop.permute.xlu1 %2525 }
 0xffa   :  { %2518 = vperm.xlu2 %3485, %v2513_v36  }
0x1045   :  { %v1368_v43 = vpop.xlane.xlu2 %1367 }
0x1046   :  { %v1369_v0 = vcvt.f32.s32 %v1368_v43  ;;  %v3412_v43 = vld [vmem:[%s4395_s12 + $0x38] sm:$0xff] }
0x1047   :  { %1645 = vmatpush.bf16.msra.mxu2 %v3412_v43  ;;  %v3492_v43 = vld [vmem:[%s4396_s13 + $0x1] ss:$0 sm:$0xff] }
0x1048   :  { %v1372_v45 = vadd.s32 %v1371_v44, %v1369_v0  ;;  %v3407_v44 = vld [vmem:[%s4395_s12 + $0x10] sm:$0xff]  ;;  %v3406_v0 = vld [vmem:[%s4395_s12 + $0x8] sm:$0xff] }
0x104a   :  { %vm1373_vm10 = vcmp.eq.s32.totalorder %v4053_v39, %v1372_v45  ;;  %v3405_v45 = vld [vmem:[%s4395_s12] sm:$0xff] }
0x104b   :  { %v1374_v48 = vsel %vm1373_vm10, 1.0, %v3621_v2 }
0x104c   :  { %v1377_v50 = vrot.slane %v1374_v48, 2  ;;  %v1378_v51 = vrot.slane %v1374_v48, 3  ;;  %v1376_v52 = vrot.slane %v1374_v48, 1  ;;  %v1386_v53 = vperm.slane %v1374_v48, 0 }
0x104d   :  { %v2498_v54 = vpop.permute.xlu2 %2497  ;;  %v1379_v55 = vrot.slane %v1374_v48, 4  ;;  %v1380_v57 = vrot.slane %v1374_v48, 5  ;;  %v1381_v58 = vrot.slane %v1374_v48, 6  ;;  %v1382_v60 = vrot.slane %v1374_v48, 7  ;;  %v3416_v48 = vld [vmem:[%s4395_s12 + $0x58] sm:$0xff] }
0x104e   :  { %v1388_v12 = vperm.slane %v1377_v50, 0  ;;  %v1389_v61 = vperm.slane %v1378_v51, 0  ;;  %v1387_v1 = vperm.slane %v1376_v52, 0  ;;  %v1402_v62 = vmul.f32 %v3032_v49, %v1386_v53  ;;  %1685 = vmatpush.bf16.msrb.mxu3 %v3416_v48  ;;  %v3415_v50 = vld [vmem:[%s4395_s12 + $0x50] sm:$0xff]  ;;  %v3414_v51 = vld [vmem:[%s4395_s12 + $0x48] sm:$0xff]  ;;  %v3420_v52 = vld [vmem:[%s4395_s12 + $0x78] sm:$0xff] }
0x104f   :  { %v1390_v63 = vperm.slane %v1379_v55, 0  ;;  %v1391_v39 = vperm.slane %v1380_v57, 0  ;;  %v1392_v7 = vperm.slane %v1381_v58, 0  ;;  %v1393_v10 = vperm.slane %v1382_v60, 0  ;;  %v3413_v53 = vld [vmem:[%s4395_s12 + $0x40] sm:$0xff]  ;;  %v3418_v55 = vld [vmem:[%s4395_s12 + $0x68] sm:$0xff] }
0x1050   :  { %v1404_v5 = vmul.f32 %v3032_v49, %v1388_v12  ;;  %v1405_v15 = vmul.f32 %v3032_v49, %v1389_v61  ;;  %v1403_v2 = vmul.f32 %v3032_v49, %v1387_v1  ;;  %v1410_v16 = vadd.f32 %v1402_v62, %v4084_v59  ;;  %v3424_v57 = vld [vmem:[%s4395_s12 + $0x98] sm:$0xff]  ;;  %v3417_v58 = vld [vmem:[%s4395_s12 + $0x60] sm:$0xff]  ;;  %v3423_v60 = vld [vmem:[%s4395_s12 + $0x90] sm:$0xff] }
0x1051   :  { %v1406_v17 = vmul.f32 %v3032_v49, %v1390_v63  ;;  %v1407_v18 = vmul.f32 %v3032_v49, %v1391_v39  ;;  %v1408_v34 = vmul.f32 %v3032_v49, %v1392_v7  ;;  %v1409_v19 = vmul.f32 %v3032_v49, %v1393_v10  ;;  %v3409_v49 = vld [vmem:[%s4395_s12 + $0x20] sm:$0xff]  ;;  %v3422_v12 = vld [vmem:[%s4395_s12 + $0x88] sm:$0xff]  ;;  %v3428_v61 = vld [vmem:[%s4395_s12 + $0xb8] sm:$0xff] }
0x1052   :  { %v1412_v38 = vadd.f32 %v1404_v5, %v4086_v3  ;;  %v1413_v20 = vadd.f32 %v1405_v15, %v4090_v9  ;;  %v1411_v21 = vadd.f32 %v1403_v2, %v4088_v6  ;;  %v2534_v56 = vmul.f32 %v2484_v47, %v1410_v16  ;;  %v3410_v47 = vld [vmem:[%s4395_s12 + $0x28] sm:$0xff]  ;;  %1686 = vmatpush.bf16.msrb.mxu3 %v3415_v50  ;;  %v3421_v62 = vld [vmem:[%s4395_s12 + $0x80] sm:$0xff]  ;;  %v3427_v63 = vld [vmem:[%s4395_s12 + $0xb0] sm:$0xff] }
0x1053   :  { %v1414_v22 = vadd.f32 %v1406_v17, %v4092_v11  ;;  %v1415_v23 = vadd.f32 %v1407_v18, %v4094_v13  ;;  %v1416_v24 = vadd.f32 %v1408_v34, %v4096_v14  ;;  %v1417_v25 = vadd.f32 %v1409_v19, %v4098_v4  ;;  %v3426_v7 = vld [vmem:[%s4395_s12 + $0xa8] sm:$0xff]  ;;  %v3432_v10 = vld [vmem:[%s4395_s12 + $0xd8] sm:$0xff]  ;;  %v3425_v15 = vld [vmem:[%s4395_s12 + $0xa0] sm:$0xff] }
0x1054   :  { %v1423_v59 = vpack.c.bf16 %v1411_v21, %v1410_v16  ;;  %v2535_v27 = vmul.f32 %v2491_v37, %v1411_v21  ;;  %v1424_v40 = vpack.c.bf16 %v1413_v20, %v1412_v38  ;;  %v2536_v31 = vmul.f32 %v2498_v54, %v1412_v38  ;;  %v3408_v37 = vld [vmem:[%s4395_s12 + $0x18] sm:$0xff]  ;;  %v3419_v54 = vld [vmem:[%s4395_s12 + $0x70] sm:$0xff]  ;;  %v3430_v17 = vld [vmem:[%s4395_s12 + $0xc8] sm:$0xff] }
0x1055   :  { %v2505_v29 = vpop.permute.xlu2 %2504  ;;  %v1425_v3 = vpack.c.bf16 %v1415_v23, %v1414_v22  ;;  %v1426_v30 = vpack.c.bf16 %v1417_v25, %v1416_v24  ;;  %v2540_v9 = vmul.f32 %v2526_v26, %v1416_v24  ;;  %v2541_v13 = vmul.f32 %v2533_v28, %v1417_v25  ;;  %1605 = vmatpush.bf16.msra.mxu1 %v3408_v37  ;;  %v3431_v2 = vld [vmem:[%s4395_s12 + $0xd0] sm:$0xff]  ;;  %v3436_v18 = vld [vmem:[%s4395_s12 + $0xf8] sm:$0xff]  ;;  %v3429_v19 = vld [vmem:[%s4395_s12 + $0xc0] sm:$0xff] }
0x1056   :  { %v2537_v6 = vmul.f32 %v2505_v29, %v1413_v20  ;;  %3034 = vmatmul.msk.bf16.vlgmr.msra.gmra.mxu0 %vm318_vm11, %v1423_v59  ;;  %v2542_v11 = vpack.c.bf16 %v2535_v27, %v2534_v56  ;;  %v2538_v33 = vmul.f32 %v2512_v46, %v1414_v22  ;;  %v3411_v46 = vld [vmem:[%s4395_s12 + $0x30] sm:$0xff]  ;;  %1687 = vmatpush.bf16.msrb.mxu3 %v3414_v51  ;;  %v3434_v21 = vld [vmem:[%s4395_s12 + $0xe8] sm:$0xff] }
0x1057   :  { %v2545_v14 = vpack.c.bf16 %v2541_v13, %v2540_v9  ;;  %1646 = vmatpush.bf16.msra.mxu2 %v3411_v46  ;;  %v3435_v38 = vld [vmem:[%s4395_s12 + $0xf0] sm:$0xff]  ;;  %v3438_v9 = vld [vmem:[#allocation2 + $0x8] sm:$0xff]  ;;  %v3441_v46 = vld [vmem:[#allocation2 + $0x20] sm:$0xff] }
0x1058   :  { %v2543_v32 = vpack.c.bf16 %v2537_v6, %v2536_v31  ;;  %2550 = vxpose.xlu2.c.b16.start [1/4] (short) (narrow) %v2542_v11, 16  ;;  %v3491_v31 = vld [vmem:[%s4396_s13] ss:$0 sm:$0xff]  ;;  %v3446_v51 = vld [vmem:[#allocation2 + $0x48] sm:$0xff] }
0x1059   :  { %1606 = vmatpush.bf16.msra.mxu1 %v3407_v44  ;;  %v3437_v11 = vld [vmem:[#allocation2] sm:$0xff] }
0x105a   :  { %1688 = vmatpush.bf16.msrb.mxu3 %v3413_v53 }
0x105b   :  { %1647 = vmatpush.bf16.msra.mxu2 %v3410_v47  ;;  %v3447_v47 = vld [vmem:[#allocation2 + $0x50] sm:$0xff] }
0x105d   :  { %v2519_v4 = vpop.permute.xlu2 %2518  ;;  %1607 = vmatpush.bf16.msra.mxu1 %v3406_v0  ;;  %v3452_v0 = vld [vmem:[#allocation2 + $0x78] sm:$0xff] }
0x105e   :  { %v2539_v36 = vmul.f32 %v2519_v4, %v1415_v23  ;;  %1805 = vmatpush.bf16.msra.mxu3 %v3428_v61  ;;  %v3433_v23 = vld [vmem:[%s4395_s12 + $0xe0] sm:$0xff]  ;;  %v3443_v4 = vld [vmem:[#allocation2 + $0x30] sm:$0xff] }
0x105f   :  { %1648 = vmatpush.bf16.msra.mxu2 %v3409_v49  ;;  %v3451_v49 = vld [vmem:[#allocation2 + $0x70] sm:$0xff] }
0x1060   :  { %v2544_v42 = vpack.c.bf16 %v2539_v36, %v2538_v33  ;;  %v3442_v36 = vld [vmem:[#allocation2 + $0x28] sm:$0xff] }
0x1061   :  { %1608 = vmatpush.bf16.msra.mxu1 %v3405_v45 }
0x1062   :  { %1806 = vmatpush.bf16.msra.mxu3 %v3427_v63 }
0x1063   :  { %1765 = vmatpush.bf16.msrb.mxu2 %v3424_v57  ;;  %v3494_v57 = vld [vmem:[%s4396_s13 + $0x3] ss:$0 sm:$0xff] }
0x1065   :  { %1725 = vmatpush.bf16.msrb.mxu1 %v3420_v52  ;;  %v3493_v52 = vld [vmem:[%s4396_s13 + $0x2] ss:$0 sm:$0xff] }
0x1066   :  { %3035 = vmatmul.msk.bf16.gmra.mxu0 %vm318_vm11, %v1424_v40  ;;  %1807 = vmatpush.bf16.msra.mxu3 %v3426_v7  ;;  %v3449_v7 = vld [vmem:[#allocation2 + $0x60] sm:$0xff] }
0x1067   :  { %1766 = vmatpush.bf16.msrb.mxu2 %v3423_v60 }
0x1068   :  { %2551 = vxpose.xlu2.c.b16.cont [2/4] (short) (narrow) %v2543_v32, 16  ;;  %v3444_v32 = vld [vmem:[#allocation2 + $0x38] sm:$0xff] }
0x1069   :  { %1726 = vmatpush.bf16.msrb.mxu1 %v3419_v54  ;;  %v3450_v54 = vld [vmem:[#allocation2 + $0x68] sm:$0xff] }
0x106a   :  { %1808 = vmatpush.bf16.msra.mxu3 %v3425_v15 }
0x106b   :  { %1767 = vmatpush.bf16.msrb.mxu2 %v3422_v12  ;;  %v3445_v12 = vld [vmem:[#allocation2 + $0x40] sm:$0xff] }
0x106d   :  { %1727 = vmatpush.bf16.msrb.mxu1 %v3418_v55 }
0x106f   :  { %1768 = vmatpush.bf16.msrb.mxu2 %v3421_v62 }
0x1071   :  { %1728 = vmatpush.bf16.msrb.mxu1 %v3417_v58 }
0x1076   :  { %3036 = vmatmul.msk.bf16.gmra.mxu0 %vm318_vm11, %v1425_v3  ;;  %v3440_v3 = vld [vmem:[#allocation2 + $0x18] sm:$0xff] }
0x1078   :  { %2552 = vxpose.xlu2.c.b16.cont [3/4] (short) (narrow) %v2544_v42, 16  ;;  %v3448_v42 = vld [vmem:[#allocation2 + $0x58] sm:$0xff] }
0x1086   :  { %3037 = vmatmul.msk.bf16.gmra.mxu0 %vm318_vm11, %v1426_v30  ;;  %v3439_v30 = vld [vmem:[#allocation2 + $0x10] sm:$0xff] }
0x1088   :  { %2553 = vxpose.xlu2.c.b16.end [4/4] (short) (narrow) %v2545_v14, 16 }
0x10d3   :  { %v1450_v1 = vpop.f32.mrf.mxu0 }
0x10d4   :  { %v1470_v39 = vpack.c.bf16 %v1450_v1, %v1450_v1 }
0x10d6   :  { %3054 = vmatmul.msk.bf16.vlgmr.msra.gmra.mxu1 %vm86_vm0, %v1470_v39 }
0x10d7   :  { %1845 = vmatpush.bf16.msra.mxu1 %v3432_v10 }
0x10db   :  { %v1452_v5 = vpop.f32.mrf.mxu0  ;;  %1846 = vmatpush.bf16.msra.mxu1 %v3431_v2 }
0x10dc   :  { %v1471_v16 = vpack.c.bf16 %v1452_v5, %v1452_v5 }
0x10de   :  { %3071 = vmatmul.msk.bf16.vlgmr.msra.gmra.mxu2 %vm86_vm0, %v1471_v16 }
0x10df   :  { %1885 = vmatpush.bf16.msra.mxu2 %v3436_v18  ;;  %1847 = vmatpush.bf16.msra.mxu1 %v3430_v17  ;;  %v3456_v17 = vld [vmem:[#allocation2 + $0x98] sm:$0xff] }
0x10e0   :  { %2349 = vmatpush.bf16.msrb.mxu0 %v3456_v17 }
0x10e3   :  { %v1455_v34 = vpop.f32.mrf.mxu0  ;;  %1848 = vmatpush.bf16.msra.mxu1 %v3429_v19  ;;  %1886 = vmatpush.bf16.msra.mxu2 %v3435_v38 }
0x10e4   :  { %v1472_v20 = vpack.c.bf16 %v1455_v34, %v1455_v34 }
0x10e6   :  { %3088 = vmatmul.msk.bf16.vlgmr.msrb.gmra.mxu3 %vm86_vm0, %v1472_v20 }
0x10e7   :  { %1887 = vmatpush.bf16.msra.mxu2 %v3434_v21  ;;  %2189 = vmatpush.bf16.msrb.mxu3 %v3440_v3  ;;  %v3495_v3 = vld [vmem:[%s4396_s13 + $0x4] ss:$0 sm:$0xff] }
0x10eb   :  { %v1457_v22 = vpop.f32.mrf.mxu0  ;;  %1888 = vmatpush.bf16.msra.mxu2 %v3433_v23  ;;  %2190 = vmatpush.bf16.msrb.mxu3 %v3439_v30  ;;  %v3464_v30 = vld [vmem:[#allocation2 + $0xd8] sm:$0xff] }
0x10ec   :  { %v1473_v24 = vpack.c.bf16 %v1457_v22, %v1457_v22  ;;  %v3455_v22 = vld [vmem:[#allocation2 + $0x90] sm:$0xff] }
0x10ed   :  { %2350 = vmatpush.bf16.msrb.mxu0 %v3455_v22  ;;  %v3472_v22 = vld [vmem:[%s4399_s16 + $0x18] sm:$0xff] }
0x10ee   :  { %3105 = vmatmul.msk.bf16.vlgmr.msrb.gmra.mxu1 %vm86_vm0, %v1473_v24 }
0x10ef   :  { %2191 = vmatpush.bf16.msrb.mxu3 %v3438_v9  ;;  %2229 = vmatpush.bf16.msrb.mxu1 %v3444_v32  ;;  %v3459_v32 = vld [vmem:[#allocation2 + $0xb0] sm:$0xff] }
0x10f3   :  { %v1460_v25 = vpop.f32.mrf.mxu0  ;;  %2192 = vmatpush.bf16.msrb.mxu3 %v3437_v11  ;;  %2230 = vmatpush.bf16.msrb.mxu1 %v3443_v4 }
0x10f4   :  { %v1474_v26 = vpack.c.bf16 %v1460_v25, %v1460_v25 }
0x10f6   :  { %3122 = vmatmul.msk.bf16.vlgmr.msrb.gmra.mxu2 %vm86_vm0, %v1474_v26 }
0x10f7   :  { %2231 = vmatpush.bf16.msrb.mxu1 %v3442_v36  ;;  %2269 = vmatpush.bf16.msrb.mxu2 %v3448_v42  ;;  %v3463_v36 = vld [vmem:[#allocation2 + $0xd0] sm:$0xff] }
0x10fb   :  { %v1462_v59 = vpop.f32.mrf.mxu0  ;;  %2232 = vmatpush.bf16.msrb.mxu1 %v3441_v46  ;;  %2270 = vmatpush.bf16.msrb.mxu2 %v3447_v47  ;;  %v3496_v47 = vld [vmem:[%s4396_s13 + $0x5] ss:$0 sm:$0xff] }
0x10fc   :  { %v1475_v56 = vpack.c.bf16 %v1462_v59, %v1462_v59 }
0x10fe   :  { %3139 = vmatmul.msk.bf16.vlgmr.msra.gmra.mxu3 %vm86_vm0, %v1475_v56 }
0x10ff   :  { %2309 = vmatpush.bf16.msra.mxu3 %v3452_v0  ;;  %2271 = vmatpush.bf16.msrb.mxu2 %v3446_v51  ;;  %v3458_v0 = vld [vmem:[#allocation2 + $0xa8] sm:$0xff] }
0x1100   :  { %v3462_v51 = vld [vmem:[#allocation2 + $0xc8] sm:$0xff] }
0x1103   :  { %v1465_v27 = vpop.f32.mrf.mxu0  ;;  %2310 = vmatpush.bf16.msra.mxu3 %v3451_v49  ;;  %2272 = vmatpush.bf16.msrb.mxu2 %v3445_v12 }
0x1104   :  { %v1476_v40 = vpack.c.bf16 %v1465_v27, %v1465_v27  ;;  %v3454_v27 = vld [vmem:[#allocation2 + $0x88] sm:$0xff] }
0x1105   :  { %2351 = vmatpush.bf16.msrb.mxu0 %v3454_v27 }
0x1106   :  { %3156 = vmatmul.msk.bf16.vlgmr.msra.gmra.mxu1 %vm86_vm0, %v1476_v40  ;;  %v3460_v40 = vld [vmem:[#allocation2 + $0xb8] sm:$0xff] }
0x1107   :  { %2311 = vmatpush.bf16.msra.mxu3 %v3450_v54  ;;  %2389 = vmatpush.bf16.msra.mxu1 %v3460_v40 }
0x110b   :  { %v1467_v28 = vpop.f32.mrf.mxu0  ;;  %2312 = vmatpush.bf16.msra.mxu3 %v3449_v7  ;;  %2390 = vmatpush.bf16.msra.mxu1 %v3459_v32  ;;  %v3466_v32 = vld [vmem:[#allocation2 + $0xe8] sm:$0xff] }
0x110c   :  { %v1477_v29 = vpack.c.bf16 %v1467_v28, %v1467_v28 }
0x110e   :  { %3173 = vmatmul.msk.bf16.vlgmr.msra.gmra.mxu2 %vm86_vm0, %v1477_v29 }
0x110f   :  { %2429 = vmatpush.bf16.msra.mxu2 %v3464_v30  ;;  %2391 = vmatpush.bf16.msra.mxu1 %v3458_v0  ;;  %v3465_v0 = vld [vmem:[#allocation2 + $0xe0] sm:$0xff] }
0x1113   :  { %2430 = vmatpush.bf16.msra.mxu2 %v3463_v36 }
0x1117   :  { %2431 = vmatpush.bf16.msra.mxu2 %v3462_v51 }
0x1153   :  { %v1610_v6 = vpop.f32.mrf.mxu1 }
0x1154   :  { %v4233_v13 = vadd.f32 %v3491_v31, %v1610_v6 }
0x1156   :  { %v3174_v14 = vmul.f32 -1.442695, %v4233_v13 }
0x1158   :  { %3555 = vpow2.f32 %v3174_v14 }
0x115b   :  { %v1612_v33 = vpop.f32.mrf.mxu1 }
0x115e   :  { %v3556_v37 = vpop.eup %3555 }
0x115f   :  { %v1918_v44 = vadd.f32 1.0, %v3556_v37 }
0x1161   :  { %3557 = vrcp.f32 %v1918_v44  ;;  %v1650_v45 = vpop.f32.mrf.mxu2  ;;  %v1935_v62 = vand.u32 2147483647, %v1918_v44  ;;  %v1937_v63 = vand.u32 2147483648, %v1918_v44  ;;  %vm1931_vm12 = vweird.f32 %v1918_v44 }
0x1162   :  { %v4239_v48 = vadd.f32 %v3492_v43, %v1650_v45 }
0x1163   :  { %v1938_v19 = vor.u32 1.1754944e-38, %v1937_v63  ;;  %vm1936_vm14 = vcmp.eq.f32.partialorder %v1935_v62, 8.507059e+37 }
0x1164   :  { %v3175_v50 = vmul.f32 -1.442695, %v4239_v48 }
0x1166   :  { %3559 = vpow2.f32 %v3175_v50 }
0x1167   :  { %v3558_v53 = vpop.eup %3557 }
0x1168   :  { %v1927_v55 = vmul.f32 %v3558_v53, %v1918_v44  ;;  %vm1932_vm11 = vweird.f32 %v3558_v53 }
0x1169   :  { %v1652_v58 = vpop.f32.mrf.mxu2  ;;  %v1690_v60 = vpop.f32.mrf.mxu3  ;;  %vm1933_vm13 = vmor %vm1931_vm12, %vm1932_vm11 }
0x116a   :  { %v1928_v61 = vsub.f32 1.0, %v1927_v55  ;;  %v4248_v1 = vadd.f32 %v3493_v52, %v1690_v60  ;;  %v3497_v55 = vld [vmem:[%s4396_s13 + $0x6] ss:$0 sm:$0xff] }
0x116b   :  { %v1730_v39 = vpop.f32.mrf.mxu1 }
0x116c   :  { %v3560_v10 = vpop.eup %3559  ;;  %v1929_v5 = vmul.f32 %v3558_v53, %v1928_v61  ;;  %v3176_v15 = vmul.f32 -1.442695, %v4248_v1  ;;  %v4251_v2 = vadd.f32 %v3494_v57, %v1730_v39  ;;  %v3457_v61 = vld [vmem:[#allocation2 + $0xa0] sm:$0xff] }
0x116d   :  { %v1919_v16 = vadd.f32 1.0, %v3560_v10  ;;  %2392 = vmatpush.bf16.msra.mxu1 %v3457_v61 }
0x116e   :  { %v1930_v18 = vadd.f32 %v3558_v53, %v1929_v5  ;;  %3561 = vpow2.f32 %v3176_v15  ;;  %v3177_v34 = vmul.f32 -1.442695, %v4251_v2  ;;  %v3461_v5 = vld [vmem:[#allocation2 + $0xc0] sm:$0xff] }
0x116f   :  { %3563 = vrcp.f32 %v1919_v16  ;;  %v1952_v6 = vand.u32 2147483648, %v1919_v16  ;;  %v1950_v4 = vand.u32 2147483647, %v1919_v16  ;;  %vm1946_vm2 = vweird.f32 %v1919_v16  ;;  %2432 = vmatpush.bf16.msra.mxu2 %v3461_v5 }
0x1170   :  { %v1934_v38 = vsel %vm1933_vm13, %v3558_v53, %v1930_v18  ;;  %3565 = vpow2.f32 %v3177_v34 }
0x1171   :  { %v1939_v20 = vsel %vm1936_vm14, %v1938_v19, %v1934_v38  ;;  %v1692_v21 = vpop.f32.mrf.mxu3  ;;  %v1953_v43 = vor.u32 1.1754944e-38, %v1952_v6  ;;  %vm1951_vm4 = vcmp.eq.f32.partialorder %v1950_v4, 8.507059e+37 }
0x1172   :  { %v2046_v23 = vmul.f32 %v1939_v20, %v4233_v13  ;;  %v3453_v13 = vld [vmem:[#allocation2 + $0x80] sm:$0xff]  ;;  %v3468_v21 = vld [vmem:[#allocation2 + $0xf8] sm:$0xff] }
0x1173   :  { %v1732_v24 = vpop.f32.mrf.mxu1  ;;  %2352 = vmatpush.bf16.msrb.mxu0 %v3453_v13 }
0x1174   :  { %v3562_v25 = vpop.eup %3561  ;;  %v2054_v26 = vpack.c.bf16 %v2046_v23, %v2046_v23 }
0x1175   :  { %v3564_v59 = vpop.eup %3563  ;;  %v4255_v56 = vadd.f32 1.0, %v3562_v25 }
0x1176   :  { %v3566_v28 = vpop.eup %3565  ;;  %v1942_v29 = vmul.f32 %v3564_v59, %v1919_v16  ;;  %3198 = vmatmul.msk.bf16.vlgmr.msrb.gmra.mxu3 %vm86_vm0, %v2054_v26  ;;  %vm1947_vm15 = vweird.f32 %v3564_v59 }
0x1177   :  { %3567 = vrcp.f32 %v4255_v56  ;;  %v4262_v31 = vadd.f32 1.0, %v3566_v28  ;;  %vm1948_vm3 = vmor %vm1946_vm2, %vm1947_vm15  ;;  %v1965_v50 = vand.u32 2147483647, %v4255_v56  ;;  %v1967_v57 = vand.u32 2147483648, %v4255_v56  ;;  %2469 = vmatpush.bf16.msrb.mxu3 %v3468_v21 }
0x1178   :  { %v1943_v9 = vsub.f32 1.0, %v1942_v29  ;;  %vm1961_vm6 = vweird.f32 %v4255_v56  ;;  %v3467_v29 = vld [vmem:[#allocation2 + $0xf0] sm:$0xff] }
0x1179   :  { %v1770_v11 = vpop.f32.mrf.mxu2  ;;  %3569 = vrcp.f32 %v4262_v31  ;;  %vm4282_vm7 = vcmp.eq.f32.partialorder %v1965_v50, 8.507059e+37  ;;  %v1982_v16 = vand.u32 2147483648, %v4262_v31  ;;  %v1968_v19 = vor.u32 1.1754944e-38, %v1967_v57 }
0x117a   :  { %v1944_v14 = vmul.f32 %v3564_v59, %v1943_v9  ;;  %v4265_v33 = vadd.f32 %v3495_v3, %v1770_v11  ;;  %v1980_v20 = vand.u32 2147483647, %v4262_v31  ;;  %vm1976_vm10 = vweird.f32 %v4262_v31  ;;  %v3471_v3 = vld [vmem:[%s4399_s16 + $0x10] sm:$0xff] }
0x117b   :  { %v1983_v27 = vor.u32 1.1754944e-38, %v1982_v16  ;;  %2470 = vmatpush.bf16.msrb.mxu3 %v3467_v29 }
0x117c   :  { %v1945_v42 = vadd.f32 %v3564_v59, %v1944_v14  ;;  %v3178_v44 = vmul.f32 -1.442695, %v4265_v33  ;;  %vm1981_vm12 = vcmp.eq.f32.partialorder %v1980_v20, 8.507059e+37  ;;  %v3470_v14 = vld [vmem:[%s4399_s16 + $0x8] sm:$0xff] }
0x117d   :  { %v3568_v37 = vpop.eup %3567 }
0x117e   :  { %v1949_v45 = vsel %vm1948_vm3, %v3564_v59, %v1945_v42  ;;  %v1957_v46 = vmul.f32 %v3568_v37, %v4255_v56  ;;  %3571 = vpow2.f32 %v3178_v44  ;;  %vm1962_vm5 = vweird.f32 %v3568_v37 }
0x117f   :  { %v1954_v49 = vsel %vm1951_vm4, %v1953_v43, %v1949_v45  ;;  %v3570_v52 = vpop.eup %3569  ;;  %vm1963_vm8 = vmor %vm1961_vm6, %vm1962_vm5  ;;  %2471 = vmatpush.bf16.msrb.mxu3 %v3466_v32  ;;  %v3469_v45 = vld [vmem:[%s4399_s16] sm:$0xff] }
0x1180   :  { %v2047_v53 = vmul.f32 %v1954_v49, %v4239_v48  ;;  %v1958_v54 = vsub.f32 1.0, %v1957_v46  ;;  %v1972_v58 = vmul.f32 %v3570_v52, %v4262_v31  ;;  %vm1977_vm9 = vweird.f32 %v3570_v52 }
0x1181   :  { %v1772_v60 = vpop.f32.mrf.mxu2  ;;  %v1810_v12 = vpop.f32.mrf.mxu3  ;;  %vm1978_vm11 = vmor %vm1976_vm10, %vm1977_vm9 }
0x1182   :  { %v2055_v62 = vpack.c.bf16 %v2047_v53, %v2047_v53  ;;  %v1959_v63 = vmul.f32 %v3568_v37, %v1958_v54  ;;  %v4279_v39 = vadd.f32 %v3496_v47, %v1810_v12  ;;  %v1973_v7 = vsub.f32 1.0, %v1972_v58 }
0x1183   :  { %v1850_v10 = vpop.f32.mrf.mxu1  ;;  %2472 = vmatpush.bf16.msrb.mxu3 %v3465_v0 }
0x1184   :  { %v1960_v15 = vadd.f32 %v3568_v37, %v1959_v63  ;;  %v3179_v17 = vmul.f32 -1.442695, %v4279_v39  ;;  %v4288_v18 = vadd.f32 %v3497_v55, %v1850_v10  ;;  %3215 = vmatmul.msk.bf16.vlgmr.msrb.gmra.mxu1 %vm86_vm0, %v2055_v62  ;;  %v3572_v34 = vpop.eup %3571  ;;  %v1974_v38 = vmul.f32 %v3570_v52, %v1973_v7 }
0x1185   :  { %v1922_v24 = vadd.f32 1.0, %v3572_v34  ;;  %2623 = vmatpush.bf16.msrb.mxu1 %v3472_v22 }
0x1186   :  { %v1964_v23 = vsel %vm1963_vm8, %v3568_v37, %v1960_v15  ;;  %3573 = vpow2.f32 %v3179_v17  ;;  %v3180_v25 = vmul.f32 -1.442695, %v4288_v18  ;;  %v1975_v59 = vadd.f32 %v3570_v52, %v1974_v38 }
0x1187   :  { %v1969_v26 = vsel %vm4282_vm7, %v1968_v19, %v1964_v23  ;;  %3575 = vrcp.f32 %v1922_v24  ;;  %v1997_v46 = vand.u32 2147483648, %v1922_v24  ;;  %v1995_v49 = vand.u32 2147483647, %v1922_v24 }
0x1188   :  { %v2048_v56 = vmul.f32 %v1969_v26, %v4248_v1  ;;  %v1979_v40 = vsel %vm1978_vm11, %v3570_v52, %v1975_v59  ;;  %3577 = vpow2.f32 %v3180_v25  ;;  %vm1991_vm14 = vweird.f32 %v1922_v24 }
0x1189   :  { %v1812_v28 = vpop.f32.mrf.mxu3  ;;  %v1984_v9 = vsel %vm1981_vm12, %v1983_v27, %v1979_v40  ;;  %2624 = vmatpush.bf16.msrb.mxu1 %v3471_v3  ;;  %v1998_v54 = vor.u32 1.1754944e-38, %v1997_v46  ;;  %vm1996_vm2 = vcmp.eq.f32.partialorder %v1995_v49, 8.507059e+37 }
0x118a   :  { %v2056_v30 = vpack.c.bf16 %v2048_v56, %v2048_v56  ;;  %v2049_v31 = vmul.f32 %v1984_v9, %v4251_v2  ;;  %v3498_v2 = vld [vmem:[%s4396_s13 + $0x7] ss:$0 sm:$0xff] }
0x118b   :  { %v1852_v6 = vpop.f32.mrf.mxu1 }
0x118c   :  { %v3574_v1 = vpop.eup %3573  ;;  %3232 = vmatmul.msk.bf16.vlgmr.msrb.gmra.mxu2 %vm86_vm0, %v2056_v30  ;;  %v2057_v11 = vpack.c.bf16 %v2049_v31, %v2049_v31 }
0x118d   :  { %v1923_v13 = vadd.f32 1.0, %v3574_v1  ;;  %v3576_v4 = vpop.eup %3575  ;;  %2625 = vmatpush.bf16.msrb.mxu1 %v3470_v14  ;;  %v3499_v14 = vld [vmem:[%s4398_s15] ss:$0 sm:$0xff] }
0x118e   :  { %v3578_v36 = vpop.eup %3577  ;;  %v1987_v42 = vmul.f32 %v3576_v4, %v1922_v24  ;;  %3249 = vmatmul.msk.bf16.vlgmr.msra.gmra.mxu3 %vm86_vm0, %v2057_v11  ;;  %vm1992_vm13 = vweird.f32 %v3576_v4 }
0x118f   :  { %3579 = vrcp.f32 %v1923_v13  ;;  %v1924_v37 = vadd.f32 1.0, %v3578_v36  ;;  %vm1993_vm15 = vmor %vm1991_vm14, %vm1992_vm13  ;;  %v2012_v62 = vand.u32 2147483648, %v1923_v13  ;;  %v2010_v10 = vand.u32 2147483647, %v1923_v13 }
0x1190   :  { %v1988_v43 = vsub.f32 1.0, %v1987_v42  ;;  %vm2006_vm4 = vweird.f32 %v1923_v13 }
0x1191   :  { %v1890_v44 = vpop.f32.mrf.mxu2  ;;  %3581 = vrcp.f32 %v1924_v37  ;;  %2626 = vmatpush.bf16.msrb.mxu1 %v3469_v45  ;;  %v2027_v17 = vand.u32 2147483648, %v1924_v37  ;;  %v2013_v19 = vor.u32 1.1754944e-38, %v2012_v62  ;;  %v2025_v20 = vand.u32 2147483647, %v1924_v37 }
0x1192   :  { %v1989_v47 = vmul.f32 %v3576_v4, %v1988_v43  ;;  %v4316_v50 = vadd.f32 %v3498_v2, %v1890_v44  ;;  %vm2011_vm7 = vcmp.eq.f32.partialorder %v2010_v10, 8.507059e+37  ;;  %vm2021_vm8 = vweird.f32 %v1924_v37  ;;  %v3504_v10 = vld [vmem:[%s4398_s15 + $0x5] ss:$0 sm:$0xff] }
0x1193   :  { %v2028_v25 = vor.u32 1.1754944e-38, %v2027_v17  ;;  %vm2026_vm10 = vcmp.eq.f32.partialorder %v2025_v20, 8.507059e+37 }
0x1194   :  { %v1990_v52 = vadd.f32 %v3576_v4, %v1989_v47  ;;  %v3181_v53 = vmul.f32 -1.442695, %v4316_v50 }
0x1195   :  { %v3580_v51 = vpop.eup %3579 }
0x1196   :  { %v2002_v55 = vmul.f32 %v3580_v51, %v1923_v13  ;;  %v1994_v57 = vsel %vm1993_vm15, %v3576_v4, %v1990_v52  ;;  %3583 = vpow2.f32 %v3181_v53  ;;  %vm2007_vm3 = vweird.f32 %v3580_v51  ;;  %v3500_v4 = vld [vmem:[%s4398_s15 + $0x1] ss:$0 sm:$0xff]  ;;  %v3475_v52 = vld [vmem:[%s4401_s18 + $0x10] sm:$0xff] }
0x1197   :  { %v3582_v58 = vpop.eup %3581  ;;  %v1999_v60 = vsel %vm1996_vm2, %v1998_v54, %v1994_v57  ;;  %vm2008_vm5 = vmor %vm2006_vm4, %vm2007_vm3  ;;  %v3506_v57 = vld [vmem:[%s4400_s17] ss:$0 sm:$0xff] }
0x1198   :  { %v2003_v12 = vsub.f32 1.0, %v2002_v55  ;;  %v2050_v61 = vmul.f32 %v1999_v60, %v4265_v33  ;;  %v2017_v63 = vmul.f32 %v3582_v58, %v1924_v37  ;;  %vm2022_vm6 = vweird.f32 %v3582_v58  ;;  %v3474_v55 = vld [vmem:[%s4401_s18 + $0x8] sm:$0xff] }
0x1199   :  { %v1892_v48 = vpop.f32.mrf.mxu2  ;;  %vm2023_vm9 = vmor %vm2021_vm8, %vm2022_vm6 }
0x119a   :  { %v2004_v7 = vmul.f32 %v3580_v51, %v2003_v12  ;;  %v2058_v5 = vpack.c.bf16 %v2050_v61, %v2050_v61  ;;  %v2018_v15 = vsub.f32 1.0, %v2017_v63  ;;  %v3505_v63 = vld [vmem:[%s4398_s15 + $0x6] ss:$0 sm:$0xff]  ;;  %v3507_v48 = vld [vmem:[%s4398_s15 + $0x7] ss:$0 sm:$0xff] }
0x119c   :  { %v2005_v16 = vadd.f32 %v3580_v51, %v2004_v7  ;;  %v3584_v34 = vpop.eup %3583  ;;  %v2019_v38 = vmul.f32 %v3582_v58, %v2018_v15  ;;  %3266 = vmatmul.msk.bf16.vlgmr.msrb.gmra.mxu0 %vm86_vm0, %v2058_v5 }
0x119d   :  { %v1925_v21 = vadd.f32 1.0, %v3584_v34 }
0x119e   :  { %v2009_v33 = vsel %vm2008_vm5, %v3580_v51, %v2005_v16  ;;  %v2020_v23 = vadd.f32 %v3582_v58, %v2019_v38  ;;  %v3476_v51 = vld [vmem:[%s4401_s18 + $0x18] sm:$0xff]  ;;  %v3503_v16 = vld [vmem:[%s4398_s15 + $0x4] ss:$0 sm:$0xff] }
0x119f   :  { %v2014_v22 = vsel %vm2011_vm7, %v2013_v19, %v2009_v33  ;;  %3585 = vrcp.f32 %v1925_v21  ;;  %v2042_v30 = vand.u32 2147483648, %v1925_v21  ;;  %vm2036_vm12 = vweird.f32 %v1925_v21  ;;  %2695 = vmatpush.bf16.msrb.mxu2 %v3476_v51  ;;  %v3502_v33 = vld [vmem:[%s4398_s15 + $0x3] ss:$0 sm:$0xff] }
0x11a0   :  { %v2051_v24 = vmul.f32 %v2014_v22, %v4279_v39  ;;  %v2024_v26 = vsel %vm2023_vm9, %v3582_v58, %v2020_v23  ;;  %v2040_v39 = vand.u32 2147483647, %v1925_v21  ;;  %v3473_v58 = vld [vmem:[%s4401_s18] sm:$0xff] }
0x11a1   :  { %v2029_v56 = vsel %vm2026_vm10, %v2028_v25, %v2024_v26  ;;  %v2043_v6 = vor.u32 1.1754944e-38, %v2042_v30 }
0x11a2   :  { %v2059_v59 = vpack.c.bf16 %v2051_v24, %v2051_v24  ;;  %v2052_v27 = vmul.f32 %v2029_v56, %v4288_v18  ;;  %vm2041_vm14 = vcmp.eq.f32.partialorder %v2040_v39, 8.507059e+37  ;;  %v3501_v24 = vld [vmem:[%s4398_s15 + $0x2] ss:$0 sm:$0xff] }
0x11a3   :  { %2696 = vmatpush.bf16.msrb.mxu2 %v3475_v52 }
0x11a4   :  { %3283 = vmatmul.msk.bf16.vlgmr.msra.gmra.mxu1 %vm86_vm0, %v2059_v59  ;;  %v2060_v40 = vpack.c.bf16 %v2052_v27, %v2052_v27 }
0x11a5   :  { %v3586_v28 = vpop.eup %3585 }
0x11a6   :  { %v2032_v29 = vmul.f32 %v3586_v28, %v1925_v21  ;;  %3300 = vmatmul.msk.bf16.vlgmr.msra.gmra.mxu2 %vm86_vm0, %v2060_v40  ;;  %vm2037_vm11 = vweird.f32 %v3586_v28 }
0x11a7   :  { %vm2038_vm13 = vmor %vm2036_vm12, %vm2037_vm11  ;;  %2697 = vmatpush.bf16.msrb.mxu2 %v3474_v55 }
0x11a8   :  { %v2033_v3 = vsub.f32 1.0, %v2032_v29 }
0x11aa   :  { %v2034_v9 = vmul.f32 %v3586_v28, %v2033_v3 }
0x11ab   :  { %2698 = vmatpush.bf16.msrb.mxu2 %v3473_v58 }
0x11ac   :  { %v2035_v31 = vadd.f32 %v3586_v28, %v2034_v9 }
0x11ae   :  { %v2039_v1 = vsel %vm2038_vm13, %v3586_v28, %v2035_v31  ;;  %v2558_v31 = vpop.trf.xlu2 }
0x11af   :  { %v2044_v11 = vsel %vm2041_vm14, %v2043_v6, %v2039_v1 }
0x11b0   :  { %v2053_v18 = vmul.f32 %v2044_v11, %v4316_v50 }
0x11b2   :  { %v2061_v13 = vpack.c.bf16 %v2053_v18, %v2053_v18 }
0x11b4   :  { %3335 = vmatmul.msk.bf16.vlgmr.msrb.gmra.mxu1 %vm86_vm0, %v4042_v8  ;;  %3317 = vmatmul.msk.bf16.vlgmr.msrb.gmra.mxu3 %vm86_vm0, %v2061_v13 }
0x11f9   :  { %v2194_v32 = vpop.f32.mrf.mxu3 }
0x11fa   :  { %v2195_v2 = vadd.f32 %v3499_v14, %v2194_v32 }
0x1201   :  { %v2196_v36 = vpop.f32.mrf.mxu3  ;;  %v2234_v42 = vpop.f32.mrf.mxu1 }
0x1202   :  { %v2235_v37 = vadd.f32 %v3500_v4, %v2234_v42  ;;  %v3508_v42 = vld [vmem:[%s4402_s19] ss:$0 sm:$0xff] }
0x1204   :  { %v2546_v43 = vpack.c.bf16 %v2235_v37, %v2195_v2 }
0x1209   :  { %v2236_v44 = vpop.f32.mrf.mxu1 }
0x120f   :  { %v2274_v0 = vpop.f32.mrf.mxu2 }
0x1210   :  { %v2275_v29 = vadd.f32 %v3501_v24, %v2274_v0 }
0x1211   :  { %v2314_v45 = vpop.f32.mrf.mxu3 }
0x1212   :  { %v2315_v56 = vadd.f32 %v3502_v33, %v2314_v45 }
0x1214   :  { %v2547_v30 = vpack.c.bf16 %v2315_v56, %v2275_v29 }
0x1217   :  { %v2276_v8 = vpop.f32.mrf.mxu2 }
0x1219   :  { %v2316_v46 = vpop.f32.mrf.mxu3  ;;  %v2354_v47 = vpop.f32.mrf.mxu0 }
0x121a   :  { %v2355_v25 = vadd.f32 %v3503_v16, %v2354_v47 }
0x1221   :  { %v2394_v49 = vpop.f32.mrf.mxu1  ;;  %v2356_v50 = vpop.f32.mrf.mxu0 }
0x1222   :  { %v2395_v21 = vadd.f32 %v3504_v10, %v2394_v49 }
0x1224   :  { %v2548_v27 = vpack.c.bf16 %v2395_v21, %v2355_v25 }
0x1229   :  { %v2396_v53 = vpop.f32.mrf.mxu1  ;;  %v2434_v54 = vpop.f32.mrf.mxu2 }
0x122a   :  { %v2435_v17 = vadd.f32 %v3505_v63, %v2434_v54 }
0x1231   :  { %v2628_v60 = vpop.f32.mrf.mxu1  ;;  %v2436_v12 = vpop.f32.mrf.mxu2 }
0x1232   :  { %v2629_v61 = vadd.f32 %v3506_v57, %v2628_v60 }
0x1234   :  { %v2635_v62 = vmul.f32 0.044715, %v2629_v61  ;;  %v2633_v11 = vmul.f32 0.5, %v2629_v61 }
0x1236   :  { %v2637_v7 = vmul.f32 %v2635_v62, %v2629_v61 }
0x1237   :  { %v2474_v15 = vpop.f32.mrf.mxu3 }
0x1238   :  { %v2639_v5 = vmul.f32 %v2637_v7, %v2629_v61  ;;  %v2475_v34 = vadd.f32 %v3507_v48, %v2474_v15 }
0x1239   :  { %v2630_v19 = vpop.f32.mrf.mxu1 }
0x123a   :  { %v2641_v38 = vadd.f32 %v2639_v5, %v2629_v61  ;;  %v2631_v20 = vadd.f32 %v3506_v57, %v2630_v19  ;;  %v2549_v22 = vpack.c.bf16 %v2475_v34, %v2435_v17 }
0x123c   :  { %v2636_v23 = vmul.f32 0.044715, %v2631_v20  ;;  %2573 = vmatpush.bf16.msra.mxu0 %v2549_v22  ;;  %v2643_v26 = vmul.f32 0.7978846, %v2641_v38  ;;  %v2634_v18 = vmul.f32 0.5, %v2631_v20 }
0x123e   :  { %v2638_v59 = vmul.f32 %v2636_v23, %v2631_v20  ;;  %3587 = vtanh.f32 %v2643_v26 }
0x123f   :  { %v2476_v28 = vpop.f32.mrf.mxu3 }
0x1240   :  { %v2640_v40 = vmul.f32 %v2638_v59, %v2631_v20  ;;  %2574 = vmatpush.bf16.msra.mxu0 %v2548_v27 }
0x1242   :  { %v2642_v3 = vadd.f32 %v2640_v40, %v2631_v20 }
0x1244   :  { %v2644_v9 = vmul.f32 0.7978846, %v2642_v3  ;;  %2575 = vmatpush.bf16.msra.mxu0 %v2547_v30  ;;  %v3588_v39 = vpop.eup %3587 }
0x1245   :  { %v2647_v6 = vadd.f32 1.0, %v3588_v39 }
0x1246   :  { %3589 = vtanh.f32 %v2644_v9 }
0x1247   :  { %v2649_v32 = vmul.f32 %v2647_v6, %v2633_v11 }
0x1248   :  { %2576 = vmatpush.bf16.msra.mxu0 %v2546_v43 }
0x124b   :  { %3318 = vmatmul.msk.bf16.vlgmr.msra.gmra.mxu0 %vm86_vm0, %v2558_v31 }
0x124c   :  { %v3590_v1 = vpop.eup %3589 }
0x124d   :  { %v2648_v13 = vadd.f32 1.0, %v3590_v1 }
0x124f   :  { %v2650_v14 = vmul.f32 %v2648_v13, %v2634_v18 }
0x1251   :  { %v2651_v4 = vpack.c.bf16 %v2650_v14, %v2649_v32 }
0x1253   :  { %3352 = vmatmul.msk.bf16.vlgmr.msrb.gmra.mxu2 %vm86_vm0, %v2651_v4 }
0x12c8   :  { %v2578_v36 = vpop.f32.mrf.mxu0 }
0x12c9   :  { %v2705_v37 = vadd.f32 %v2578_v36, %v4019_v35 }
0x12d0   :  { %v2580_v0 = vpop.f32.mrf.mxu0 }
0x12d1   :  { %v2706_v8 = vadd.f32 %v2580_v0, %v4024_v41 }
0x12d6   :  { %v2700_v2 = vpop.f32.mrf.mxu2 }
0x12d7   :  { %v2701_v43 = vadd.f32 %v3508_v42, %v2700_v2 }
0x12d9   :  { %v2707_v44 = vadd.f32 %v2705_v37, %v2701_v43 }
0x12db   :  { %2709 = vst.msk [vmem:[%s4403_s20] sm:$0xff] %vm86_vm0, %v2707_v44 }
0x12de   :  { %v2702_v45 = vpop.f32.mrf.mxu2 }
0x12df   :  { %v2703_v46 = vadd.f32 %v3508_v42, %v2702_v45 }
0x12e1   :  { %v2708_v47 = vadd.f32 %v2706_v8, %v2703_v46 }
0x12e3   :  { %2710 = vst.msk [vmem:[%s4403_s20 + $0x8] sm:$0x3] %vm90_vm1, %v2708_v47 }
0x12e4   :  { %2715 = vsyncpa [#allocation3], 1 }

// kernel: vit_forward.7
= control target key start
LH: loop header
LB: loop body
LE: loop exit
PB: predicated region body
PF: predicated region fallthrough
CT: control target
= control target key end

     0   :  { %vm70_vm0 = vcmask 523264   ;;  %vm74_vm1 = vcmask 517120   ;;  %v3571_v4 = vmov 64.0   ;;  %vm281_vm9 = vcmask 130048   ;;  %s4428_s0 = inlined_call_operand.vmem [shape: f32[10,64], index: 0, kind: input, shape index: {}]   ;;  %s4429_s2 = inlined_call_operand.vmem [shape: f32[1,64], index: 2, kind: input, shape index: {}]   ;;  %s4430_s3 = inlined_call_operand.vmem [shape: f32[1,64], index: 3, kind: input, shape index: {}]   ;;  %s4431_s4 = inlined_call_operand.vmem [shape: bf16[4,64,16], index: 4, kind: input, shape index: {}]   ;;  %s4432_s5 = inlined_call_operand.vmem [shape: bf16[4,64,16], index: 5, kind: input, shape index: {}]   ;;  %s4433_s6 = inlined_call_operand.vmem [shape: bf16[4,64,16], index: 6, kind: input, shape index: {}]   ;;  %s4434_s1 = inlined_call_operand.vmem [shape: f32[10,10], index: 1, kind: input, shape index: {}]   ;;  %s4435_s7 = inlined_call_operand.vmem [shape: bf16[4,16,64], index: 7, kind: input, shape index: {}]   ;;  %s4436_s8 = inlined_call_operand.vmem [shape: f32[1,64], index: 8, kind: input, shape index: {}]   ;;  %s4437_s9 = inlined_call_operand.vmem [shape: f32[1,64], index: 9, kind: input, shape index: {}]   ;;  %s4438_s10 = inlined_call_operand.vmem [shape: f32[1,64], index: 10, kind: input, shape index: {}]   ;;  %s4439_s11 = inlined_call_operand.vmem [shape: bf16[8,64], index: 11, kind: input, shape index: {}]   ;;  %s4440_s12 = inlined_call_operand.vmem [shape: bf16[8,64,64], index: 12, kind: input, shape index: {}]   ;;  %s4441_s13 = inlined_call_operand.vmem [shape: f32[8,1,64], index: 13, kind: input, shape index: {}]   ;;  %s4442_s15 = inlined_call_operand.vmem [shape: f32[8,1,64], index: 15, kind: input, shape index: {}]   ;;  %s4443_s14 = inlined_call_operand.vmem [shape: bf16[8,64,64], index: 14, kind: input, shape index: {}]   ;;  %s4444_s16 = inlined_call_operand.vmem [shape: bf16[64,64], index: 16, kind: input, shape index: {}]   ;;  %s4445_s17 = inlined_call_operand.vmem [shape: f32[1,64], index: 17, kind: input, shape index: {}]   ;;  %s4446_s18 = inlined_call_operand.vmem [shape: bf16[64,64], index: 18, kind: input, shape index: {}]   ;;  %s4447_s19 = inlined_call_operand.vmem [shape: f32[1,64], index: 19, kind: input, shape index: {}]   ;;  %s4448_s20 = inlined_call_operand.vmem [shape: f32[10,64], index: 20, kind: output, shape index: {}]  }
   0x1   :  { %4452 = sst [smem:[#allocation2_spill]] %s4428_s0  ;;  %3489 = vrcp.f32 %v3571_v4  ;;  %v3347_v23 = vld [vmem:[%s4433_s6 + $0x18] sm:$0xff]  ;;  %v3346_v26 = vld [vmem:[%s4433_s6 + $0x10] sm:$0xff]  ;;  %v3345_v29 = vld [vmem:[%s4433_s6 + $0x8] sm:$0xff]  ;;  %vm331_vm10 = vcmask 1044480   ;;  %vm302_vm11 = vcmask 80896  }
   0x2   :  { %4453 = sst [smem:[#allocation3_spill]] %s4429_s2  ;;  %269 = vmatpush.bf16.msra.mxu2 %v3347_v23  ;;  %v3344_v34 = vld [vmem:[%s4433_s6] sm:$0xff]  ;;  %v3360_v38 = vld [vmem:[%s4433_s6 + $0x38] sm:$0xff]  ;;  %v3359_v43 = vld [vmem:[%s4433_s6 + $0x30] sm:$0xff]  ;;  %vm306_vm12 = vcmask 74752  }
   0x3   :  { %4454 = sst [smem:[#allocation4_spill]] %s4430_s3  ;;  %v3358_v50 = vld [vmem:[%s4433_s6 + $0x28] sm:$0xff]  ;;  %v3357_v55 = vld [vmem:[%s4433_s6 + $0x20] sm:$0xff] }
   0x4   :  { %4455 = sst [smem:[#allocation5_spill]] %s4431_s4 }
   0x5   :  { %4456 = sst [smem:[#allocation6_spill]] %s4432_s5 }
   0x6   :  { %s4457_s23 = sld [smem:[#allocation2_spill]]  ;;  %270 = vmatpush.bf16.msra.mxu2 %v3346_v26 }
   0x7   :  { %v3490_v5 = vpop.eup %3489  ;;  %s4458_s26 = sld [smem:[#allocation5_spill]] }
   0x8   :  { %v79_v6 = vmul.f32 64.0, %v3490_v5  ;;  %vm83_vm2 = vweird.f32 %v3490_v5  ;;  %s4459_s5 = sld [smem:[#allocation6_spill]] }
   0x9   :  { %s4460_s24 = sld [smem:[#allocation3_spill]] }
   0xa   :  { %v80_v7 = vsub.f32 1.0, %v79_v6  ;;  %271 = vmatpush.bf16.msra.mxu2 %v3345_v29  ;;  %s4461_s4 = sld [smem:[#allocation4_spill]] }
   0xc   :  { %v3681_v0 = vld [vmem:[%s4457_s23] sm:$0xff]  ;;  %v3688_v2 = vld [vmem:[%s4457_s23 + $0x8] sm:$0x3]  ;;  %v81_v8 = vmul.f32 %v3490_v5, %v80_v7 }
   0xd   :  { %v71_v1 = vsel %vm70_vm0, %v3681_v0, 0.0  ;;  %v75_v3 = vsel %vm74_vm1, %v3688_v2, 0.0  ;;  %v3339_v21 = vld [vmem:[%s4458_s26 + $0x18] sm:$0xff]  ;;  %v3338_v24 = vld [vmem:[%s4458_s26 + $0x10] sm:$0xff]  ;;  %v3337_v27 = vld [vmem:[%s4458_s26 + $0x8] sm:$0xff] }
   0xe   :  { %72 = vadd.xlane.f32.xlu0 %v71_v1  ;;  %v82_v9 = vadd.f32 %v3490_v5, %v81_v8  ;;  %v3343_v22 = vld [vmem:[%s4459_s5 + $0x18] sm:$0xff]  ;;  %175 = vmatpush.bf16.msra.mxu0 %v3339_v21  ;;  %v3342_v25 = vld [vmem:[%s4459_s5 + $0x10] sm:$0xff]  ;;  %v3341_v28 = vld [vmem:[%s4459_s5 + $0x8] sm:$0xff] }
   0xf   :  { %223 = vmatpush.bf16.msra.mxu1 %v3343_v22  ;;  %v3336_v32 = vld [vmem:[%s4458_s26] sm:$0xff]  ;;  %272 = vmatpush.bf16.msra.mxu2 %v3344_v34  ;;  %v3352_v36 = vld [vmem:[%s4458_s26 + $0x38] sm:$0xff]  ;;  %v3351_v41 = vld [vmem:[%s4458_s26 + $0x30] sm:$0xff] }
  0x10   :  { %v3692_v10 = vsel %vm83_vm2, %v3490_v5, %v82_v9  ;;  %v3340_v33 = vld [vmem:[%s4459_s5] sm:$0xff]  ;;  %v3356_v37 = vld [vmem:[%s4459_s5 + $0x38] sm:$0xff]  ;;  %v3355_v42 = vld [vmem:[%s4459_s5 + $0x30] sm:$0xff] }
  0x11   :  { %v3350_v47 = vld [vmem:[%s4458_s26 + $0x28] sm:$0xff]  ;;  %v3349_v52 = vld [vmem:[%s4458_s26 + $0x20] sm:$0xff] }
  0x12   :  { %176 = vmatpush.bf16.msra.mxu0 %v3338_v24  ;;  %v3354_v48 = vld [vmem:[%s4459_s5 + $0x28] sm:$0xff]  ;;  %v3353_v53 = vld [vmem:[%s4459_s5 + $0x20] sm:$0xff] }
  0x13   :  { %224 = vmatpush.bf16.msra.mxu1 %v3342_v25  ;;  %485 = vmatpush.bf16.msrb.mxu2 %v3360_v38  ;;  %v3466_v63 = vld [vmem:[%s4460_s24] ss:$0 sm:$0xff]  ;;  %v3819_v38 = vld [vmem:[%s4434_s1 + $0x8] sm:$0x3] }
  0x14   :  { %v3467_v5 = vld [vmem:[%s4461_s4] ss:$0 sm:$0xff] }
  0x15   :  { %v3812_v34 = vld [vmem:[%s4434_s1] sm:$0xff] }
  0x16   :  { %76 = vadd.xlane.f32.xlu0 %v75_v3  ;;  %177 = vmatpush.bf16.msra.mxu0 %v3337_v27 }
  0x17   :  { %225 = vmatpush.bf16.msra.mxu1 %v3341_v28  ;;  %486 = vmatpush.bf16.msrb.mxu2 %v3359_v43 }
  0x1a   :  { %178 = vmatpush.bf16.msra.mxu0 %v3336_v32 }
  0x1b   :  { %226 = vmatpush.bf16.msra.mxu1 %v3340_v33  ;;  %487 = vmatpush.bf16.msrb.mxu2 %v3358_v50 }
  0x1e   :  { %389 = vmatpush.bf16.msrb.mxu0 %v3352_v36 }
  0x1f   :  { %438 = vmatpush.bf16.msrb.mxu1 %v3356_v37  ;;  %488 = vmatpush.bf16.msrb.mxu2 %v3357_v55 }
  0x22   :  { %390 = vmatpush.bf16.msrb.mxu0 %v3351_v41 }
  0x23   :  { %439 = vmatpush.bf16.msrb.mxu1 %v3355_v42 }
  0x26   :  { %391 = vmatpush.bf16.msrb.mxu0 %v3350_v47 }
  0x27   :  { %440 = vmatpush.bf16.msrb.mxu1 %v3354_v48 }
  0x2a   :  { %392 = vmatpush.bf16.msrb.mxu0 %v3349_v52 }
  0x2b   :  { %441 = vmatpush.bf16.msrb.mxu1 %v3353_v53 }
  0x81   :  { %v73_v11 = vpop.xlane.xlu0 %72 }
  0x82   :  { %v85_v12 = vmul.f32 %v3692_v10, %v73_v11 }
  0x84   :  { %v3696_v13 = vsub.f32 %v3681_v0, %v85_v12 }
  0x86   :  { %v89_v14 = vmul.f32 %v3696_v13, %v3696_v13 }
  0x88   :  { %v91_v15 = vsel %vm70_vm0, %v89_v14, 0.0 }
  0x89   :  { %92 = vadd.xlane.f32.xlu1 %v91_v15  ;;  %v77_v16 = vpop.xlane.xlu0 %76 }
  0x8a   :  { %v86_v17 = vmul.f32 %v3692_v10, %v77_v16 }
  0x8c   :  { %v3703_v18 = vsub.f32 %v3688_v2, %v86_v17 }
  0x8e   :  { %v90_v19 = vmul.f32 %v3703_v18, %v3703_v18 }
  0x90   :  { %v94_v20 = vsel %vm74_vm1, %v90_v19, 0.0 }
  0x91   :  { %95 = vadd.xlane.f32.xlu1 %v94_v20 }
  0xfc   :  { %v93_v30 = vpop.xlane.xlu1 %92 }
  0xfd   :  { %v97_v31 = vmul.f32 %v93_v30, %v3692_v10 }
  0xff   :  { %v99_v35 = vadd.f32 1e-05, %v97_v31 }
 0x101   :  { %3491 = vrsqrt.f32 %v99_v35  ;;  %vm107_vm4 = vweird.f32 %v99_v35 }
 0x104   :  { %v96_v39 = vpop.xlane.xlu1 %95 }
 0x105   :  { %v98_v40 = vmul.f32 %v96_v39, %v3692_v10 }
 0x107   :  { %v3492_v44 = vpop.eup %3491  ;;  %v100_v45 = vadd.f32 1e-05, %v98_v40 }
 0x108   :  { %v102_v46 = vmul.f32 %v3492_v44, %v99_v35  ;;  %vm108_vm3 = vweird.f32 %v3492_v44 }
 0x109   :  { %3493 = vrsqrt.f32 %v100_v45  ;;  %vm109_vm5 = vmor %vm107_vm4, %vm108_vm3  ;;  %vm117_vm7 = vweird.f32 %v100_v45 }
 0x10a   :  { %v103_v49 = vmul.f32 %v3492_v44, %v102_v46 }
 0x10c   :  { %v104_v51 = vmul.f32 0.5, %v103_v49 }
 0x10e   :  { %v105_v54 = vsub.f32 1.5, %v104_v51 }
 0x10f   :  { %v3494_v56 = vpop.eup %3493 }
 0x110   :  { %v106_v57 = vmul.f32 %v3492_v44, %v105_v54  ;;  %v112_v58 = vmul.f32 %v3494_v56, %v100_v45  ;;  %vm118_vm6 = vweird.f32 %v3494_v56 }
 0x111   :  { %vm119_vm8 = vmor %vm117_vm7, %vm118_vm6 }
 0x112   :  { %v113_v59 = vmul.f32 %v3494_v56, %v112_v58  ;;  %v110_v60 = vsel %vm109_vm5, %v3492_v44, %v106_v57 }
 0x113   :  { %v121_v1 = vmul.f32 %v110_v60, %v3696_v13 }
 0x114   :  { %v114_v61 = vmul.f32 0.5, %v113_v59  ;;  %v3365_v59 = vld [vmem:[%s4458_s26 + $0x58] sm:$0xff] }
 0x115   :  { %v126_v6 = vmul.f32 %v3466_v63, %v121_v1  ;;  %v3362_v1 = vld [vmem:[%s4458_s26 + $0x40] sm:$0xff] }
 0x116   :  { %v115_v62 = vsub.f32 1.5, %v114_v61  ;;  %v3364_v61 = vld [vmem:[%s4458_s26 + $0x50] sm:$0xff] }
 0x117   :  { %v131_v9 = vadd.f32 %v3467_v5, %v126_v6  ;;  %v3348_v6 = vld [vmem:[%s4435_s7] sm:$0xff] }
 0x118   :  { %v116_v3 = vmul.f32 %v3494_v56, %v115_v62  ;;  %v3363_v62 = vld [vmem:[%s4458_s26 + $0x48] sm:$0xff] }
 0x11a   :  { %v120_v4 = vsel %vm119_vm8, %v3494_v56, %v116_v3 }
 0x11b   :  { %v122_v7 = vmul.f32 %v120_v4, %v3703_v18 }
 0x11d   :  { %v127_v8 = vmul.f32 %v3466_v63, %v122_v7 }
 0x11f   :  { %v132_v11 = vadd.f32 %v3467_v5, %v127_v8 }
 0x121   :  { %v3790_v12 = vpack.c.bf16 %v132_v11, %v131_v9 }
 0x123   :  { %2715 = vmatmul.msk.bf16.vlgmr.msra.gmra.mxu0 %vm70_vm0, %v3790_v12  ;;  %2732 = vmatmul.msk.bf16.vlgmr.msra.gmra.mxu1 %vm70_vm0, %v3790_v12 }
 0x124   :  { %2749 = vmatmul.msk.bf16.vlgmr.msra.gmra.mxu2 %vm70_vm0, %v3790_v12 }
 0x125   :  { %604 = vmatpush.bf16.msra.mxu2 %v3348_v6 }
 0x133   :  { %2776 = vmatmul.msk.bf16.vlgmr.msrb.gmra.mxu0 %vm70_vm0, %v3790_v12  ;;  %2801 = vmatmul.msk.bf16.vlgmr.msrb.gmra.mxu1 %vm70_vm0, %v3790_v12 }
 0x134   :  { %2826 = vmatmul.msk.bf16.vlgmr.msrb.gmra.mxu2 %vm70_vm0, %v3790_v12 }
 0x1a0   :  { %v228_v13 = vpop.f32.mrf.mxu1  ;;  %v180_v14 = vpop.f32.mrf.mxu0 }
 0x1a1   :  { %v185_v22 = vmul.f32 0.25, %v180_v14 }
 0x1a7   :  { %v274_v15 = vpop.f32.mrf.mxu2 }
 0x1a8   :  { %v230_v16 = vpop.f32.mrf.mxu1  ;;  %v182_v18 = vpop.f32.mrf.mxu0 }
 0x1a9   :  { %v280_v17 = vpack.c.bf16 %v230_v16, %v228_v13  ;;  %v186_v20 = vmul.f32 0.25, %v182_v18 }
 0x1ab   :  { %v286_v19 = vsel %vm281_vm9, %v280_v17, 0  ;;  %v279_v25 = vpack.c.bf16 %v186_v20, %v185_v22 }
 0x1ac   :  { %295 = vmatpush.bf16.xpose.msra.mxu3 %v286_v19 }
 0x1af   :  { %v276_v21 = vpop.f32.mrf.mxu2 }
 0x1b0   :  { %v327_v23 = vpack.c.bf16 %v276_v21, %v274_v15  ;;  %v443_v24 = vpop.f32.mrf.mxu1  ;;  %v394_v58 = vpop.f32.mrf.mxu0 }
 0x1b1   :  { %v399_v4 = vmul.f32 0.25, %v394_v58 }
 0x1b2   :  { %v333_v26 = vsel %vm331_vm10, %v327_v23, 0 }
 0x1b3   :  { %2750 = vmatmul.msk.bf16.vlgmr.msra.gmra.mxu3 %vm281_vm9, %v279_v25 }
 0x1b4   :  { %342 = vmatpush.bf16.msrb.mxu3 %v333_v26 }
 0x1b7   :  { %v490_v27 = vpop.f32.mrf.mxu2 }
 0x1b8   :  { %v445_v28 = vpop.f32.mrf.mxu1  ;;  %v396_v63 = vpop.f32.mrf.mxu0 }
 0x1b9   :  { %v496_v29 = vpack.c.bf16 %v445_v28, %v443_v24  ;;  %v400_v3 = vmul.f32 0.25, %v396_v63  ;;  %v3369_v28 = vld [vmem:[%s4459_s5 + $0x58] sm:$0xff] }
 0x1bb   :  { %v501_v30 = vsel %vm281_vm9, %v496_v29, 0  ;;  %v495_v5 = vpack.c.bf16 %v400_v3, %v399_v4  ;;  %v3368_v29 = vld [vmem:[%s4459_s5 + $0x50] sm:$0xff]  ;;  %v3379_v3 = vld [vmem:[%s4459_s5 + $0x60] sm:$0xff] }
 0x1bc   :  { %510 = vmatpush.bf16.xpose.msra.mxu3 %v501_v30  ;;  %v3367_v30 = vld [vmem:[%s4459_s5 + $0x48] sm:$0xff] }
 0x1bf   :  { %v492_v31 = vpop.f32.mrf.mxu2 }
 0x1c0   :  { %v540_v32 = vpack.c.bf16 %v492_v31, %v490_v27  ;;  %v3366_v31 = vld [vmem:[%s4459_s5 + $0x40] sm:$0xff] }
 0x1c2   :  { %v545_v33 = vsel %vm331_vm10, %v540_v32, 0 }
 0x1c3   :  { %554 = vmatpush.bf16.msra.mxu0 %v545_v33 }
 0x1c7   :  { %697 = vmatpush.bf16.msrb.mxu0 %v3369_v28 }
 0x1cb   :  { %698 = vmatpush.bf16.msrb.mxu0 %v3368_v29 }
 0x1cf   :  { %699 = vmatpush.bf16.msrb.mxu0 %v3367_v30 }
 0x1d3   :  { %700 = vmatpush.bf16.msrb.mxu0 %v3366_v31 }
 0x236   :  { %v297_v35 = vpop.f32.mrf.mxu3 }
 0x237   :  { %v298_v36 = vadd.f32 %v297_v35, %v3812_v34 }
 0x239   :  { %v303_v37 = vsel %vm302_vm11, %v298_v36, -inf }
 0x23a   :  { %304 = vmax.xlane.f32.xlu2 %v303_v37 }
 0x23e   :  { %v299_v39 = vpop.f32.mrf.mxu3 }
 0x23f   :  { %v300_v40 = vadd.f32 %v299_v39, %v3819_v38 }
 0x241   :  { %v307_v41 = vsel %vm306_vm12, %v300_v40, -inf }
 0x242   :  { %308 = vmax.xlane.f32.xlu2 %v307_v41  ;;  %v3361_v41 = vld [vmem:[%s4435_s7 + $0x8] sm:$0xff] }
 0x243   :  { %581 = vmatpush.bf16.msra.mxu1 %v3361_v41  ;;  %v3383_v41 = vld [vmem:[%s4433_s6 + $0x60] sm:$0xff] }
 0x2ad   :  { %v305_v42 = vpop.xlane.xlu2 %304 }
 0x2ae   :  { %v310_v43 = vsub.f32 %v298_v36, %v305_v42  ;;  %v3373_v42 = vld [vmem:[%s4433_s6 + $0x58] sm:$0xff] }
 0x2af   :  { %744 = vmatpush.bf16.msrb.mxu1 %v3373_v42 }
 0x2b0   :  { %v312_v44 = vmul.f32 1.442695, %v310_v43  ;;  %v3372_v43 = vld [vmem:[%s4433_s6 + $0x50] sm:$0xff] }
 0x2b2   :  { %3495 = vpow2.f32 %v312_v44  ;;  %v3371_v44 = vld [vmem:[%s4433_s6 + $0x48] sm:$0xff] }
 0x2b3   :  { %745 = vmatpush.bf16.msrb.mxu1 %v3372_v43 }
 0x2b5   :  { %v309_v45 = vpop.xlane.xlu2 %308 }
 0x2b6   :  { %v311_v46 = vsub.f32 %v300_v40, %v309_v45  ;;  %v3370_v45 = vld [vmem:[%s4433_s6 + $0x40] sm:$0xff] }
 0x2b7   :  { %746 = vmatpush.bf16.msrb.mxu1 %v3371_v44 }
 0x2b8   :  { %v3496_v47 = vpop.eup %3495  ;;  %v314_v48 = vmul.f32 1.442695, %v311_v46 }
 0x2b9   :  { %v316_v49 = vsel %vm302_vm11, %v3496_v47, 0.0 }
 0x2ba   :  { %3497 = vpow2.f32 %v314_v48  ;;  %317 = vadd.xlane.f32.xlu0 %v316_v49  ;;  %v3378_v48 = vld [vmem:[%s4458_s26 + $0x78] sm:$0xff] }
 0x2bb   :  { %747 = vmatpush.bf16.msrb.mxu1 %v3370_v45 }
 0x2c0   :  { %v3498_v50 = vpop.eup %3497 }
 0x2c1   :  { %v319_v51 = vsel %vm306_vm12, %v3498_v50, 0.0 }
 0x2c2   :  { %320 = vadd.xlane.f32.xlu1 %v319_v51 }
 0x32d   :  { %v318_v52 = vpop.xlane.xlu0 %317 }
 0x32e   :  { %3499 = vrcp.f32 %v318_v52 }
 0x334   :  { %v3500_v54 = vpop.eup %3499 }
 0x335   :  { %v321_v53 = vpop.xlane.xlu1 %320  ;;  %v324_v56 = vmul.f32 %v3500_v54, %v3496_v47  ;;  %v3375_v54 = vld [vmem:[%s4458_s26 + $0x60] sm:$0xff] }
 0x336   :  { %3501 = vrcp.f32 %v321_v53  ;;  %v3376_v53 = vld [vmem:[%s4458_s26 + $0x68] sm:$0xff] }
 0x33c   :  { %v3502_v55 = vpop.eup %3501 }
 0x33d   :  { %v325_v57 = vmul.f32 %v3502_v55, %v3498_v50  ;;  %v3377_v50 = vld [vmem:[%s4458_s26 + $0x70] sm:$0xff] }
 0x33f   :  { %v326_v60 = vpack.c.bf16 %v325_v57, %v324_v56  ;;  %v3382_v57 = vld [vmem:[%s4459_s5 + $0x78] sm:$0xff] }
 0x341   :  { %2751 = vmatmul.msk.bf16.vlgmr.msrb.gmra.mxu3 %vm302_vm11, %v326_v60 }
 0x342   :  { %648 = vmatpush.bf16.msrb.mxu3 %v3365_v59 }
 0x346   :  { %649 = vmatpush.bf16.msrb.mxu3 %v3364_v61  ;;  %v3381_v61 = vld [vmem:[%s4459_s5 + $0x70] sm:$0xff] }
 0x34a   :  { %650 = vmatpush.bf16.msrb.mxu3 %v3363_v62 }
 0x34e   :  { %651 = vmatpush.bf16.msrb.mxu3 %v3362_v1  ;;  %v3380_v1 = vld [vmem:[%s4459_s5 + $0x68] sm:$0xff] }
 0x351   :  { %2827 = vmatmul.msk.bf16.vlgmr.msra.gmra.mxu3 %vm281_vm9, %v495_v5 }
 0x361   :  { %2865 = vmatmul.msk.bf16.vlgmr.msrb.gmra.mxu3 %vm70_vm0, %v3790_v12 }
 0x3c4   :  { %v344_v7 = vpop.f32.mrf.mxu3 }
 0x3cc   :  { %v346_v8 = vpop.f32.mrf.mxu3 }
 0x3cd   :  { %v349_v9 = vpack.c.bf16 %v346_v8, %v344_v7 }
 0x3cf   :  { %2840 = vmatmul.msk.bf16.vlgmr.msra.gmra.mxu2 %vm281_vm9, %v349_v9 }
 0x3d4   :  { %v512_v11 = vpop.f32.mrf.mxu3 }
 0x3d5   :  { %v513_v13 = vadd.f32 %v512_v11, %v3812_v34  ;;  %v3374_v11 = vld [vmem:[%s4435_s7 + $0x10] sm:$0xff] }
 0x3d7   :  { %v517_v14 = vsel %vm302_vm11, %v513_v13, -inf }
 0x3d8   :  { %518 = vmax.xlane.f32.xlu2 %v517_v14 }
 0x3dc   :  { %v514_v15 = vpop.f32.mrf.mxu3 }
 0x3dd   :  { %v515_v16 = vadd.f32 %v514_v15, %v3819_v38 }
 0x3df   :  { %v520_v17 = vsel %vm306_vm12, %v515_v16, -inf }
 0x3e0   :  { %521 = vmax.xlane.f32.xlu0 %v520_v17 }
 0x3e4   :  { %v653_v51 = vpop.f32.mrf.mxu3 }
 0x3e5   :  { %v658_v62 = vmul.f32 0.25, %v653_v51 }
 0x3ec   :  { %v655_v58 = vpop.f32.mrf.mxu3 }
 0x3ed   :  { %v659_v60 = vmul.f32 0.25, %v655_v58 }
 0x3ef   :  { %v754_v63 = vpack.c.bf16 %v659_v60, %v658_v62 }
 0x44b   :  { %v519_v18 = vpop.xlane.xlu2 %518 }
 0x44c   :  { %v523_v19 = vsub.f32 %v513_v13, %v519_v18 }
 0x44e   :  { %v525_v20 = vmul.f32 1.442695, %v523_v19 }
 0x450   :  { %3503 = vpow2.f32 %v525_v20 }
 0x452   :  { %v3914_v4 = vpop.f32.mrf.mxu2 }
 0x453   :  { %v522_v21 = vpop.xlane.xlu0 %521 }
 0x454   :  { %v524_v22 = vsub.f32 %v515_v16, %v522_v21 }
 0x456   :  { %v3504_v23 = vpop.eup %3503  ;;  %v527_v24 = vmul.f32 1.442695, %v524_v22 }
 0x457   :  { %v529_v25 = vsel %vm302_vm11, %v3504_v23, 0.0 }
 0x458   :  { %3505 = vpow2.f32 %v527_v24  ;;  %530 = vadd.xlane.f32.xlu1 %v529_v25 }
 0x45a   :  { %v608_v6 = vpop.f32.mrf.mxu2 }
 0x45e   :  { %v3506_v26 = vpop.eup %3505 }
 0x45f   :  { %v532_v27 = vsel %vm306_vm12, %v3506_v26, 0.0 }
 0x460   :  { %533 = vadd.xlane.f32.xlu2 %v532_v27 }
 0x4cb   :  { %v531_v32 = vpop.xlane.xlu1 %530 }
 0x4cc   :  { %3507 = vrcp.f32 %v531_v32 }
 0x4d2   :  { %v3508_v35 = vpop.eup %3507 }
 0x4d3   :  { %v534_v33 = vpop.xlane.xlu2 %533  ;;  %v537_v37 = vmul.f32 %v3508_v35, %v3504_v23 }
 0x4d4   :  { %3509 = vrcp.f32 %v534_v33 }
 0x4da   :  { %v3510_v36 = vpop.eup %3509 }
 0x4db   :  { %v538_v39 = vmul.f32 %v3510_v36, %v3506_v26 }
 0x4dd   :  { %v539_v40 = vpack.c.bf16 %v538_v39, %v537_v37  ;;  %v3386_v37 = vld [vmem:[%s4433_s6 + $0x78] sm:$0xff]  ;;  %v3385_v39 = vld [vmem:[%s4433_s6 + $0x70] sm:$0xff] }
 0x4df   :  { %2828 = vmatmul.msk.bf16.vlgmr.msra.gmra.mxu0 %vm302_vm11, %v539_v40  ;;  %v3384_v40 = vld [vmem:[%s4433_s6 + $0x68] sm:$0xff] }
 0x4e0   :  { %840 = vmatpush.bf16.msra.mxu0 %v3374_v11 }
 0x4ef   :  { %2890 = vmatmul.msk.bf16.vlgmr.msrb.gmra.mxu0 %vm70_vm0, %v3790_v12 }
 0x55c   :  { %v556_v46 = vpop.f32.mrf.mxu0 }
 0x564   :  { %v558_v47 = vpop.f32.mrf.mxu0 }
 0x565   :  { %v561_v49 = vpack.c.bf16 %v558_v47, %v556_v46 }
 0x567   :  { %2835 = vmatmul.msk.bf16.vlgmr.msra.gmra.mxu1 %vm281_vm9, %v561_v49 }
 0x568   :  { %886 = vmatpush.bf16.msra.mxu1 %v3378_v48 }
 0x56c   :  { %v702_v52 = vpop.f32.mrf.mxu0  ;;  %887 = vmatpush.bf16.msra.mxu1 %v3377_v50 }
 0x570   :  { %888 = vmatpush.bf16.msra.mxu1 %v3376_v53 }
 0x574   :  { %v704_v55 = vpop.f32.mrf.mxu0  ;;  %889 = vmatpush.bf16.msra.mxu1 %v3375_v54 }
 0x575   :  { %v755_v56 = vpack.c.bf16 %v704_v55, %v702_v52 }
 0x577   :  { %v760_v59 = vsel %vm281_vm9, %v755_v56, 0  ;;  %2915 = vmatmul.msk.bf16.vlgmr.msrb.gmra.mxu1 %vm70_vm0, %v3790_v12 }
 0x578   :  { %769 = vmatpush.bf16.xpose.msrb.mxu2 %v760_v59 }
 0x57f   :  { %2916 = vmatmul.msk.bf16.vlgmr.msrb.gmra.mxu2 %vm281_vm9, %v754_v63 }
 0x580   :  { %935 = vmatpush.bf16.msra.mxu2 %v3382_v57 }
 0x584   :  { %936 = vmatpush.bf16.msra.mxu2 %v3381_v61 }
 0x587   :  { %2949 = vmatmul.msk.bf16.vlgmr.msra.gmra.mxu1 %vm70_vm0, %v3790_v12 }
 0x588   :  { %937 = vmatpush.bf16.msra.mxu2 %v3380_v1 }
 0x58c   :  { %938 = vmatpush.bf16.msra.mxu2 %v3379_v3 }
 0x58f   :  { %2974 = vmatmul.msk.bf16.vlgmr.msra.gmra.mxu2 %vm70_vm0, %v3790_v12 }
 0x5e4   :  { %v3916_v5 = vpop.f32.mrf.mxu1 }
 0x5ec   :  { %v585_v7 = vpop.f32.mrf.mxu1 }
 0x5ed   :  { %v3918_v8 = vadd.f32 %v608_v6, %v585_v7 }
 0x5f4   :  { %v749_v9 = vpop.f32.mrf.mxu1 }
 0x5fc   :  { %v751_v13 = vpop.f32.mrf.mxu1 }
 0x5fd   :  { %v799_v14 = vpack.c.bf16 %v751_v13, %v749_v9 }
 0x5ff   :  { %v804_v15 = vsel %vm331_vm10, %v799_v14, 0 }
 0x600   :  { %813 = vmatpush.bf16.msra.mxu3 %v804_v15 }
 0x602   :  { %v771_v16 = vpop.f32.mrf.mxu2 }
 0x603   :  { %v772_v17 = vadd.f32 %v771_v16, %v3812_v34 }
 0x604   :  { %982 = vmatpush.bf16.msrb.mxu3 %v3386_v37  ;;  %v891_v50 = vpop.f32.mrf.mxu1 }
 0x605   :  { %v776_v18 = vsel %vm302_vm11, %v772_v17, -inf  ;;  %v896_v56 = vmul.f32 0.25, %v891_v50 }
 0x606   :  { %777 = vmax.xlane.f32.xlu0 %v776_v18 }
 0x608   :  { %983 = vmatpush.bf16.msrb.mxu3 %v3385_v39 }
 0x60a   :  { %v773_v19 = vpop.f32.mrf.mxu2 }
 0x60b   :  { %v774_v20 = vadd.f32 %v773_v19, %v3819_v38 }
 0x60c   :  { %984 = vmatpush.bf16.msrb.mxu3 %v3384_v40  ;;  %v893_v54 = vpop.f32.mrf.mxu1 }
 0x60d   :  { %v779_v21 = vsel %vm306_vm12, %v774_v20, -inf  ;;  %v897_v55 = vmul.f32 0.25, %v893_v54 }
 0x60e   :  { %780 = vmax.xlane.f32.xlu1 %v779_v21 }
 0x60f   :  { %v992_v58 = vpack.c.bf16 %v897_v55, %v896_v56 }
 0x610   :  { %985 = vmatpush.bf16.msrb.mxu3 %v3383_v41 }
 0x612   :  { %v940_v22 = vpop.f32.mrf.mxu2 }
 0x61a   :  { %v942_v23 = vpop.f32.mrf.mxu2 }
 0x61b   :  { %v993_v24 = vpack.c.bf16 %v942_v23, %v940_v22 }
 0x61d   :  { %v998_v25 = vsel %vm281_vm9, %v993_v24, 0 }
 0x61e   :  { %1007 = vmatpush.bf16.xpose.msrb.mxu0 %v998_v25 }
 0x679   :  { %v778_v26 = vpop.xlane.xlu0 %777 }
 0x67a   :  { %v782_v27 = vsub.f32 %v772_v17, %v778_v26  ;;  %v3387_v26 = vld [vmem:[%s4435_s7 + $0x18] sm:$0xff] }
 0x67b   :  { %1078 = vmatpush.bf16.msrb.mxu2 %v3387_v26 }
 0x67c   :  { %v784_v28 = vmul.f32 1.442695, %v782_v27 }
 0x67e   :  { %3511 = vpow2.f32 %v784_v28 }
 0x681   :  { %v781_v29 = vpop.xlane.xlu1 %780 }
 0x682   :  { %v783_v30 = vsub.f32 %v774_v20, %v781_v29 }
 0x684   :  { %v3512_v31 = vpop.eup %3511  ;;  %v786_v32 = vmul.f32 1.442695, %v783_v30 }
 0x685   :  { %v788_v33 = vsel %vm302_vm11, %v3512_v31, 0.0 }
 0x686   :  { %3513 = vpow2.f32 %v786_v32  ;;  %789 = vadd.xlane.f32.xlu2 %v788_v33  ;;  %v3468_v32 = vld [vmem:[%s4436_s8] ss:$0 sm:$0xff] }
 0x68c   :  { %v3514_v35 = vpop.eup %3513 }
 0x68d   :  { %v791_v36 = vsel %vm306_vm12, %v3514_v35, 0.0 }
 0x68e   :  { %792 = vadd.xlane.f32.xlu0 %v791_v36 }
 0x6f9   :  { %v790_v42 = vpop.xlane.xlu2 %789 }
 0x6fa   :  { %3515 = vrcp.f32 %v790_v42 }
 0x700   :  { %v3516_v44 = vpop.eup %3515 }
 0x701   :  { %v793_v43 = vpop.xlane.xlu0 %792  ;;  %v796_v46 = vmul.f32 %v3516_v44, %v3512_v31 }
 0x702   :  { %3517 = vrcp.f32 %v793_v43 }
 0x708   :  { %v3518_v45 = vpop.eup %3517 }
 0x709   :  { %v797_v47 = vmul.f32 %v3518_v45, %v3514_v35 }
 0x70b   :  { %v798_v48 = vpack.c.bf16 %v797_v47, %v796_v46 }
 0x70d   :  { %2917 = vmatmul.msk.bf16.vlgmr.msra.gmra.mxu3 %vm302_vm11, %v798_v48 }
 0x71d   :  { %2999 = vmatmul.msk.bf16.vlgmr.msrb.gmra.mxu3 %vm70_vm0, %v3790_v12  ;;  %v607_v12 = vadd.f32 %v3914_v4, %v3916_v5 }
 0x790   :  { %v815_v49 = vpop.f32.mrf.mxu3 }
 0x798   :  { %v817_v51 = vpop.f32.mrf.mxu3 }
 0x799   :  { %v820_v52 = vpack.c.bf16 %v817_v51, %v815_v49 }
 0x79b   :  { %2924 = vmatmul.msk.bf16.vlgmr.msra.gmra.mxu0 %vm281_vm9, %v820_v52 }
 0x7a0   :  { %v987_v53 = vpop.f32.mrf.mxu3 }
 0x7a8   :  { %v989_v57 = vpop.f32.mrf.mxu3 }
 0x7a9   :  { %v1037_v59 = vpack.c.bf16 %v989_v57, %v987_v53 }
 0x7ab   :  { %v1042_v60 = vsel %vm331_vm10, %v1037_v59, 0  ;;  %3000 = vmatmul.msk.bf16.vlgmr.msrb.gmra.mxu0 %vm281_vm9, %v992_v58 }
 0x7ac   :  { %1051 = vmatpush.bf16.msrb.mxu1 %v1042_v60 }
 0x818   :  { %v842_v61 = vpop.f32.mrf.mxu0 }
 0x819   :  { %v847_v62 = vadd.f32 %v842_v61, %v607_v12 }
 0x820   :  { %v844_v63 = vpop.f32.mrf.mxu0 }
 0x821   :  { %v848_v1 = vadd.f32 %v844_v63, %v3918_v8 }
 0x828   :  { %v1009_v3 = vpop.f32.mrf.mxu0 }
 0x829   :  { %v1010_v6 = vadd.f32 %v1009_v3, %v3812_v34 }
 0x82b   :  { %v1014_v7 = vsel %vm302_vm11, %v1010_v6, -inf }
 0x82c   :  { %1015 = vmax.xlane.f32.xlu1 %v1014_v7 }
 0x830   :  { %v1011_v9 = vpop.f32.mrf.mxu0 }
 0x831   :  { %v1012_v11 = vadd.f32 %v1011_v9, %v3819_v38 }
 0x833   :  { %v1017_v13 = vsel %vm306_vm12, %v1012_v11, -inf }
 0x834   :  { %1018 = vmax.xlane.f32.xlu2 %v1017_v13 }
 0x89f   :  { %v1016_v14 = vpop.xlane.xlu1 %1015 }
 0x8a0   :  { %v1020_v15 = vsub.f32 %v1010_v6, %v1016_v14 }
 0x8a2   :  { %v1022_v4 = vmul.f32 1.442695, %v1020_v15 }
 0x8a4   :  { %3519 = vpow2.f32 %v1022_v4  ;;  %v3470_v4 = vld [vmem:[%s4438_s10] ss:$0 sm:$0xff] }
 0x8a7   :  { %v1019_v5 = vpop.xlane.xlu2 %1018 }
 0x8a8   :  { %v1021_v16 = vsub.f32 %v1012_v11, %v1019_v5 }
 0x8aa   :  { %v3520_v17 = vpop.eup %3519  ;;  %v1024_v8 = vmul.f32 1.442695, %v1021_v16 }
 0x8ab   :  { %v1026_v18 = vsel %vm302_vm11, %v3520_v17, 0.0 }
 0x8ac   :  { %3521 = vpow2.f32 %v1024_v8  ;;  %1027 = vadd.xlane.f32.xlu0 %v1026_v18 }
 0x8b2   :  { %v3522_v34 = vpop.eup %3521 }
 0x8b3   :  { %v1029_v19 = vsel %vm306_vm12, %v3522_v34, 0.0 }
 0x8b4   :  { %1030 = vadd.xlane.f32.xlu1 %v1029_v19  ;;  %v1152_v19 = vld [vmem:[%s4439_s11] sm:$0xf] }
 0x91f   :  { %v1028_v38 = vpop.xlane.xlu0 %1027 }
 0x920   :  { %3523 = vrcp.f32 %v1028_v38 }
 0x926   :  { %v3524_v21 = vpop.eup %3523 }
 0x927   :  { %v1031_v20 = vpop.xlane.xlu1 %1030  ;;  %v1034_v23 = vmul.f32 %v3524_v21, %v3520_v17 }
 0x928   :  { %3525 = vrcp.f32 %v1031_v20 }
 0x92e   :  { %v3526_v22 = vpop.eup %3525 }
 0x92f   :  { %v1035_v24 = vmul.f32 %v3526_v22, %v3522_v34 }
 0x931   :  { %v1036_v25 = vpack.c.bf16 %v1035_v24, %v1034_v23 }
 0x933   :  { %3001 = vmatmul.msk.bf16.vlgmr.msrb.gmra.mxu1 %vm302_vm11, %v1036_v25 }
 0x9b0   :  { %v1053_v27 = vpop.f32.mrf.mxu1 }
 0x9b8   :  { %v1055_v28 = vpop.f32.mrf.mxu1 }
 0x9b9   :  { %v1058_v29 = vpack.c.bf16 %v1055_v28, %v1053_v27 }
 0x9bb   :  { %3008 = vmatmul.msk.bf16.vlgmr.msrb.gmra.mxu2 %vm281_vm9, %v1058_v29 }
 0xa3e   :  { %v1080_v30 = vpop.f32.mrf.mxu2 }
 0xa3f   :  { %v1085_v31 = vadd.f32 %v1080_v30, %v847_v62 }
 0xa41   :  { %v1087_v33 = vadd.f32 %v1085_v31, %v3681_v0 }
 0xa43   :  { %v3967_v35 = vadd.f32 %v3468_v32, %v1087_v33 }
 0xa45   :  { %v1097_v36 = vsel %vm70_vm0, %v3967_v35, 0.0 }
 0xa46   :  { %v1082_v37 = vpop.f32.mrf.mxu2  ;;  %1098 = vadd.xlane.f32.xlu2 %v1097_v36 }
 0xa47   :  { %v1086_v39 = vadd.f32 %v1082_v37, %v848_v1  ;;  %v1191_v37 = vlaneseq }
 0xa49   :  { %v1088_v40 = vadd.f32 %v1086_v39, %v3688_v2  ;;  %v4001_v39 = vand.u32 127, %v1191_v37 }
 0xa4b   :  { %v3972_v41 = vadd.f32 %v3468_v32, %v1088_v40 }
 0xa4d   :  { %v1100_v42 = vsel %vm74_vm1, %v3972_v41, 0.0 }
 0xa4e   :  { %1101 = vadd.xlane.f32.xlu0 %v1100_v42 }
 0xab9   :  { %v1099_v43 = vpop.xlane.xlu2 %1098 }
 0xaba   :  { %v1103_v44 = vmul.f32 %v1099_v43, %v3692_v10 }
 0xabc   :  { %v1105_v0 = vsub.f32 %v3967_v35, %v1103_v44 }
 0xabe   :  { %v1107_v45 = vmul.f32 %v1105_v0, %v1105_v0 }
 0xac0   :  { %v1109_v46 = vsel %vm70_vm0, %v1107_v45, 0.0 }
 0xac1   :  { %v1102_v47 = vpop.xlane.xlu0 %1101  ;;  %1110 = vadd.xlane.f32.xlu1 %v1109_v46 }
 0xac2   :  { %v1104_v48 = vmul.f32 %v1102_v47, %v3692_v10 }
 0xac4   :  { %v1106_v2 = vsub.f32 %v3972_v41, %v1104_v48 }
 0xac6   :  { %v1108_v49 = vmul.f32 %v1106_v2, %v1106_v2 }
 0xac8   :  { %v1112_v50 = vsel %vm74_vm1, %v1108_v49, 0.0 }
 0xac9   :  { %1113 = vadd.xlane.f32.xlu2 %v1112_v50 }
 0xb34   :  { %v1111_v51 = vpop.xlane.xlu1 %1110 }
 0xb35   :  { %v1115_v52 = vmul.f32 %v1111_v51, %v3692_v10 }
 0xb37   :  { %v1117_v53 = vadd.f32 1e-05, %v1115_v52 }
 0xb39   :  { %3527 = vrsqrt.f32 %v1117_v53  ;;  %vm1125_vm14 = vweird.f32 %v1117_v53 }
 0xb3c   :  { %v1114_v54 = vpop.xlane.xlu2 %1113 }
 0xb3d   :  { %v1116_v55 = vmul.f32 %v1114_v54, %v3692_v10  ;;  %v3469_v10 = vld [vmem:[%s4437_s9] ss:$0 sm:$0xff] }
 0xb3f   :  { %v3528_v56 = vpop.eup %3527  ;;  %v1118_v57 = vadd.f32 1e-05, %v1116_v55 }
 0xb40   :  { %v1120_v58 = vmul.f32 %v3528_v56, %v1117_v53  ;;  %vm1126_vm13 = vweird.f32 %v3528_v56 }
 0xb41   :  { %3529 = vrsqrt.f32 %v1118_v57  ;;  %vm1127_vm15 = vmor %vm1125_vm14, %vm1126_vm13  ;;  %vm1135_vm3 = vweird.f32 %v1118_v57 }
 0xb42   :  { %v1121_v59 = vmul.f32 %v3528_v56, %v1120_v58 }
 0xb44   :  { %v1122_v60 = vmul.f32 0.5, %v1121_v59 }
 0xb46   :  { %v1123_v12 = vsub.f32 1.5, %v1122_v60 }
 0xb47   :  { %v3530_v61 = vpop.eup %3529 }
 0xb48   :  { %v1124_v62 = vmul.f32 %v3528_v56, %v1123_v12  ;;  %v1130_v63 = vmul.f32 %v3530_v61, %v1118_v57  ;;  %vm1136_vm2 = vweird.f32 %v3530_v61 }
 0xb49   :  { %vm1137_vm4 = vmor %vm1135_vm3, %vm1136_vm2 }
 0xb4a   :  { %v1131_v1 = vmul.f32 %v3530_v61, %v1130_v63  ;;  %v1128_v3 = vsel %vm1127_vm15, %v3528_v56, %v1124_v62 }
 0xb4b   :  { %v1139_v9 = vmul.f32 %v1128_v3, %v1105_v0 }
 0xb4c   :  { %v1132_v6 = vmul.f32 0.5, %v1131_v1  ;;  %v3572_v1 = vmov 0.0  }
 0xb4d   :  { %v1144_v14 = vmul.f32 %v3469_v10, %v1139_v9 }
 0xb4e   :  { %v1133_v7 = vsub.f32 1.5, %v1132_v6 }
 0xb4f   :  { %v1149_v16 = vadd.f32 %v3470_v4, %v1144_v14 }
 0xb50   :  { %v1134_v11 = vmul.f32 %v3530_v61, %v1133_v7 }
 0xb52   :  { %v1138_v13 = vsel %vm1137_vm4, %v3530_v61, %v1134_v11  ;;  %vm1331_vm4 = vcmp.eq.s32.totalorder %v4001_v39, 1 }
 0xb53   :  { %v1140_v15 = vmul.f32 %v1138_v13, %v1106_v2  ;;  %v4008_v2 = vshrl.u32 %v1191_v37, 7 }
 0xb55   :  { %v1145_v5 = vmul.f32 %v3469_v10, %v1140_v15  ;;  %3463 = vset.pattern.permute.xlu0 %v4008_v2  ;;  %3464 = vset.pattern.permute.xlu1 %v4008_v2  ;;  %vm1225_vm15 = vcmp.eq.s32.totalorder %v4008_v2, 0  ;;  %vm1296_vm2 = vcmp.eq.s32.totalorder %v4008_v2, 1 }
 0xb56   :  { %3465 = vset.pattern.permute.xlu2 %v4008_v2  ;;  %v3011_v15 = vsel %vm1225_vm15, 1.0, %v3572_v1 }
 0xb57   :  { %v1150_v17 = vadd.f32 %v3470_v4, %v1145_v5 }
 0xb59   :  { %v3990_v8 = vpack.c.bf16 %v1150_v17, %v1149_v16 }
 0xb5b   :  { %v1157_v18 = vsel %vm70_vm0, %v3990_v8, 0  ;;  %v1423_v34 = vsel %vm331_vm10, %v3990_v8, 0 }
 0xb5c   :  { %1166 = vmatpush.bf16.xpose.msra.mxu3 %v1157_v18  ;;  %1432 = vmatpush.bf16.msra.mxu0 %v1423_v34 }
 0xb63   :  { %3009 = vmatmul.msk.bf16.vlgmr.msra.gmra.mxu3 %vm70_vm0, %v1152_v19 }
 0xbe6   :  { %v1168_v38 = vpop.f32.mrf.mxu3 }
 0xbe7   :  { %v3010_v20 = vmul.f32 -1.442695, %v1168_v38 }
 0xbe9   :  { %3531 = vpow2.f32 %v3010_v20 }
 0xbee   :  { %v1170_v21 = vpop.f32.mrf.mxu3 }
 0xbef   :  { %v3532_v22 = vpop.eup %3531 }
 0xbf0   :  { %v1175_v23 = vadd.f32 1.0, %v3532_v22 }
 0xbf2   :  { %3533 = vrcp.f32 %v1175_v23  ;;  %v1187_v27 = vand.u32 2147483648, %v1175_v23  ;;  %v1185_v29 = vand.u32 2147483647, %v1175_v23  ;;  %vm1181_vm6 = vweird.f32 %v1175_v23 }
 0xbf4   :  { %v1188_v31 = vor.u32 1.1754944e-38, %v1187_v27  ;;  %vm1186_vm8 = vcmp.eq.f32.partialorder %v1185_v29, 8.507059e+37 }
 0xbf8   :  { %v3534_v24 = vpop.eup %3533 }
 0xbf9   :  { %v1177_v25 = vmul.f32 %v3534_v24, %v1175_v23  ;;  %vm1182_vm5 = vweird.f32 %v3534_v24 }
 0xbfa   :  { %vm1183_vm7 = vmor %vm1181_vm6, %vm1182_vm5  ;;  %vm1260_vm5 = vcmp.eq.s32.totalorder %v4001_v39, 0  ;;  %vm1402_vm6 = vcmp.eq.s32.totalorder %v4001_v39, 2 }
 0xbfb   :  { %v1178_v26 = vsub.f32 1.0, %v1177_v25 }
 0xbfd   :  { %v1179_v28 = vmul.f32 %v3534_v24, %v1178_v26 }
 0xbff   :  { %v1180_v30 = vadd.f32 %v3534_v24, %v1179_v28 }
 0xc01   :  { %v1184_v32 = vsel %vm1183_vm7, %v3534_v24, %v1180_v30 }
 0xc02   :  { %v1189_v33 = vsel %vm1186_vm8, %v1188_v31, %v1184_v32 }
 0xc03   :  { %v1195_v36 = vsel %vm302_vm11, %v1189_v33, -inf }
 0xc04   :  { %1196 = vmax.xlane.f32.xlu0 %v1195_v36 }
 0xc77   :  { %v4003_v40 = vpop.xlane.xlu0 %1196 }
 0xc78   :  { %vm1198_vm9 = vcmp.eq.f32.partialorder %v1189_v33, %v4003_v40 }
 0xc79   :  { %v1199_v42 = vsel %vm1198_vm9, %v4001_v39, 10  ;;  %vm1367_vm9 = vcmp.eq.s32.totalorder %v4008_v2, 2 }
 0xc7a   :  { %v1200_v43 = vsel %vm302_vm11, %v1199_v42, 2147483647 }
 0xc7b   :  { %v1202_v44 = vshra.s32 %v1200_v43, 16  ;;  %v1201_v45 = vand.u32 65535, %v1200_v43 }
 0xc7d   :  { %v1204_v0 = vcvt.s32.f32 %v1202_v44  ;;  %v1203_v47 = vcvt.s32.f32 %v1201_v45 }
 0xc7f   :  { %1205 = vmin.xlane.f32.xlu1 %v1204_v0 }
 0xcf2   :  { %v1206_v46 = vpop.xlane.xlu1 %1205 }
 0xcf3   :  { %vm1207_vm10 = vcmp.eq.f32.partialorder %v1204_v0, %v1206_v46  ;;  %v1212_v49 = vcvt.f32.s32 %v1206_v46 }
 0xcf4   :  { %v1208_v48 = vsel %vm1207_vm10, %v1203_v47, inf }
 0xcf5   :  { %1209 = vmin.xlane.f32.xlu2 %v1208_v48  ;;  %v1213_v51 = vshll.u32 %v1212_v49, 16 }
 0xd68   :  { %v1210_v50 = vpop.xlane.xlu2 %1209 }
 0xd69   :  { %v1211_v52 = vcvt.f32.s32 %v1210_v50 }
 0xd6b   :  { %v1214_v53 = vadd.s32 %v1213_v51, %v1211_v52 }
 0xd6d   :  { %vm1215_vm12 = vcmp.eq.s32.totalorder %v4001_v39, %v1214_v53 }
 0xd6e   :  { %v1265_v54 = vsel %vm1215_vm12, -1e+30, %v1189_v33  ;;  %v1216_v3 = vsel %vm1215_vm12, 1.0, %v3572_v1  ;;  %v3013_v33 = vsel %vm1296_vm2, 1.0, %v3572_v1 }
 0xd6f   :  { %v1266_v55 = vsel %vm302_vm11, %v1265_v54, -inf  ;;  %v1219_v6 = vrot.slane %v1216_v3, 2  ;;  %v1220_v7 = vrot.slane %v1216_v3, 3  ;;  %v1218_v10 = vrot.slane %v1216_v3, 1 }
 0xd70   :  { %1267 = vmax.xlane.f32.xlu0 %v1266_v55  ;;  %v1221_v11 = vrot.slane %v1216_v3, 4  ;;  %v1222_v13 = vrot.slane %v1216_v3, 5  ;;  %v1223_v14 = vrot.slane %v1216_v3, 6  ;;  %v1228_v4 = vperm.slane %v1216_v3, 0 }
 0xd71   :  { %v1230_v16 = vperm.slane %v1219_v6, 0  ;;  %v1231_v17 = vperm.slane %v1220_v7, 0  ;;  %v1229_v18 = vperm.slane %v1218_v10, 0  ;;  %v1224_v34 = vrot.slane %v1216_v3, 7 }
 0xd72   :  { %v1232_v20 = vperm.slane %v1221_v11, 0  ;;  %v1233_v21 = vperm.slane %v1222_v13, 0  ;;  %v1234_v22 = vperm.slane %v1223_v14, 0  ;;  %v1244_v26 = vmul.f32 %v3011_v15, %v1228_v4 }
 0xd73   :  { %v1246_v24 = vmul.f32 %v3011_v15, %v1230_v16  ;;  %v1247_v25 = vmul.f32 %v3011_v15, %v1231_v17  ;;  %v1245_v27 = vmul.f32 %v3011_v15, %v1229_v18  ;;  %v1235_v30 = vperm.slane %v1224_v34, 0 }
 0xd74   :  { %v1248_v28 = vmul.f32 %v3011_v15, %v1232_v20  ;;  %v1249_v29 = vmul.f32 %v3011_v15, %v1233_v21  ;;  %v1250_v36 = vmul.f32 %v3011_v15, %v1234_v22  ;;  %v3016_v17 = vsel %vm1402_vm6, 1.0, %v3572_v1 }
 0xd75   :  { %v1251_v7 = vmul.f32 %v3011_v15, %v1235_v30  ;;  %v3012_v15 = vsel %vm1260_vm5, 1.0, %v3572_v1 }
 0xd76   :  { %v1263_v18 = vmul.f32 %v3012_v15, %v4003_v40 }
 0xde3   :  { %v4017_v56 = vpop.xlane.xlu0 %1267 }
 0xde4   :  { %vm1269_vm13 = vcmp.eq.f32.partialorder %v1265_v54, %v4017_v56 }
 0xde5   :  { %v1270_v57 = vsel %vm1269_vm13, %v4001_v39, 10 }
 0xde6   :  { %v1271_v58 = vsel %vm302_vm11, %v1270_v57, 2147483647 }
 0xde7   :  { %v1273_v59 = vshra.s32 %v1271_v58, 16  ;;  %v1272_v12 = vand.u32 65535, %v1271_v58 }
 0xde9   :  { %v1275_v60 = vcvt.s32.f32 %v1273_v59  ;;  %v1274_v62 = vcvt.s32.f32 %v1272_v12 }
 0xdeb   :  { %1276 = vmin.xlane.f32.xlu1 %v1275_v60 }
 0xe5e   :  { %v1277_v61 = vpop.xlane.xlu1 %1276 }
 0xe5f   :  { %vm1278_vm14 = vcmp.eq.f32.partialorder %v1275_v60, %v1277_v61  ;;  %v1283_v9 = vcvt.f32.s32 %v1277_v61 }
 0xe60   :  { %v1279_v63 = vsel %vm1278_vm14, %v1274_v62, inf }
 0xe61   :  { %1280 = vmin.xlane.f32.xlu2 %v1279_v63  ;;  %v1284_v19 = vshll.u32 %v1283_v9, 16 }
 0xed4   :  { %v1281_v5 = vpop.xlane.xlu2 %1280 }
 0xed5   :  { %v1282_v38 = vcvt.f32.s32 %v1281_v5  ;;  %v3014_v5 = vsel %vm1331_vm4, 1.0, %v3572_v1 }
 0xed6   :  { %v1334_v16 = vmul.f32 %v3014_v5, %v4017_v56 }
 0xed7   :  { %v1285_v23 = vadd.s32 %v1284_v19, %v1282_v38 }
 0xed8   :  { %v1335_v19 = vadd.f32 %v1334_v16, %v1263_v18 }
 0xed9   :  { %vm1286_vm3 = vcmp.eq.s32.totalorder %v4001_v39, %v1285_v23 }
 0xeda   :  { %v1336_v31 = vsel %vm1286_vm3, -1e+30, %v1265_v54  ;;  %v1287_v32 = vsel %vm1286_vm3, 1.0, %v3572_v1 }
 0xedb   :  { %v1337_v37 = vsel %vm302_vm11, %v1336_v31, -inf  ;;  %v1289_v42 = vrot.slane %v1287_v32, 1  ;;  %v1299_v43 = vperm.slane %v1287_v32, 0  ;;  %v1290_v44 = vrot.slane %v1287_v32, 2 }
 0xedc   :  { %1338 = vmax.xlane.f32.xlu0 %v1337_v37  ;;  %v1291_v0 = vrot.slane %v1287_v32, 3  ;;  %v1292_v45 = vrot.slane %v1287_v32, 4  ;;  %v1293_v46 = vrot.slane %v1287_v32, 5  ;;  %v1294_v47 = vrot.slane %v1287_v32, 6 }
 0xedd   :  { %v1301_v48 = vperm.slane %v1290_v44, 0  ;;  %v1300_v49 = vperm.slane %v1289_v42, 0  ;;  %v1315_v50 = vmul.f32 %v3013_v33, %v1299_v43  ;;  %v1295_v51 = vrot.slane %v1287_v32, 7 }
 0xede   :  { %v1302_v52 = vperm.slane %v1291_v0, 0  ;;  %v1303_v53 = vperm.slane %v1292_v45, 0  ;;  %v1304_v54 = vperm.slane %v1293_v46, 0  ;;  %v1305_v55 = vperm.slane %v1294_v47, 0 }
 0xedf   :  { %v1317_v57 = vmul.f32 %v3013_v33, %v1301_v48  ;;  %v1316_v58 = vmul.f32 %v3013_v33, %v1300_v49  ;;  %v4032_v59 = vadd.f32 %v1315_v50, %v1244_v26  ;;  %v1306_v60 = vperm.slane %v1295_v51, 0 }
 0xee0   :  { %v1318_v12 = vmul.f32 %v3013_v33, %v1302_v52  ;;  %v1319_v61 = vmul.f32 %v3013_v33, %v1303_v53  ;;  %v1320_v62 = vmul.f32 %v3013_v33, %v1304_v54  ;;  %v1321_v63 = vmul.f32 %v3013_v33, %v1305_v55 }
 0xee1   :  { %v4034_v3 = vadd.f32 %v1317_v57, %v1246_v24  ;;  %v4036_v6 = vadd.f32 %v1316_v58, %v1245_v27  ;;  %v1322_v10 = vmul.f32 %v3013_v33, %v1306_v60  ;;  %v3015_v49 = vsel %vm1367_vm9, 1.0, %v3572_v1 }
 0xee2   :  { %v4038_v9 = vadd.f32 %v1318_v12, %v1247_v25  ;;  %v4040_v11 = vadd.f32 %v1319_v61, %v1248_v28  ;;  %v4042_v13 = vadd.f32 %v1320_v62, %v1249_v29  ;;  %v4044_v14 = vadd.f32 %v1321_v63, %v1250_v36 }
 0xee3   :  { %v4046_v4 = vadd.f32 %v1322_v10, %v1251_v7 }
 0xf4f   :  { %v1339_v34 = vpop.xlane.xlu0 %1338 }
 0xf50   :  { %vm1340_vm7 = vcmp.eq.f32.partialorder %v1336_v31, %v1339_v34  ;;  %v1405_v38 = vmul.f32 %v3016_v17, %v1339_v34 }
 0xf51   :  { %v1341_v20 = vsel %vm1340_vm7, %v4001_v39, 10 }
 0xf52   :  { %v1406_v21 = vadd.f32 %v1405_v38, %v1335_v19  ;;  %v1342_v22 = vsel %vm302_vm11, %v1341_v20, 2147483647 }
 0xf53   :  { %v1344_v23 = vshra.s32 %v1342_v22, 16  ;;  %v1343_v28 = vand.u32 65535, %v1342_v22 }
 0xf54   :  { %v2462_v24 = vperm.slane %v1406_v21, 0  ;;  %v2511_v26 = vperm.slane %v1406_v21, 7  ;;  %v2469_v56 = vperm.slane %v1406_v21, 1  ;;  %v2490_v27 = vperm.slane %v1406_v21, 4 }
 0xf55   :  { %v1346_v25 = vcvt.s32.f32 %v1344_v23  ;;  %v2504_v40 = vperm.slane %v1406_v21, 6  ;;  %v1345_v30 = vcvt.s32.f32 %v1343_v28  ;;  %v2476_v32 = vperm.slane %v1406_v21, 2 }
 0xf56   :  { %2467 = vperm.xlu0 %3463, %v2462_v24   ;;  %v2483_v33 = vperm.slane %v1406_v21, 3  ;;  %v2497_v36 = vperm.slane %v1406_v21, 5 }
 0xf57   :  { %1347 = vmin.xlane.f32.xlu1 %v1346_v25 }
 0xf5e   :  { %2516 = vperm.xlu0 %3463, %v2511_v26  }
 0xf70   :  { %2474 = vperm.xlu1 %3464, %v2469_v56  }
 0xf78   :  { %2495 = vperm.xlu1 %3464, %v2490_v27  }
 0xf80   :  { %2509 = vperm.xlu1 %3464, %v2504_v40  }
 0xfc8   :  { %v2468_v47 = vpop.permute.xlu0 %2467 }
 0xfca   :  { %v1348_v29 = vpop.xlane.xlu1 %1347 }
 0xfcb   :  { %vm1349_vm8 = vcmp.eq.f32.partialorder %v1346_v25, %v1348_v29  ;;  %v1354_v42 = vcvt.f32.s32 %v1348_v29 }
 0xfcc   :  { %v1350_v31 = vsel %vm1349_vm8, %v1345_v30, inf }
 0xfcd   :  { %1351 = vmin.xlane.f32.xlu2 %v1350_v31  ;;  %v1355_v44 = vshll.u32 %v1354_v42, 16 }
 0xfd0   :  { %v2517_v28 = vpop.permute.xlu0 %2516 }
 0xfe2   :  { %v2475_v37 = vpop.permute.xlu1 %2474 }
 0xfe5   :  { %2481 = vperm.xlu2 %3465, %v2476_v32  }
 0xfea   :  { %v2496_v46 = vpop.permute.xlu1 %2495 }
 0xfed   :  { %2488 = vperm.xlu2 %3465, %v2483_v33  }
 0xff2   :  { %v2510_v26 = vpop.permute.xlu1 %2509 }
 0xff5   :  { %2502 = vperm.xlu2 %3465, %v2497_v36  }
0x1040   :  { %v1352_v43 = vpop.xlane.xlu2 %1351 }
0x1041   :  { %v1353_v0 = vcvt.f32.s32 %v1352_v43  ;;  %v3395_v43 = vld [vmem:[%s4440_s12 + $0x38] sm:$0xff] }
0x1042   :  { %1629 = vmatpush.bf16.msra.mxu2 %v3395_v43  ;;  %v3472_v43 = vld [vmem:[%s4441_s13 + $0x1] ss:$0 sm:$0xff] }
0x1043   :  { %v1356_v45 = vadd.s32 %v1355_v44, %v1353_v0  ;;  %v3390_v44 = vld [vmem:[%s4440_s12 + $0x10] sm:$0xff]  ;;  %v3389_v0 = vld [vmem:[%s4440_s12 + $0x8] sm:$0xff] }
0x1045   :  { %vm1357_vm10 = vcmp.eq.s32.totalorder %v4001_v39, %v1356_v45  ;;  %v3388_v45 = vld [vmem:[%s4440_s12] sm:$0xff] }
0x1046   :  { %v1358_v48 = vsel %vm1357_vm10, 1.0, %v3572_v1 }
0x1047   :  { %v1361_v50 = vrot.slane %v1358_v48, 2  ;;  %v1362_v51 = vrot.slane %v1358_v48, 3  ;;  %v1360_v52 = vrot.slane %v1358_v48, 1  ;;  %v1370_v53 = vperm.slane %v1358_v48, 0 }
0x1048   :  { %v2482_v54 = vpop.permute.xlu2 %2481  ;;  %v1363_v55 = vrot.slane %v1358_v48, 4  ;;  %v1364_v57 = vrot.slane %v1358_v48, 5  ;;  %v1365_v58 = vrot.slane %v1358_v48, 6  ;;  %v1366_v60 = vrot.slane %v1358_v48, 7  ;;  %v3399_v48 = vld [vmem:[%s4440_s12 + $0x58] sm:$0xff] }
0x1049   :  { %v1372_v12 = vperm.slane %v1361_v50, 0  ;;  %v1373_v61 = vperm.slane %v1362_v51, 0  ;;  %v1371_v2 = vperm.slane %v1360_v52, 0  ;;  %v1386_v62 = vmul.f32 %v3015_v49, %v1370_v53  ;;  %1669 = vmatpush.bf16.msrb.mxu3 %v3399_v48  ;;  %v3398_v50 = vld [vmem:[%s4440_s12 + $0x50] sm:$0xff]  ;;  %v3397_v51 = vld [vmem:[%s4440_s12 + $0x48] sm:$0xff]  ;;  %v3403_v52 = vld [vmem:[%s4440_s12 + $0x78] sm:$0xff] }
0x104a   :  { %v1374_v63 = vperm.slane %v1363_v55, 0  ;;  %v1375_v39 = vperm.slane %v1364_v57, 0  ;;  %v1376_v7 = vperm.slane %v1365_v58, 0  ;;  %v1377_v10 = vperm.slane %v1366_v60, 0  ;;  %v3396_v53 = vld [vmem:[%s4440_s12 + $0x40] sm:$0xff]  ;;  %v3401_v55 = vld [vmem:[%s4440_s12 + $0x68] sm:$0xff] }
0x104b   :  { %v1388_v5 = vmul.f32 %v3015_v49, %v1372_v12  ;;  %v1389_v15 = vmul.f32 %v3015_v49, %v1373_v61  ;;  %v1387_v1 = vmul.f32 %v3015_v49, %v1371_v2  ;;  %v1394_v16 = vadd.f32 %v1386_v62, %v4032_v59  ;;  %v3407_v57 = vld [vmem:[%s4440_s12 + $0x98] sm:$0xff]  ;;  %v3400_v58 = vld [vmem:[%s4440_s12 + $0x60] sm:$0xff]  ;;  %v3406_v60 = vld [vmem:[%s4440_s12 + $0x90] sm:$0xff] }
0x104c   :  { %v1390_v17 = vmul.f32 %v3015_v49, %v1374_v63  ;;  %v1391_v18 = vmul.f32 %v3015_v49, %v1375_v39  ;;  %v1392_v34 = vmul.f32 %v3015_v49, %v1376_v7  ;;  %v1393_v19 = vmul.f32 %v3015_v49, %v1377_v10  ;;  %v3392_v49 = vld [vmem:[%s4440_s12 + $0x20] sm:$0xff]  ;;  %v3405_v12 = vld [vmem:[%s4440_s12 + $0x88] sm:$0xff]  ;;  %v3411_v61 = vld [vmem:[%s4440_s12 + $0xb8] sm:$0xff] }
0x104d   :  { %v1396_v38 = vadd.f32 %v1388_v5, %v4034_v3  ;;  %v1397_v20 = vadd.f32 %v1389_v15, %v4038_v9  ;;  %v1395_v21 = vadd.f32 %v1387_v1, %v4036_v6  ;;  %v2518_v56 = vmul.f32 %v2468_v47, %v1394_v16  ;;  %v3393_v47 = vld [vmem:[%s4440_s12 + $0x28] sm:$0xff]  ;;  %1670 = vmatpush.bf16.msrb.mxu3 %v3398_v50  ;;  %v3404_v62 = vld [vmem:[%s4440_s12 + $0x80] sm:$0xff]  ;;  %v3410_v63 = vld [vmem:[%s4440_s12 + $0xb0] sm:$0xff] }
0x104e   :  { %v1398_v22 = vadd.f32 %v1390_v17, %v4040_v11  ;;  %v1399_v23 = vadd.f32 %v1391_v18, %v4042_v13  ;;  %v1400_v24 = vadd.f32 %v1392_v34, %v4044_v14  ;;  %v1401_v25 = vadd.f32 %v1393_v19, %v4046_v4  ;;  %v3409_v7 = vld [vmem:[%s4440_s12 + $0xa8] sm:$0xff]  ;;  %v3415_v10 = vld [vmem:[%s4440_s12 + $0xd8] sm:$0xff]  ;;  %v3408_v15 = vld [vmem:[%s4440_s12 + $0xa0] sm:$0xff] }
0x104f   :  { %v1407_v59 = vpack.c.bf16 %v1395_v21, %v1394_v16  ;;  %v2519_v27 = vmul.f32 %v2475_v37, %v1395_v21  ;;  %v1408_v40 = vpack.c.bf16 %v1397_v20, %v1396_v38  ;;  %v2520_v31 = vmul.f32 %v2482_v54, %v1396_v38  ;;  %v3391_v37 = vld [vmem:[%s4440_s12 + $0x18] sm:$0xff]  ;;  %v3402_v54 = vld [vmem:[%s4440_s12 + $0x70] sm:$0xff]  ;;  %v3413_v17 = vld [vmem:[%s4440_s12 + $0xc8] sm:$0xff] }
0x1050   :  { %v2489_v29 = vpop.permute.xlu2 %2488  ;;  %v1409_v3 = vpack.c.bf16 %v1399_v23, %v1398_v22  ;;  %v1410_v30 = vpack.c.bf16 %v1401_v25, %v1400_v24  ;;  %v2524_v9 = vmul.f32 %v2510_v26, %v1400_v24  ;;  %v2525_v13 = vmul.f32 %v2517_v28, %v1401_v25  ;;  %1589 = vmatpush.bf16.msra.mxu1 %v3391_v37  ;;  %v3414_v1 = vld [vmem:[%s4440_s12 + $0xd0] sm:$0xff]  ;;  %v3419_v18 = vld [vmem:[%s4440_s12 + $0xf8] sm:$0xff]  ;;  %v3412_v19 = vld [vmem:[%s4440_s12 + $0xc0] sm:$0xff] }
0x1051   :  { %v2521_v6 = vmul.f32 %v2489_v29, %v1397_v20  ;;  %3017 = vmatmul.msk.bf16.vlgmr.msra.gmra.mxu0 %vm302_vm11, %v1407_v59  ;;  %v2526_v11 = vpack.c.bf16 %v2519_v27, %v2518_v56  ;;  %v2522_v33 = vmul.f32 %v2496_v46, %v1398_v22  ;;  %v3394_v46 = vld [vmem:[%s4440_s12 + $0x30] sm:$0xff]  ;;  %1671 = vmatpush.bf16.msrb.mxu3 %v3397_v51  ;;  %v3417_v21 = vld [vmem:[%s4440_s12 + $0xe8] sm:$0xff] }
0x1052   :  { %v2529_v14 = vpack.c.bf16 %v2525_v13, %v2524_v9  ;;  %1630 = vmatpush.bf16.msra.mxu2 %v3394_v46  ;;  %v3418_v38 = vld [vmem:[%s4440_s12 + $0xf0] sm:$0xff]  ;;  %v3421_v9 = vld [vmem:[%s4443_s14 + $0x8] sm:$0xff]  ;;  %v3424_v46 = vld [vmem:[%s4443_s14 + $0x20] sm:$0xff] }
0x1053   :  { %v2527_v32 = vpack.c.bf16 %v2521_v6, %v2520_v31  ;;  %2534 = vxpose.xlu2.c.b16.start [1/4] (short) (narrow) %v2526_v11, 16  ;;  %v3471_v31 = vld [vmem:[%s4441_s13] ss:$0 sm:$0xff]  ;;  %v3429_v51 = vld [vmem:[%s4443_s14 + $0x48] sm:$0xff] }
0x1054   :  { %1590 = vmatpush.bf16.msra.mxu1 %v3390_v44  ;;  %v3420_v11 = vld [vmem:[%s4443_s14] sm:$0xff] }
0x1055   :  { %1672 = vmatpush.bf16.msrb.mxu3 %v3396_v53 }
0x1056   :  { %1631 = vmatpush.bf16.msra.mxu2 %v3393_v47  ;;  %v3430_v47 = vld [vmem:[%s4443_s14 + $0x50] sm:$0xff] }
0x1058   :  { %v2503_v4 = vpop.permute.xlu2 %2502  ;;  %1591 = vmatpush.bf16.msra.mxu1 %v3389_v0  ;;  %v3435_v0 = vld [vmem:[%s4443_s14 + $0x78] sm:$0xff] }
0x1059   :  { %v2523_v36 = vmul.f32 %v2503_v4, %v1399_v23  ;;  %1789 = vmatpush.bf16.msra.mxu3 %v3411_v61  ;;  %v3416_v23 = vld [vmem:[%s4440_s12 + $0xe0] sm:$0xff]  ;;  %v3426_v4 = vld [vmem:[%s4443_s14 + $0x30] sm:$0xff] }
0x105a   :  { %1632 = vmatpush.bf16.msra.mxu2 %v3392_v49  ;;  %v3434_v49 = vld [vmem:[%s4443_s14 + $0x70] sm:$0xff] }
0x105b   :  { %v2528_v42 = vpack.c.bf16 %v2523_v36, %v2522_v33  ;;  %v3425_v36 = vld [vmem:[%s4443_s14 + $0x28] sm:$0xff] }
0x105c   :  { %1592 = vmatpush.bf16.msra.mxu1 %v3388_v45 }
0x105d   :  { %1790 = vmatpush.bf16.msra.mxu3 %v3410_v63 }
0x105e   :  { %1749 = vmatpush.bf16.msrb.mxu2 %v3407_v57  ;;  %v3474_v57 = vld [vmem:[%s4441_s13 + $0x3] ss:$0 sm:$0xff] }
0x1060   :  { %1709 = vmatpush.bf16.msrb.mxu1 %v3403_v52  ;;  %v3473_v52 = vld [vmem:[%s4441_s13 + $0x2] ss:$0 sm:$0xff] }
0x1061   :  { %3018 = vmatmul.msk.bf16.gmra.mxu0 %vm302_vm11, %v1408_v40  ;;  %1791 = vmatpush.bf16.msra.mxu3 %v3409_v7  ;;  %v3432_v7 = vld [vmem:[%s4443_s14 + $0x60] sm:$0xff] }
0x1062   :  { %1750 = vmatpush.bf16.msrb.mxu2 %v3406_v60 }
0x1063   :  { %2535 = vxpose.xlu2.c.b16.cont [2/4] (short) (narrow) %v2527_v32, 16  ;;  %v3427_v32 = vld [vmem:[%s4443_s14 + $0x38] sm:$0xff] }
0x1064   :  { %1710 = vmatpush.bf16.msrb.mxu1 %v3402_v54  ;;  %v3433_v54 = vld [vmem:[%s4443_s14 + $0x68] sm:$0xff] }
0x1065   :  { %1792 = vmatpush.bf16.msra.mxu3 %v3408_v15 }
0x1066   :  { %1751 = vmatpush.bf16.msrb.mxu2 %v3405_v12  ;;  %v3428_v12 = vld [vmem:[%s4443_s14 + $0x40] sm:$0xff] }
0x1068   :  { %1711 = vmatpush.bf16.msrb.mxu1 %v3401_v55 }
0x106a   :  { %1752 = vmatpush.bf16.msrb.mxu2 %v3404_v62 }
0x106c   :  { %1712 = vmatpush.bf16.msrb.mxu1 %v3400_v58 }
0x1071   :  { %3019 = vmatmul.msk.bf16.gmra.mxu0 %vm302_vm11, %v1409_v3  ;;  %v3423_v3 = vld [vmem:[%s4443_s14 + $0x18] sm:$0xff] }
0x1073   :  { %2536 = vxpose.xlu2.c.b16.cont [3/4] (short) (narrow) %v2528_v42, 16  ;;  %v3431_v42 = vld [vmem:[%s4443_s14 + $0x58] sm:$0xff] }
0x1081   :  { %3020 = vmatmul.msk.bf16.gmra.mxu0 %vm302_vm11, %v1410_v30  ;;  %v3422_v30 = vld [vmem:[%s4443_s14 + $0x10] sm:$0xff] }
0x1083   :  { %2537 = vxpose.xlu2.c.b16.end [4/4] (short) (narrow) %v2529_v14, 16 }
0x10ce   :  { %v1434_v2 = vpop.f32.mrf.mxu0 }
0x10cf   :  { %v1454_v39 = vpack.c.bf16 %v1434_v2, %v1434_v2 }
0x10d1   :  { %3037 = vmatmul.msk.bf16.vlgmr.msra.gmra.mxu1 %vm70_vm0, %v1454_v39 }
0x10d2   :  { %1829 = vmatpush.bf16.msra.mxu1 %v3415_v10 }
0x10d6   :  { %v1436_v5 = vpop.f32.mrf.mxu0  ;;  %1830 = vmatpush.bf16.msra.mxu1 %v3414_v1 }
0x10d7   :  { %v1455_v16 = vpack.c.bf16 %v1436_v5, %v1436_v5 }
0x10d9   :  { %3054 = vmatmul.msk.bf16.vlgmr.msra.gmra.mxu2 %vm70_vm0, %v1455_v16 }
0x10da   :  { %1869 = vmatpush.bf16.msra.mxu2 %v3419_v18  ;;  %1831 = vmatpush.bf16.msra.mxu1 %v3413_v17  ;;  %v3439_v17 = vld [vmem:[%s4443_s14 + $0x98] sm:$0xff] }
0x10db   :  { %2333 = vmatpush.bf16.msrb.mxu0 %v3439_v17 }
0x10de   :  { %v1439_v34 = vpop.f32.mrf.mxu0  ;;  %1832 = vmatpush.bf16.msra.mxu1 %v3412_v19  ;;  %1870 = vmatpush.bf16.msra.mxu2 %v3418_v38 }
0x10df   :  { %v1456_v20 = vpack.c.bf16 %v1439_v34, %v1439_v34 }
0x10e1   :  { %3071 = vmatmul.msk.bf16.vlgmr.msrb.gmra.mxu3 %vm70_vm0, %v1456_v20 }
0x10e2   :  { %1871 = vmatpush.bf16.msra.mxu2 %v3417_v21  ;;  %2173 = vmatpush.bf16.msrb.mxu3 %v3423_v3  ;;  %v3475_v3 = vld [vmem:[%s4441_s13 + $0x4] ss:$0 sm:$0xff] }
0x10e6   :  { %v1441_v22 = vpop.f32.mrf.mxu0  ;;  %1872 = vmatpush.bf16.msra.mxu2 %v3416_v23  ;;  %2174 = vmatpush.bf16.msrb.mxu3 %v3422_v30  ;;  %v3447_v30 = vld [vmem:[%s4443_s14 + $0xd8] sm:$0xff] }
0x10e7   :  { %v1457_v24 = vpack.c.bf16 %v1441_v22, %v1441_v22  ;;  %v3438_v22 = vld [vmem:[%s4443_s14 + $0x90] sm:$0xff] }
0x10e8   :  { %2334 = vmatpush.bf16.msrb.mxu0 %v3438_v22  ;;  %v3455_v22 = vld [vmem:[%s4444_s16 + $0x18] sm:$0xff] }
0x10e9   :  { %3088 = vmatmul.msk.bf16.vlgmr.msrb.gmra.mxu1 %vm70_vm0, %v1457_v24 }
0x10ea   :  { %2175 = vmatpush.bf16.msrb.mxu3 %v3421_v9  ;;  %2213 = vmatpush.bf16.msrb.mxu1 %v3427_v32  ;;  %v3442_v32 = vld [vmem:[%s4443_s14 + $0xb0] sm:$0xff] }
0x10ee   :  { %v1444_v25 = vpop.f32.mrf.mxu0  ;;  %2176 = vmatpush.bf16.msrb.mxu3 %v3420_v11  ;;  %2214 = vmatpush.bf16.msrb.mxu1 %v3426_v4 }
0x10ef   :  { %v1458_v26 = vpack.c.bf16 %v1444_v25, %v1444_v25 }
0x10f1   :  { %3105 = vmatmul.msk.bf16.vlgmr.msrb.gmra.mxu2 %vm70_vm0, %v1458_v26 }
0x10f2   :  { %2215 = vmatpush.bf16.msrb.mxu1 %v3425_v36  ;;  %2253 = vmatpush.bf16.msrb.mxu2 %v3431_v42  ;;  %v3446_v36 = vld [vmem:[%s4443_s14 + $0xd0] sm:$0xff] }
0x10f6   :  { %v1446_v59 = vpop.f32.mrf.mxu0  ;;  %2216 = vmatpush.bf16.msrb.mxu1 %v3424_v46  ;;  %2254 = vmatpush.bf16.msrb.mxu2 %v3430_v47  ;;  %v3476_v47 = vld [vmem:[%s4441_s13 + $0x5] ss:$0 sm:$0xff] }
0x10f7   :  { %v1459_v56 = vpack.c.bf16 %v1446_v59, %v1446_v59 }
0x10f9   :  { %3122 = vmatmul.msk.bf16.vlgmr.msra.gmra.mxu3 %vm70_vm0, %v1459_v56 }
0x10fa   :  { %2293 = vmatpush.bf16.msra.mxu3 %v3435_v0  ;;  %2255 = vmatpush.bf16.msrb.mxu2 %v3429_v51  ;;  %v3441_v0 = vld [vmem:[%s4443_s14 + $0xa8] sm:$0xff] }
0x10fb   :  { %v3445_v51 = vld [vmem:[%s4443_s14 + $0xc8] sm:$0xff] }
0x10fe   :  { %v1449_v27 = vpop.f32.mrf.mxu0  ;;  %2294 = vmatpush.bf16.msra.mxu3 %v3434_v49  ;;  %2256 = vmatpush.bf16.msrb.mxu2 %v3428_v12 }
0x10ff   :  { %v1460_v40 = vpack.c.bf16 %v1449_v27, %v1449_v27  ;;  %v3437_v27 = vld [vmem:[%s4443_s14 + $0x88] sm:$0xff] }
0x1100   :  { %2335 = vmatpush.bf16.msrb.mxu0 %v3437_v27 }
0x1101   :  { %3139 = vmatmul.msk.bf16.vlgmr.msra.gmra.mxu1 %vm70_vm0, %v1460_v40  ;;  %v3443_v40 = vld [vmem:[%s4443_s14 + $0xb8] sm:$0xff] }
0x1102   :  { %2295 = vmatpush.bf16.msra.mxu3 %v3433_v54  ;;  %2373 = vmatpush.bf16.msra.mxu1 %v3443_v40 }
0x1106   :  { %v1451_v28 = vpop.f32.mrf.mxu0  ;;  %2296 = vmatpush.bf16.msra.mxu3 %v3432_v7  ;;  %2374 = vmatpush.bf16.msra.mxu1 %v3442_v32  ;;  %v3449_v32 = vld [vmem:[%s4443_s14 + $0xe8] sm:$0xff] }
0x1107   :  { %v1461_v29 = vpack.c.bf16 %v1451_v28, %v1451_v28 }
0x1109   :  { %3156 = vmatmul.msk.bf16.vlgmr.msra.gmra.mxu2 %vm70_vm0, %v1461_v29 }
0x110a   :  { %2413 = vmatpush.bf16.msra.mxu2 %v3447_v30  ;;  %2375 = vmatpush.bf16.msra.mxu1 %v3441_v0  ;;  %v3448_v0 = vld [vmem:[%s4443_s14 + $0xe0] sm:$0xff] }
0x110e   :  { %2414 = vmatpush.bf16.msra.mxu2 %v3446_v36 }
0x1112   :  { %2415 = vmatpush.bf16.msra.mxu2 %v3445_v51 }
0x114e   :  { %v1594_v6 = vpop.f32.mrf.mxu1 }
0x114f   :  { %v4193_v13 = vadd.f32 %v3471_v31, %v1594_v6 }
0x1151   :  { %v3157_v14 = vmul.f32 -1.442695, %v4193_v13 }
0x1153   :  { %3535 = vpow2.f32 %v3157_v14 }
0x1156   :  { %v1596_v33 = vpop.f32.mrf.mxu1 }
0x1159   :  { %v3536_v37 = vpop.eup %3535 }
0x115a   :  { %v1902_v44 = vadd.f32 1.0, %v3536_v37 }
0x115c   :  { %3537 = vrcp.f32 %v1902_v44  ;;  %v1634_v45 = vpop.f32.mrf.mxu2  ;;  %v1919_v62 = vand.u32 2147483647, %v1902_v44  ;;  %v1921_v63 = vand.u32 2147483648, %v1902_v44  ;;  %vm1915_vm12 = vweird.f32 %v1902_v44 }
0x115d   :  { %v4220_v48 = vadd.f32 %v3472_v43, %v1634_v45 }
0x115e   :  { %v1922_v19 = vor.u32 1.1754944e-38, %v1921_v63  ;;  %vm1920_vm14 = vcmp.eq.f32.partialorder %v1919_v62, 8.507059e+37 }
0x115f   :  { %v3158_v50 = vmul.f32 -1.442695, %v4220_v48 }
0x1161   :  { %3539 = vpow2.f32 %v3158_v50 }
0x1162   :  { %v3538_v53 = vpop.eup %3537 }
0x1163   :  { %v1911_v55 = vmul.f32 %v3538_v53, %v1902_v44  ;;  %vm1916_vm11 = vweird.f32 %v3538_v53 }
0x1164   :  { %v1636_v58 = vpop.f32.mrf.mxu2  ;;  %v1674_v60 = vpop.f32.mrf.mxu3  ;;  %vm1917_vm13 = vmor %vm1915_vm12, %vm1916_vm11 }
0x1165   :  { %v1912_v61 = vsub.f32 1.0, %v1911_v55  ;;  %v4241_v2 = vadd.f32 %v3473_v52, %v1674_v60  ;;  %v3477_v55 = vld [vmem:[%s4441_s13 + $0x6] ss:$0 sm:$0xff] }
0x1166   :  { %v1714_v39 = vpop.f32.mrf.mxu1 }
0x1167   :  { %v3540_v10 = vpop.eup %3539  ;;  %v1913_v5 = vmul.f32 %v3538_v53, %v1912_v61  ;;  %v3159_v15 = vmul.f32 -1.442695, %v4241_v2  ;;  %v4247_v1 = vadd.f32 %v3474_v57, %v1714_v39  ;;  %v3440_v61 = vld [vmem:[%s4443_s14 + $0xa0] sm:$0xff] }
0x1168   :  { %v1903_v16 = vadd.f32 1.0, %v3540_v10  ;;  %2376 = vmatpush.bf16.msra.mxu1 %v3440_v61 }
0x1169   :  { %v1914_v18 = vadd.f32 %v3538_v53, %v1913_v5  ;;  %3541 = vpow2.f32 %v3159_v15  ;;  %v3160_v34 = vmul.f32 -1.442695, %v4247_v1  ;;  %v3444_v5 = vld [vmem:[%s4443_s14 + $0xc0] sm:$0xff] }
0x116a   :  { %3543 = vrcp.f32 %v1903_v16  ;;  %v1936_v6 = vand.u32 2147483648, %v1903_v16  ;;  %v1934_v4 = vand.u32 2147483647, %v1903_v16  ;;  %vm1930_vm2 = vweird.f32 %v1903_v16  ;;  %2416 = vmatpush.bf16.msra.mxu2 %v3444_v5 }
0x116b   :  { %v1918_v38 = vsel %vm1917_vm13, %v3538_v53, %v1914_v18  ;;  %3545 = vpow2.f32 %v3160_v34 }
0x116c   :  { %v1923_v20 = vsel %vm1920_vm14, %v1922_v19, %v1918_v38  ;;  %v1676_v21 = vpop.f32.mrf.mxu3  ;;  %v1937_v43 = vor.u32 1.1754944e-38, %v1936_v6  ;;  %vm1935_vm4 = vcmp.eq.f32.partialorder %v1934_v4, 8.507059e+37 }
0x116d   :  { %v2030_v23 = vmul.f32 %v1923_v20, %v4193_v13  ;;  %v3436_v13 = vld [vmem:[%s4443_s14 + $0x80] sm:$0xff]  ;;  %v3451_v21 = vld [vmem:[%s4443_s14 + $0xf8] sm:$0xff] }
0x116e   :  { %v1716_v24 = vpop.f32.mrf.mxu1  ;;  %2336 = vmatpush.bf16.msrb.mxu0 %v3436_v13 }
0x116f   :  { %v3542_v25 = vpop.eup %3541  ;;  %v2038_v26 = vpack.c.bf16 %v2030_v23, %v2030_v23 }
0x1170   :  { %v3544_v59 = vpop.eup %3543  ;;  %v4257_v56 = vadd.f32 1.0, %v3542_v25 }
0x1171   :  { %v3546_v28 = vpop.eup %3545  ;;  %v1926_v29 = vmul.f32 %v3544_v59, %v1903_v16  ;;  %3181 = vmatmul.msk.bf16.vlgmr.msrb.gmra.mxu3 %vm70_vm0, %v2038_v26  ;;  %vm1931_vm15 = vweird.f32 %v3544_v59 }
0x1172   :  { %3547 = vrcp.f32 %v4257_v56  ;;  %v4273_v31 = vadd.f32 1.0, %v3546_v28  ;;  %vm1932_vm3 = vmor %vm1930_vm2, %vm1931_vm15  ;;  %v1949_v50 = vand.u32 2147483647, %v4257_v56  ;;  %v1951_v57 = vand.u32 2147483648, %v4257_v56  ;;  %2453 = vmatpush.bf16.msrb.mxu3 %v3451_v21 }
0x1173   :  { %v1927_v9 = vsub.f32 1.0, %v1926_v29  ;;  %vm1945_vm6 = vweird.f32 %v4257_v56  ;;  %v3450_v29 = vld [vmem:[%s4443_s14 + $0xf0] sm:$0xff] }
0x1174   :  { %v1754_v11 = vpop.f32.mrf.mxu2  ;;  %3549 = vrcp.f32 %v4273_v31  ;;  %vm4311_vm7 = vcmp.eq.f32.partialorder %v1949_v50, 8.507059e+37  ;;  %v1966_v16 = vand.u32 2147483648, %v4273_v31  ;;  %v1952_v19 = vor.u32 1.1754944e-38, %v1951_v57 }
0x1175   :  { %v1928_v14 = vmul.f32 %v3544_v59, %v1927_v9  ;;  %v4282_v33 = vadd.f32 %v3475_v3, %v1754_v11  ;;  %v1964_v20 = vand.u32 2147483647, %v4273_v31  ;;  %vm1960_vm10 = vweird.f32 %v4273_v31  ;;  %v3454_v3 = vld [vmem:[%s4444_s16 + $0x10] sm:$0xff] }
0x1176   :  { %v1967_v27 = vor.u32 1.1754944e-38, %v1966_v16  ;;  %2454 = vmatpush.bf16.msrb.mxu3 %v3450_v29 }
0x1177   :  { %v1929_v42 = vadd.f32 %v3544_v59, %v1928_v14  ;;  %v3161_v44 = vmul.f32 -1.442695, %v4282_v33  ;;  %vm1965_vm12 = vcmp.eq.f32.partialorder %v1964_v20, 8.507059e+37  ;;  %v3453_v14 = vld [vmem:[%s4444_s16 + $0x8] sm:$0xff] }
0x1178   :  { %v3548_v37 = vpop.eup %3547 }
0x1179   :  { %v1933_v45 = vsel %vm1932_vm3, %v3544_v59, %v1929_v42  ;;  %v1941_v46 = vmul.f32 %v3548_v37, %v4257_v56  ;;  %3551 = vpow2.f32 %v3161_v44  ;;  %vm1946_vm5 = vweird.f32 %v3548_v37 }
0x117a   :  { %v1938_v49 = vsel %vm1935_vm4, %v1937_v43, %v1933_v45  ;;  %v3550_v52 = vpop.eup %3549  ;;  %vm1947_vm8 = vmor %vm1945_vm6, %vm1946_vm5  ;;  %2455 = vmatpush.bf16.msrb.mxu3 %v3449_v32  ;;  %v3452_v45 = vld [vmem:[%s4444_s16] sm:$0xff] }
0x117b   :  { %v2031_v53 = vmul.f32 %v1938_v49, %v4220_v48  ;;  %v1942_v54 = vsub.f32 1.0, %v1941_v46  ;;  %v1956_v58 = vmul.f32 %v3550_v52, %v4273_v31  ;;  %vm1961_vm9 = vweird.f32 %v3550_v52 }
0x117c   :  { %v1756_v60 = vpop.f32.mrf.mxu2  ;;  %v1794_v12 = vpop.f32.mrf.mxu3  ;;  %vm1962_vm11 = vmor %vm1960_vm10, %vm1961_vm9 }
0x117d   :  { %v2039_v62 = vpack.c.bf16 %v2031_v53, %v2031_v53  ;;  %v1943_v63 = vmul.f32 %v3548_v37, %v1942_v54  ;;  %v4308_v48 = vadd.f32 %v3476_v47, %v1794_v12  ;;  %v1957_v7 = vsub.f32 1.0, %v1956_v58 }
0x117e   :  { %v1834_v10 = vpop.f32.mrf.mxu1  ;;  %2456 = vmatpush.bf16.msrb.mxu3 %v3448_v0 }
0x117f   :  { %v1944_v15 = vadd.f32 %v3548_v37, %v1943_v63  ;;  %v3162_v17 = vmul.f32 -1.442695, %v4308_v48  ;;  %v4320_v18 = vadd.f32 %v3477_v55, %v1834_v10  ;;  %3198 = vmatmul.msk.bf16.vlgmr.msrb.gmra.mxu1 %vm70_vm0, %v2039_v62  ;;  %v3552_v34 = vpop.eup %3551  ;;  %v1958_v38 = vmul.f32 %v3550_v52, %v1957_v7 }
0x1180   :  { %v1906_v24 = vadd.f32 1.0, %v3552_v34  ;;  %2607 = vmatpush.bf16.msrb.mxu1 %v3455_v22 }
0x1181   :  { %v1948_v23 = vsel %vm1947_vm8, %v3548_v37, %v1944_v15  ;;  %3553 = vpow2.f32 %v3162_v17  ;;  %v3163_v25 = vmul.f32 -1.442695, %v4320_v18  ;;  %v1959_v59 = vadd.f32 %v3550_v52, %v1958_v38 }
0x1182   :  { %v1953_v26 = vsel %vm4311_vm7, %v1952_v19, %v1948_v23  ;;  %3555 = vrcp.f32 %v1906_v24  ;;  %v1981_v46 = vand.u32 2147483648, %v1906_v24  ;;  %v1979_v49 = vand.u32 2147483647, %v1906_v24 }
0x1183   :  { %v2032_v56 = vmul.f32 %v1953_v26, %v4241_v2  ;;  %v1963_v40 = vsel %vm1962_vm11, %v3550_v52, %v1959_v59  ;;  %3557 = vpow2.f32 %v3163_v25  ;;  %vm1975_vm14 = vweird.f32 %v1906_v24 }
0x1184   :  { %v1796_v28 = vpop.f32.mrf.mxu3  ;;  %v1968_v9 = vsel %vm1965_vm12, %v1967_v27, %v1963_v40  ;;  %2608 = vmatpush.bf16.msrb.mxu1 %v3454_v3  ;;  %v1982_v54 = vor.u32 1.1754944e-38, %v1981_v46  ;;  %vm1980_vm2 = vcmp.eq.f32.partialorder %v1979_v49, 8.507059e+37 }
0x1185   :  { %v2040_v30 = vpack.c.bf16 %v2032_v56, %v2032_v56  ;;  %v2033_v2 = vmul.f32 %v1968_v9, %v4247_v1  ;;  %v3478_v1 = vld [vmem:[%s4441_s13 + $0x7] ss:$0 sm:$0xff] }
0x1186   :  { %v1836_v31 = vpop.f32.mrf.mxu1 }
0x1187   :  { %v3554_v6 = vpop.eup %3553  ;;  %3215 = vmatmul.msk.bf16.vlgmr.msrb.gmra.mxu2 %vm70_vm0, %v2040_v30  ;;  %v2041_v11 = vpack.c.bf16 %v2033_v2, %v2033_v2 }
0x1188   :  { %v1907_v13 = vadd.f32 1.0, %v3554_v6  ;;  %v3556_v4 = vpop.eup %3555  ;;  %2609 = vmatpush.bf16.msrb.mxu1 %v3453_v14  ;;  %v3479_v14 = vld [vmem:[%s4442_s15] ss:$0 sm:$0xff] }
0x1189   :  { %v3558_v36 = vpop.eup %3557  ;;  %v1971_v42 = vmul.f32 %v3556_v4, %v1906_v24  ;;  %3232 = vmatmul.msk.bf16.vlgmr.msra.gmra.mxu3 %vm70_vm0, %v2041_v11  ;;  %vm1976_vm13 = vweird.f32 %v3556_v4 }
0x118a   :  { %3559 = vrcp.f32 %v1907_v13  ;;  %v1908_v37 = vadd.f32 1.0, %v3558_v36  ;;  %vm1977_vm15 = vmor %vm1975_vm14, %vm1976_vm13  ;;  %v1996_v62 = vand.u32 2147483648, %v1907_v13  ;;  %v1994_v10 = vand.u32 2147483647, %v1907_v13 }
0x118b   :  { %v1972_v43 = vsub.f32 1.0, %v1971_v42  ;;  %vm1990_vm4 = vweird.f32 %v1907_v13 }
0x118c   :  { %v1874_v44 = vpop.f32.mrf.mxu2  ;;  %3561 = vrcp.f32 %v1908_v37  ;;  %2610 = vmatpush.bf16.msrb.mxu1 %v3452_v45  ;;  %v2011_v17 = vand.u32 2147483648, %v1908_v37  ;;  %v1997_v19 = vor.u32 1.1754944e-38, %v1996_v62  ;;  %v2009_v20 = vand.u32 2147483647, %v1908_v37 }
0x118d   :  { %v1973_v47 = vmul.f32 %v3556_v4, %v1972_v43  ;;  %v4361_v50 = vadd.f32 %v3478_v1, %v1874_v44  ;;  %vm1995_vm7 = vcmp.eq.f32.partialorder %v1994_v10, 8.507059e+37  ;;  %vm2005_vm8 = vweird.f32 %v1908_v37  ;;  %v3484_v10 = vld [vmem:[%s4442_s15 + $0x5] ss:$0 sm:$0xff] }
0x118e   :  { %v2012_v25 = vor.u32 1.1754944e-38, %v2011_v17  ;;  %vm2010_vm10 = vcmp.eq.f32.partialorder %v2009_v20, 8.507059e+37 }
0x118f   :  { %v1974_v52 = vadd.f32 %v3556_v4, %v1973_v47  ;;  %v3164_v53 = vmul.f32 -1.442695, %v4361_v50 }
0x1190   :  { %v3560_v51 = vpop.eup %3559 }
0x1191   :  { %v1986_v55 = vmul.f32 %v3560_v51, %v1907_v13  ;;  %v1978_v57 = vsel %vm1977_vm15, %v3556_v4, %v1974_v52  ;;  %3563 = vpow2.f32 %v3164_v53  ;;  %vm1991_vm3 = vweird.f32 %v3560_v51  ;;  %v3480_v4 = vld [vmem:[%s4442_s15 + $0x1] ss:$0 sm:$0xff]  ;;  %v3458_v52 = vld [vmem:[%s4446_s18 + $0x10] sm:$0xff] }
0x1192   :  { %v3562_v58 = vpop.eup %3561  ;;  %v1983_v60 = vsel %vm1980_vm2, %v1982_v54, %v1978_v57  ;;  %vm1992_vm5 = vmor %vm1990_vm4, %vm1991_vm3  ;;  %v3486_v57 = vld [vmem:[%s4445_s17] ss:$0 sm:$0xff] }
0x1193   :  { %v1987_v12 = vsub.f32 1.0, %v1986_v55  ;;  %v2034_v61 = vmul.f32 %v1983_v60, %v4282_v33  ;;  %v2001_v63 = vmul.f32 %v3562_v58, %v1908_v37  ;;  %vm2006_vm6 = vweird.f32 %v3562_v58  ;;  %v3457_v55 = vld [vmem:[%s4446_s18 + $0x8] sm:$0xff] }
0x1194   :  { %v1876_v39 = vpop.f32.mrf.mxu2  ;;  %vm2007_vm9 = vmor %vm2005_vm8, %vm2006_vm6 }
0x1195   :  { %v1988_v7 = vmul.f32 %v3560_v51, %v1987_v12  ;;  %v2042_v5 = vpack.c.bf16 %v2034_v61, %v2034_v61  ;;  %v2002_v15 = vsub.f32 1.0, %v2001_v63  ;;  %v3485_v63 = vld [vmem:[%s4442_s15 + $0x6] ss:$0 sm:$0xff]  ;;  %v3487_v39 = vld [vmem:[%s4442_s15 + $0x7] ss:$0 sm:$0xff] }
0x1197   :  { %v1989_v16 = vadd.f32 %v3560_v51, %v1988_v7  ;;  %v3564_v34 = vpop.eup %3563  ;;  %v2003_v38 = vmul.f32 %v3562_v58, %v2002_v15  ;;  %3249 = vmatmul.msk.bf16.vlgmr.msrb.gmra.mxu0 %vm70_vm0, %v2042_v5 }
0x1198   :  { %v1909_v21 = vadd.f32 1.0, %v3564_v34 }
0x1199   :  { %v1993_v33 = vsel %vm1992_vm5, %v3560_v51, %v1989_v16  ;;  %v2004_v23 = vadd.f32 %v3562_v58, %v2003_v38  ;;  %v3459_v51 = vld [vmem:[%s4446_s18 + $0x18] sm:$0xff]  ;;  %v3483_v16 = vld [vmem:[%s4442_s15 + $0x4] ss:$0 sm:$0xff] }
0x119a   :  { %v1998_v22 = vsel %vm1995_vm7, %v1997_v19, %v1993_v33  ;;  %3565 = vrcp.f32 %v1909_v21  ;;  %v2026_v30 = vand.u32 2147483648, %v1909_v21  ;;  %vm2020_vm12 = vweird.f32 %v1909_v21  ;;  %2679 = vmatpush.bf16.msrb.mxu2 %v3459_v51  ;;  %v3482_v33 = vld [vmem:[%s4442_s15 + $0x3] ss:$0 sm:$0xff] }
0x119b   :  { %v2035_v24 = vmul.f32 %v1998_v22, %v4308_v48  ;;  %v2008_v26 = vsel %vm2007_vm9, %v3562_v58, %v2004_v23  ;;  %v2024_v48 = vand.u32 2147483647, %v1909_v21  ;;  %v3456_v58 = vld [vmem:[%s4446_s18] sm:$0xff] }
0x119c   :  { %v2013_v56 = vsel %vm2010_vm10, %v2012_v25, %v2008_v26  ;;  %v2027_v31 = vor.u32 1.1754944e-38, %v2026_v30 }
0x119d   :  { %v2043_v59 = vpack.c.bf16 %v2035_v24, %v2035_v24  ;;  %v2036_v27 = vmul.f32 %v2013_v56, %v4320_v18  ;;  %vm2025_vm14 = vcmp.eq.f32.partialorder %v2024_v48, 8.507059e+37  ;;  %v3481_v24 = vld [vmem:[%s4442_s15 + $0x2] ss:$0 sm:$0xff] }
0x119e   :  { %2680 = vmatpush.bf16.msrb.mxu2 %v3458_v52 }
0x119f   :  { %3266 = vmatmul.msk.bf16.vlgmr.msra.gmra.mxu1 %vm70_vm0, %v2043_v59  ;;  %v2044_v40 = vpack.c.bf16 %v2036_v27, %v2036_v27 }
0x11a0   :  { %v3566_v28 = vpop.eup %3565 }
0x11a1   :  { %v2016_v29 = vmul.f32 %v3566_v28, %v1909_v21  ;;  %3283 = vmatmul.msk.bf16.vlgmr.msra.gmra.mxu2 %vm70_vm0, %v2044_v40  ;;  %vm2021_vm11 = vweird.f32 %v3566_v28 }
0x11a2   :  { %vm2022_vm13 = vmor %vm2020_vm12, %vm2021_vm11  ;;  %2681 = vmatpush.bf16.msrb.mxu2 %v3457_v55 }
0x11a3   :  { %v2017_v3 = vsub.f32 1.0, %v2016_v29 }
0x11a5   :  { %v2018_v9 = vmul.f32 %v3566_v28, %v2017_v3 }
0x11a6   :  { %2682 = vmatpush.bf16.msrb.mxu2 %v3456_v58 }
0x11a7   :  { %v2019_v2 = vadd.f32 %v3566_v28, %v2018_v9 }
0x11a9   :  { %v2023_v6 = vsel %vm2022_vm13, %v3566_v28, %v2019_v2  ;;  %v2542_v2 = vpop.trf.xlu2 }
0x11aa   :  { %v2028_v11 = vsel %vm2025_vm14, %v2027_v31, %v2023_v6 }
0x11ab   :  { %v2037_v18 = vmul.f32 %v2028_v11, %v4361_v50 }
0x11ad   :  { %v2045_v13 = vpack.c.bf16 %v2037_v18, %v2037_v18 }
0x11af   :  { %3318 = vmatmul.msk.bf16.vlgmr.msrb.gmra.mxu1 %vm70_vm0, %v3990_v8  ;;  %3300 = vmatmul.msk.bf16.vlgmr.msrb.gmra.mxu3 %vm70_vm0, %v2045_v13 }
0x11f4   :  { %v2178_v32 = vpop.f32.mrf.mxu3 }
0x11f5   :  { %v2179_v1 = vadd.f32 %v3479_v14, %v2178_v32 }
0x11fc   :  { %v2180_v36 = vpop.f32.mrf.mxu3  ;;  %v2218_v42 = vpop.f32.mrf.mxu1 }
0x11fd   :  { %v2219_v37 = vadd.f32 %v3480_v4, %v2218_v42  ;;  %v3488_v42 = vld [vmem:[%s4447_s19] ss:$0 sm:$0xff] }
0x11ff   :  { %v2530_v43 = vpack.c.bf16 %v2219_v37, %v2179_v1 }
0x1204   :  { %v2220_v44 = vpop.f32.mrf.mxu1 }
0x120a   :  { %v2258_v0 = vpop.f32.mrf.mxu2 }
0x120b   :  { %v2259_v29 = vadd.f32 %v3481_v24, %v2258_v0 }
0x120c   :  { %v2298_v45 = vpop.f32.mrf.mxu3 }
0x120d   :  { %v2299_v56 = vadd.f32 %v3482_v33, %v2298_v45 }
0x120f   :  { %v2531_v30 = vpack.c.bf16 %v2299_v56, %v2259_v29 }
0x1212   :  { %v2260_v8 = vpop.f32.mrf.mxu2 }
0x1214   :  { %v2300_v46 = vpop.f32.mrf.mxu3  ;;  %v2338_v47 = vpop.f32.mrf.mxu0 }
0x1215   :  { %v2339_v25 = vadd.f32 %v3483_v16, %v2338_v47 }
0x121c   :  { %v2378_v49 = vpop.f32.mrf.mxu1  ;;  %v2340_v50 = vpop.f32.mrf.mxu0 }
0x121d   :  { %v2379_v21 = vadd.f32 %v3484_v10, %v2378_v49 }
0x121f   :  { %v2532_v27 = vpack.c.bf16 %v2379_v21, %v2339_v25 }
0x1224   :  { %v2380_v53 = vpop.f32.mrf.mxu1  ;;  %v2418_v54 = vpop.f32.mrf.mxu2 }
0x1225   :  { %v2419_v17 = vadd.f32 %v3485_v63, %v2418_v54 }
0x122c   :  { %v2612_v60 = vpop.f32.mrf.mxu1  ;;  %v2420_v12 = vpop.f32.mrf.mxu2 }
0x122d   :  { %v2613_v61 = vadd.f32 %v3486_v57, %v2612_v60 }
0x122f   :  { %v2619_v62 = vmul.f32 0.044715, %v2613_v61  ;;  %v2617_v11 = vmul.f32 0.5, %v2613_v61 }
0x1231   :  { %v2621_v7 = vmul.f32 %v2619_v62, %v2613_v61 }
0x1232   :  { %v2458_v15 = vpop.f32.mrf.mxu3 }
0x1233   :  { %v2623_v5 = vmul.f32 %v2621_v7, %v2613_v61  ;;  %v2459_v34 = vadd.f32 %v3487_v39, %v2458_v15 }
0x1234   :  { %v2614_v19 = vpop.f32.mrf.mxu1 }
0x1235   :  { %v2625_v38 = vadd.f32 %v2623_v5, %v2613_v61  ;;  %v2615_v20 = vadd.f32 %v3486_v57, %v2614_v19  ;;  %v2533_v22 = vpack.c.bf16 %v2459_v34, %v2419_v17 }
0x1237   :  { %v2620_v23 = vmul.f32 0.044715, %v2615_v20  ;;  %2557 = vmatpush.bf16.msra.mxu0 %v2533_v22  ;;  %v2627_v26 = vmul.f32 0.7978846, %v2625_v38  ;;  %v2618_v18 = vmul.f32 0.5, %v2615_v20 }
0x1239   :  { %v2622_v59 = vmul.f32 %v2620_v23, %v2615_v20  ;;  %3567 = vtanh.f32 %v2627_v26 }
0x123a   :  { %v2460_v28 = vpop.f32.mrf.mxu3 }
0x123b   :  { %v2624_v40 = vmul.f32 %v2622_v59, %v2615_v20  ;;  %2558 = vmatpush.bf16.msra.mxu0 %v2532_v27 }
0x123d   :  { %v2626_v3 = vadd.f32 %v2624_v40, %v2615_v20 }
0x123f   :  { %v2628_v9 = vmul.f32 0.7978846, %v2626_v3  ;;  %2559 = vmatpush.bf16.msra.mxu0 %v2531_v30  ;;  %v3568_v48 = vpop.eup %3567 }
0x1240   :  { %v2631_v31 = vadd.f32 1.0, %v3568_v48 }
0x1241   :  { %3569 = vtanh.f32 %v2628_v9 }
0x1242   :  { %v2633_v32 = vmul.f32 %v2631_v31, %v2617_v11 }
0x1243   :  { %2560 = vmatpush.bf16.msra.mxu0 %v2530_v43 }
0x1246   :  { %3301 = vmatmul.msk.bf16.vlgmr.msra.gmra.mxu0 %vm70_vm0, %v2542_v2 }
0x1247   :  { %v3570_v6 = vpop.eup %3569 }
0x1248   :  { %v2632_v13 = vadd.f32 1.0, %v3570_v6 }
0x124a   :  { %v2634_v14 = vmul.f32 %v2632_v13, %v2618_v18 }
0x124c   :  { %v2635_v4 = vpack.c.bf16 %v2634_v14, %v2633_v32 }
0x124e   :  { %3335 = vmatmul.msk.bf16.vlgmr.msrb.gmra.mxu2 %vm70_vm0, %v2635_v4 }
0x12c3   :  { %v2562_v36 = vpop.f32.mrf.mxu0 }
0x12c4   :  { %v2689_v37 = vadd.f32 %v2562_v36, %v3967_v35 }
0x12cb   :  { %v2564_v0 = vpop.f32.mrf.mxu0 }
0x12cc   :  { %v2690_v8 = vadd.f32 %v2564_v0, %v3972_v41 }
0x12d1   :  { %v2684_v1 = vpop.f32.mrf.mxu2 }
0x12d2   :  { %v2685_v43 = vadd.f32 %v3488_v42, %v2684_v1 }
0x12d4   :  { %v2691_v44 = vadd.f32 %v2689_v37, %v2685_v43 }
0x12d6   :  { %2693 = vst.msk [vmem:[%s4448_s20] sm:$0xff] %vm70_vm0, %v2691_v44 }
0x12d9   :  { %v2686_v45 = vpop.f32.mrf.mxu2 }
0x12da   :  { %v2687_v46 = vadd.f32 %v3488_v42, %v2686_v45 }
0x12dc   :  { %v2692_v47 = vadd.f32 %v2690_v8, %v2687_v46 }
0x12de   :  { %2694 = vst.msk [vmem:[%s4448_s20 + $0x8] sm:$0x3] %vm74_vm1, %v2692_v47 }

</bundles_post_ra>
